<compile_context>
chip_gen: v6e
topology: v6e:2x2x1
jax: 0.10.0
libtpu: 0.0.40
codegen_flags: <defaults>
</compile_context>

<pallas_src>
import functools

import numpy as np
import jax
import jax.numpy as jnp
from jax import lax
from jax.experimental import pallas as pl
from jax.experimental.pallas import tpu as pltpu


CP = 128   # every channel / K dimension is packed into 128 lanes
F1 = 512   # fc1 width (the module's fixed output_size)
AP = 128   # padded action dimension (lane-dense final store)
C3 = 64    # conv2/conv3 output channels (module-fixed)


def _round_up(v, m):
    return (v + m - 1) // m * m


# ---------------------------------------------------------------------------
# The single fused kernel.
# ---------------------------------------------------------------------------
def _qnet_fused_kernel(x_ref, w1_ref, b1_ref, w2_ref, b2_ref, w3_ref, b3_ref,
                       w4_hbm, b4_ref, w5_hbm, b5_ref,
                       out_ref, w4_vmem, w5_vmem, dma_sem,
                       *, n, r1, r2, r3, c3, shifts12, blocks3, blocks4):
    """Whole QNetwork forward on VMEM / vreg resident data.

    Activation layout: 2-D [rows, CP] with row = (grid_row * g + grid_col) * n + batch.
    A conv tap group is a uniform row shift followed by one K=128 MXU matmul.
    """
    f32, bf16 = jnp.float32, jnp.bfloat16

    # Kick off the fc weight fetches first so they overlap the conv stack
    # (w4 is by far the largest operand).
    cp_w4 = pltpu.make_async_copy(w4_hbm, w4_vmem, dma_sem.at[0])
    cp_w5 = pltpu.make_async_copy(w5_hbm, w5_vmem, dma_sem.at[1])
    cp_w4.start()
    cp_w5.start()

    def mm(lhs_bf16, w_bf16):
        # bf16 x bf16 operands, f32 accumulation on the MXU.
        return jnp.dot(lhs_bf16, w_bf16, preferred_element_type=f32)

    def relu_bias(acc, b_ref):
        # bias + ReLU in f32, then a single bf16 cast for the next layer.
        return jnp.maximum(acc + b_ref[...], 0.0).astype(bf16)

    # ---- conv1 (k3, s1, p1): input phases packed along K lanes, the 4 output
    # phases packed along N lanes -> 4 dense matmuls. ------------------------
    acc = jnp.zeros((r1, CP), f32)
    for blk, s in enumerate(shifts12):
        acc += mm(x_ref[s:s + r1, :], w1_ref[blk])
    h1 = relu_bias(acc, b1_ref)                 # [r1, 128]: 4 phases x 32 ch

    # ---- conv2 (k4, s2): a stride-1 conv over the packed phases -> 4 matmuls
    # with fully dense K=128.  Output channels are duplicated into the upper
    # lane half (weight-side) for conv3's pair packing. -----------------------
    acc = jnp.zeros((r2, CP), f32)
    for blk, s in enumerate(shifts12):
        acc += mm(h1[s:s + r2, :], w2_ref[blk])
    h2 = relu_bias(acc, b2_ref)                 # [r2, 128]: 64 ch duplicated

    # ---- conv3 (k3, s1): 2 taps (2 x 64 real channels) per K=128 block.
    # Pair LHS = vselect of two row-shifted slices (channels already live in
    # both lane halves of h2). ------------------------------------------------
    lo3 = lax.broadcasted_iota(jnp.int32, (r3, CP), 1) < c3
    acc = jnp.zeros((r3, CP), f32)
    for blk, ss in enumerate(blocks3):
        a0 = h2[ss[0]:ss[0] + r3, :]
        if len(ss) == 2:
            lhs = jnp.where(lo3, a0, h2[ss[1]:ss[1] + r3, :])
        else:
            lhs = a0                            # weight rows 64:128 are zero
        acc += mm(lhs, w3_ref[blk])
    h3 = relu_bias(acc, b3_ref)                 # [r3, 128]: 64 ch duplicated

    # ---- fc1: 2 spatial positions (2 x 64 ch) per K=128 block.  The PyTorch
    # NCHW flatten order is absorbed into w4's packing (weight-side, free). ---
    cp_w4.wait()                                # fc1 weights must be resident
    lo4 = lax.broadcasted_iota(jnp.int32, (n, CP), 1) < c3
    acc = jnp.zeros((n, F1), f32)
    for blk, rs in enumerate(blocks4):
        a0 = h3[rs[0]:rs[0] + n, :]
        if len(rs) == 2:
            lhs = jnp.where(lo4, a0, h3[rs[1]:rs[1] + n, :])
        else:
            lhs = a0                            # weight rows 64:128 are zero
        acc += mm(lhs, w4_vmem[blk])
    h4 = jnp.maximum(acc + b4_ref[...], 0.0).astype(bf16)

    # ---- fc2 ----------------------------------------------------------------
    cp_w5.wait()
    out_ref[...] = (mm(h4, w5_vmem[...]) + b5_ref[...]).astype(out_ref.dtype)


# ---------------------------------------------------------------------------
# Host-side input prep (tiny; emits a single bf16 [rx, 128] matrix).
# TODO(synk): fold this small NCHW -> phase-packed reshape into the kernel
# (strided sublane copies) to drop the extra XLA fusion before the pallas_call.
# ---------------------------------------------------------------------------
def _prep_input(x, rx):
    n, c, h, w = x.shape
    xh = jnp.transpose(x, (0, 2, 3, 1))                       # NCHW -> NHWC
    xp = jnp.pad(xh, ((0, 0), (1, 1), (1, 1), (0, 0)))        # conv1 zero pad
    # 2x2 phase split, phases packed along the channel (lane) axis.
    phases = [xp[:, pp::2, qq::2, :] for pp in range(2) for qq in range(2)]
    xph = jnp.concatenate(phases, axis=-1)                    # [n, gh, g, 4c]
    gh, g = xph.shape[1], xph.shape[2]
    xph = jnp.transpose(xph, (1, 2, 0, 3)).reshape(gh * g * n, 4 * c)
    xph = jnp.pad(xph, ((0, rx - gh * g * n), (0, CP - 4 * c)))
    return xph.astype(jnp.bfloat16)


@jax.jit
def _fused_forward(x, packed):
    n, c, h, w = x.shape
    assert h % 2 == 0 and w % 2 == 0, "phase split needs even spatial dims"

    g = (w + 2) // 2                 # shared grid width of all flattened activations
    gh = (h + 2) // 2
    h1v, w1v = h // 2, w // 2                        # conv1 valid extent per phase
    h2v, w2v = (h - 4) // 2 + 1, (w - 4) // 2 + 1    # conv2 output (7x7 here)
    h3v, w3v = h2v - 2, w2v - 2                      # conv3 output (5x5 here)

    # Row counts: R_in >= R_out + max_row_shift so every shifted read stays in
    # bounds, and R_out covers that layer's valid output positions.
    r3 = _round_up(((h3v - 1) * g + w3v) * n, 8)
    r2 = _round_up(max(((h2v - 1) * g + w2v) * n, r3 + (2 * g + 2) * n), 8)
    r1 = _round_up(max(((h1v - 1) * g + w1v) * n, r2 + (g + 1) * n), 8)
    rx = _round_up(max(gh * g * n, r1 + (g + 1) * n), 8)

    # Static shift tables (conv1 and conv2 share the same 4 shift blocks).
    shifts12 = tuple((a * g + b) * n for a in range(2) for b in range(2))
    taps3 = [(i * g + j) * n for i in range(3) for j in range(3)]
    blocks3 = tuple(tuple(taps3[2 * k:2 * k + 2])
                    for k in range((len(taps3) + 1) // 2))
    pos4 = [((p // w3v) * g + (p % w3v)) * n for p in range(h3v * w3v)]
    blocks4 = tuple(tuple(pos4[2 * k:2 * k + 2])
                    for k in range((len(pos4) + 1) // 2))
    nb3, nb4 = len(blocks3), len(blocks4)
    assert packed["w3"].shape[0] == nb3 and packed["w4"].shape[0] == nb4

    xph = _prep_input(x, rx)

    kernel = functools.partial(
        _qnet_fused_kernel, n=n, r1=r1, r2=r2, r3=r3, c3=C3,
        shifts12=shifts12, blocks3=blocks3, blocks4=blocks4)

    operands = (xph, packed["w1"], packed["b1"], packed["w2"], packed["b2"],
                packed["w3"], packed["b3"], packed["w4"], packed["b4"],
                packed["w5"], packed["b5"])

    flops = (2 * CP * CP * (4 * r1 + 4 * r2 + nb3 * r3)
             + 2 * n * CP * F1 * nb4 + 2 * n * F1 * AP)
    bytes_accessed = int(sum(op.size * op.dtype.itemsize for op in operands)
                         + n * AP * 4)

    vmem = pl.BlockSpec(memory_space=pltpu.MemorySpace.VMEM)
    hbm = pl.BlockSpec(memory_space=pl.ANY)     # fc weights stay in HBM; DMA'd manually
    in_specs = [vmem, vmem, vmem, vmem, vmem, vmem, vmem, hbm, vmem, hbm, vmem]

    return pl.pallas_call(
        kernel,
        out_shape=jax.ShapeDtypeStruct((n, AP), jnp.float32),
        in_specs=in_specs,
        out_specs=vmem,
        scratch_shapes=[
            pltpu.VMEM((nb4, CP, F1), jnp.bfloat16),   # fc1 weight landing buffer
            pltpu.VMEM((F1, AP), jnp.bfloat16),        # fc2 weight landing buffer
            pltpu.SemaphoreType.DMA((2,)),
        ],
        compiler_params=pltpu.CompilerParams(
            vmem_limit_bytes=8 * 1024 * 1024),
        cost_estimate=pl.CostEstimate(flops=flops, transcendentals=0,
                                      bytes_accessed=bytes_accessed),
    )(*operands)


def qnetwork_forward(x, packed, num_actions):
    """QNetwork forward: x [N, C, H, W] -> [N, num_actions]."""
    return _fused_forward(x, packed)[:, :num_actions]


# ---------------------------------------------------------------------------
# One-time weight packing (bf16, K-packed, lane-padded, flatten-order fix).
# ---------------------------------------------------------------------------
def pack_params(params):
    bf16 = jnp.bfloat16

    # conv1: block per shift (a,b).  K lanes = (input_phase, cin); N lanes =
    # (output_phase, cout).
    w1 = np.asarray(params["conv1_w"], np.float32)         # [32, ci, 3, 3]
    co1, ci1, kh1, kw1 = w1.shape
    w1p = np.zeros((4, CP, CP), np.float32)
    for a in range(2):
        for b in range(2):
            blk = a * 2 + b
            for p in range(2):
                for q in range(2):
                    for pp in range(2):
                        for qq in range(2):
                            i = 2 * a + pp - p
                            j = 2 * b + qq - q
                            if 0 <= i < kh1 and 0 <= j < kw1:
                                kr = (pp * 2 + qq) * ci1
                                nc = (p * 2 + q) * co1
                                w1p[blk, kr:kr + ci1, nc:nc + co1] = w1[:, :, i, j].T
    b1 = np.asarray(params["conv1_b"], np.float32)
    b1p = np.zeros((1, CP), np.float32)
    for ph in range(4):
        b1p[0, ph * co1:(ph + 1) * co1] = b1

    # conv2: block per shift (a,b).  K lanes = (input_phase, cin); output
    # channels duplicated into the upper lane half for conv3's pair packing.
    w2 = np.asarray(params["conv2_w"], np.float32)         # [64, 32, 4, 4]
    co2, ci2 = w2.shape[0], w2.shape[1]
    w2p = np.zeros((4, CP, CP), np.float32)
    for a in range(2):
        for b in range(2):
            blk = a * 2 + b
            for pp in range(2):
                for qq in range(2):
                    kr = (pp * 2 + qq) * ci2
                    w2p[blk, kr:kr + ci2, :co2] = w2[:, :, 2 * a + pp, 2 * b + qq].T
    w2p[:, :, co2:2 * co2] = w2p[:, :, :co2]
    b2 = np.asarray(params["conv2_b"], np.float32)
    b2p = np.zeros((1, CP), np.float32)
    b2p[0, :co2] = b2
    b2p[0, co2:2 * co2] = b2

    # conv3: 2 taps per K=128 block (last block single, upper rows zero);
    # output channels duplicated for fc1's pair packing.
    w3 = np.asarray(params["conv3_w"], np.float32)         # [64, 64, 3, 3]
    co3, ci3, kh3, kw3 = w3.shape
    taps = [(i, j) for i in range(kh3) for j in range(kw3)]
    nb3 = (len(taps) + 1) // 2
    w3p = np.zeros((nb3, CP, CP), np.float32)
    for blk in range(nb3):
        for which in range(2):
            t = 2 * blk + which
            if t < len(taps):
                i, j = taps[t]
                w3p[blk, which * ci3:(which + 1) * ci3, :co3] = w3[:, :, i, j].T
    w3p[:, :, co3:2 * co3] = w3p[:, :, :co3]
    b3 = np.asarray(params["conv3_b"], np.float32)
    b3p = np.zeros((1, CP), np.float32)
    b3p[0, :co3] = b3
    b3p[0, co3:2 * co3] = b3

    # fc1: 2 spatial positions per K=128 block; PyTorch (c, h, w) flatten order
    # absorbed here.
    f1w = np.asarray(params["fc1_w"], np.float32)          # [512, co3*hw]
    f1n, kf = f1w.shape
    hw = kf // co3
    f1w3 = f1w.reshape(f1n, co3, hw)                       # [f, c, pos]
    nb4 = (hw + 1) // 2
    w4p = np.zeros((nb4, CP, f1n), np.float32)
    for blk in range(nb4):
        for which in range(2):
            pos = 2 * blk + which
            if pos < hw:
                w4p[blk, which * co3:(which + 1) * co3, :] = f1w3[:, :, pos].T
    b4p = np.asarray(params["fc1_b"], np.float32)[None, :]

    # fc2
    w5 = np.asarray(params["fc2_w"], np.float32)           # [A, 512]
    na = w5.shape[0]
    w5p = np.zeros((f1n, AP), np.float32)
    w5p[:, :na] = w5.T
    b5p = np.zeros((1, AP), np.float32)
    b5p[0, :na] = np.asarray(params["fc2_b"], np.float32)

    return {
        "w1": jnp.asarray(w1p, bf16), "b1": jnp.asarray(b1p, jnp.float32),
        "w2": jnp.asarray(w2p, bf16), "b2": jnp.asarray(b2p, jnp.float32),
        "w3": jnp.asarray(w3p, bf16), "b3": jnp.asarray(b3p, jnp.float32),
        "w4": jnp.asarray(w4p, bf16), "b4": jnp.asarray(b4p, jnp.float32),
        "w5": jnp.asarray(w5p, bf16), "b5": jnp.asarray(b5p, jnp.float32),
    }


# ---------------------------------------------------------------------------
# Deterministic parameter init (PyTorch-default-style uniform).
# ---------------------------------------------------------------------------
def init_params(key, in_channels, H, W, num_actions):
    def uni(k, shape, fan_in):
        bound = 1.0 / jnp.sqrt(jnp.float32(fan_in))
        return jax.random.uniform(k, shape, jnp.float32, -bound, bound)

    ks = jax.random.split(key, 10)
    h1, w1 = H, W                                   # conv1: k3 s1 p1
    h2, w2 = (h1 - 4) // 2 + 1, (w1 - 4) // 2 + 1   # conv2: k4 s2
    h3, w3 = h2 - 2, w2 - 2                         # conv3: k3 s1
    conv_out = 64 * h3 * w3

    return {
        "conv1_w": uni(ks[0], (32, in_channels, 3, 3), in_channels * 9),
        "conv1_b": uni(ks[1], (32,), in_channels * 9),
        "conv2_w": uni(ks[2], (64, 32, 4, 4), 32 * 16),
        "conv2_b": uni(ks[3], (64,), 32 * 16),
        "conv3_w": uni(ks[4], (64, 64, 3, 3), 64 * 9),
        "conv3_b": uni(ks[5], (64,), 64 * 9),
        "fc1_w":   uni(ks[6], (512, conv_out), conv_out),
        "fc1_b":   uni(ks[7], (512,), conv_out),
        "fc2_w":   uni(ks[8], (num_actions, 512), 512),
        "fc2_b":   uni(ks[9], (num_actions,), 512),
    }


# ---------------------------------------------------------------------------
# Pure-JAX reference.  match_bf16=True quantizes every matmul operand to bf16
# exactly like the kernel does (accumulation stays f32), so it validates the
# kernel's structure at tight tolerance.
# ---------------------------------------------------------------------------
def qnetwork_reference(x, params, match_bf16=False):
    if match_bf16:
        q = lambda a: a.astype(jnp.bfloat16).astype(jnp.float32)
    else:
        q = lambda a: a

    def conv(hx, wt, bv, stride, padding):
        out = lax.conv_general_dilated(
            q(hx), q(wt), window_strides=(stride, stride),
            padding=[(padding, padding), (padding, padding)],
            dimension_numbers=("NCHW", "OIHW", "NCHW"),
            preferred_element_type=jnp.float32)
        return jnp.maximum(out + bv[None, :, None, None], 0.0)

    hx = conv(x, params["conv1_w"], params["conv1_b"], 1, 1)
    hx = conv(hx, params["conv2_w"], params["conv2_b"], 2, 0)
    hx = conv(hx, params["conv3_w"], params["conv3_b"], 1, 0)
    hx = hx.reshape(hx.shape[0], -1)
    hx = jnp.maximum(jnp.dot(q(hx), q(params["fc1_w"].T),
                             preferred_element_type=jnp.float32)
                     + params["fc1_b"], 0.0)
    return jnp.dot(q(hx), q(params["fc2_w"].T),
                   preferred_element_type=jnp.float32) + params["fc2_b"]


if __name__ == "__main__":
    key = jax.random.PRNGKey(0)
    k_x, k_p = jax.random.split(key)

    # Small shapes consistent with the module: input_shape=(4, 16, 16), batch=2.
    B, C, H, W = 2, 4, 16, 16
    num_actions = 6

    x = jax.random.normal(k_x, (B, C, H, W), jnp.float32)
    params = init_params(k_p, C, H, W, num_actions)
    packed = pack_params(params)

    out = jax.block_until_ready(qnetwork_forward(x, packed, num_actions))
    assert out.shape == (B, num_actions), out.shape

    # Tight check against a reference that uses the same bf16 operand
    # quantization (validates the conv / flatten / fc structure).
    ref_bf16 = jax.block_until_ready(qnetwork_reference(x, params, match_bf16=True))
    err = float(jnp.max(jnp.abs(out - ref_bf16)))
    assert err < 2e-3, f"bf16-matched reference mismatch: {err}"

    # Loose sanity check against the full-f32 reference (bf16 drift only).
    ref_f32 = jax.block_until_ready(qnetwork_reference(x, params, match_bf16=False))
    err32 = float(jnp.max(jnp.abs(out - ref_f32)))
    assert err32 < 5e-2, f"f32 reference mismatch: {err32}"

    print("KERNEL_OK")
</pallas_src>

<mosaic_0001>
module attributes {stable_mosaic.version = 11 : i64} {
  func.func @_qnet_fused_kernel(%arg0: memref<176x128xbf16, #tpu.memory_space<vmem>>, %arg1: memref<4x128x128xbf16, #tpu.memory_space<vmem>>, %arg2: memref<1x128xf32, #tpu.memory_space<vmem>>, %arg3: memref<4x128x128xbf16, #tpu.memory_space<vmem>>, %arg4: memref<1x128xf32, #tpu.memory_space<vmem>>, %arg5: memref<5x128x128xbf16, #tpu.memory_space<vmem>>, %arg6: memref<1x128xf32, #tpu.memory_space<vmem>>, %arg7: memref<13x128x512xbf16, #tpu.memory_space<any>>, %arg8: memref<1x512xf32, #tpu.memory_space<vmem>>, %arg9: memref<512x128xbf16, #tpu.memory_space<any>>, %arg10: memref<1x128xf32, #tpu.memory_space<vmem>>, %arg11: memref<2x128xf32, #tpu.memory_space<vmem>>, %arg12: memref<13x128x512xbf16, #tpu.memory_space<vmem>>, %arg13: memref<512x128xbf16, #tpu.memory_space<vmem>>, %arg14: memref<2x!tpu.dma_semaphore, #tpu.memory_space<semaphore_mem>>) attributes {dimension_semantics = [], scalar_prefetch = 0 : i64, scratch_operands = 3 : i64, tpu.core_type = #tpu.core_type<tc>} {
    %c0_i32 = arith.constant 0 : i32
    %0 = tpu.memref_slice %arg14[%c0_i32] : memref<2x!tpu.dma_semaphore, #tpu.memory_space<semaphore_mem>> -> memref<1x!tpu.dma_semaphore, #tpu.memory_space<semaphore_mem>>
    %1 = tpu.memref_squeeze %0 : memref<1x!tpu.dma_semaphore, #tpu.memory_space<semaphore_mem>> -> memref<!tpu.dma_semaphore, #tpu.memory_space<semaphore_mem>>
    tpu.enqueue_dma source(%arg7 : memref<13x128x512xbf16, #tpu.memory_space<any>>) target(%arg12 : memref<13x128x512xbf16, #tpu.memory_space<vmem>>) target_semaphore(%1 : memref<!tpu.dma_semaphore, #tpu.memory_space<semaphore_mem>>)
    %c1_i32 = arith.constant 1 : i32
    %2 = tpu.memref_slice %arg14[%c1_i32] : memref<2x!tpu.dma_semaphore, #tpu.memory_space<semaphore_mem>> -> memref<1x!tpu.dma_semaphore, #tpu.memory_space<semaphore_mem>>
    %3 = tpu.memref_squeeze %2 : memref<1x!tpu.dma_semaphore, #tpu.memory_space<semaphore_mem>> -> memref<!tpu.dma_semaphore, #tpu.memory_space<semaphore_mem>>
    tpu.enqueue_dma source(%arg9 : memref<512x128xbf16, #tpu.memory_space<any>>) target(%arg13 : memref<512x128xbf16, #tpu.memory_space<vmem>>) target_semaphore(%3 : memref<!tpu.dma_semaphore, #tpu.memory_space<semaphore_mem>>)
    %cst = arith.constant 0.000000e+00 : f32
    %4 = vector.broadcast %cst : f32 to vector<152x128xf32>
    %c0 = arith.constant 0 : index
    %c0_0 = arith.constant 0 : index
    %5 = vector.load %arg0[%c0, %c0_0] : memref<176x128xbf16, #tpu.memory_space<vmem>>, vector<152x128xbf16>
    %c0_1 = arith.constant 0 : index
    %c0_2 = arith.constant 0 : index
    %c0_3 = arith.constant 0 : index
    %6 = vector.load %arg1[%c0_1, %c0_2, %c0_3] : memref<4x128x128xbf16, #tpu.memory_space<vmem>>, vector<1x128x128xbf16>
    %7 = vector.shape_cast %6 : vector<1x128x128xbf16> to vector<128x128xbf16>
    %cst_4 = arith.constant dense<0.000000e+00> : vector<152x128xf32>
    %8 = tpu.matmul %5, %7, %cst_4 {dimension_numbers = #tpu.dot_dimension_numbers<[1], [0], [0], [1], [0, 0, 1, 1], [], []>} : vector<152x128xbf16>, vector<128x128xbf16>, vector<152x128xf32> -> vector<152x128xf32>
    %9 = arith.addf %4, %8 : vector<152x128xf32>
    %c2 = arith.constant 2 : index
    %c0_5 = arith.constant 0 : index
    %10 = vector.load %arg0[%c2, %c0_5] : memref<176x128xbf16, #tpu.memory_space<vmem>>, vector<152x128xbf16>
    %c1 = arith.constant 1 : index
    %c0_6 = arith.constant 0 : index
    %c0_7 = arith.constant 0 : index
    %11 = vector.load %arg1[%c1, %c0_6, %c0_7] : memref<4x128x128xbf16, #tpu.memory_space<vmem>>, vector<1x128x128xbf16>
    %12 = vector.shape_cast %11 : vector<1x128x128xbf16> to vector<128x128xbf16>
    %cst_8 = arith.constant dense<0.000000e+00> : vector<152x128xf32>
    %13 = tpu.matmul %10, %12, %cst_8 {dimension_numbers = #tpu.dot_dimension_numbers<[1], [0], [0], [1], [0, 0, 1, 1], [], []>} : vector<152x128xbf16>, vector<128x128xbf16>, vector<152x128xf32> -> vector<152x128xf32>
    %14 = arith.addf %9, %13 : vector<152x128xf32>
    %c18 = arith.constant 18 : index
    %c0_9 = arith.constant 0 : index
    %15 = vector.load %arg0[%c18, %c0_9] : memref<176x128xbf16, #tpu.memory_space<vmem>>, vector<152x128xbf16>
    %c2_10 = arith.constant 2 : index
    %c0_11 = arith.constant 0 : index
    %c0_12 = arith.constant 0 : index
    %16 = vector.load %arg1[%c2_10, %c0_11, %c0_12] : memref<4x128x128xbf16, #tpu.memory_space<vmem>>, vector<1x128x128xbf16>
    %17 = vector.shape_cast %16 : vector<1x128x128xbf16> to vector<128x128xbf16>
    %cst_13 = arith.constant dense<0.000000e+00> : vector<152x128xf32>
    %18 = tpu.matmul %15, %17, %cst_13 {dimension_numbers = #tpu.dot_dimension_numbers<[1], [0], [0], [1], [0, 0, 1, 1], [], []>} : vector<152x128xbf16>, vector<128x128xbf16>, vector<152x128xf32> -> vector<152x128xf32>
    %19 = arith.addf %14, %18 : vector<152x128xf32>
    %c20 = arith.constant 20 : index
    %c0_14 = arith.constant 0 : index
    %20 = vector.load %arg0[%c20, %c0_14] : memref<176x128xbf16, #tpu.memory_space<vmem>>, vector<152x128xbf16>
    %c3 = arith.constant 3 : index
    %c0_15 = arith.constant 0 : index
    %c0_16 = arith.constant 0 : index
    %21 = vector.load %arg1[%c3, %c0_15, %c0_16] : memref<4x128x128xbf16, #tpu.memory_space<vmem>>, vector<1x128x128xbf16>
    %22 = vector.shape_cast %21 : vector<1x128x128xbf16> to vector<128x128xbf16>
    %cst_17 = arith.constant dense<0.000000e+00> : vector<152x128xf32>
    %23 = tpu.matmul %20, %22, %cst_17 {dimension_numbers = #tpu.dot_dimension_numbers<[1], [0], [0], [1], [0, 0, 1, 1], [], []>} : vector<152x128xbf16>, vector<128x128xbf16>, vector<152x128xf32> -> vector<152x128xf32>
    %24 = arith.addf %19, %23 : vector<152x128xf32>
    %c0_18 = arith.constant 0 : index
    %c0_19 = arith.constant 0 : index
    %25 = vector.load %arg2[%c0_18, %c0_19] : memref<1x128xf32, #tpu.memory_space<vmem>>, vector<1x128xf32>
    %26 = vector.broadcast %25 : vector<1x128xf32> to vector<152x128xf32>
    %27 = arith.addf %24, %26 : vector<152x128xf32>
    %cst_20 = arith.constant 0.000000e+00 : f32
    %28 = vector.broadcast %cst_20 : f32 to vector<152x128xf32>
    %29 = arith.maximumf %27, %28 : vector<152x128xf32>
    %30 = arith.truncf %29 : vector<152x128xf32> to vector<152x128xbf16>
    %cst_21 = arith.constant 0.000000e+00 : f32
    %31 = vector.broadcast %cst_21 : f32 to vector<128x128xf32>
    %32 = vector.extract_strided_slice %30 {offsets = [0, 0], sizes = [128, 128], strides = [1, 1]} : vector<152x128xbf16> to vector<128x128xbf16>
    %c0_22 = arith.constant 0 : index
    %c0_23 = arith.constant 0 : index
    %c0_24 = arith.constant 0 : index
    %33 = vector.load %arg3[%c0_22, %c0_23, %c0_24] : memref<4x128x128xbf16, #tpu.memory_space<vmem>>, vector<1x128x128xbf16>
    %34 = vector.shape_cast %33 : vector<1x128x128xbf16> to vector<128x128xbf16>
    %cst_25 = arith.constant dense<0.000000e+00> : vector<128x128xf32>
    %35 = tpu.matmul %32, %34, %cst_25 {dimension_numbers = #tpu.dot_dimension_numbers<[1], [0], [0], [1], [0, 0, 1, 1], [], []>} : vector<128x128xbf16>, vector<128x128xbf16>, vector<128x128xf32> -> vector<128x128xf32>
    %36 = arith.addf %31, %35 : vector<128x128xf32>
    %37 = vector.extract_strided_slice %30 {offsets = [2, 0], sizes = [128, 128], strides = [1, 1]} : vector<152x128xbf16> to vector<128x128xbf16>
    %c1_26 = arith.constant 1 : index
    %c0_27 = arith.constant 0 : index
    %c0_28 = arith.constant 0 : index
    %38 = vector.load %arg3[%c1_26, %c0_27, %c0_28] : memref<4x128x128xbf16, #tpu.memory_space<vmem>>, vector<1x128x128xbf16>
    %39 = vector.shape_cast %38 : vector<1x128x128xbf16> to vector<128x128xbf16>
    %cst_29 = arith.constant dense<0.000000e+00> : vector<128x128xf32>
    %40 = tpu.matmul %37, %39, %cst_29 {dimension_numbers = #tpu.dot_dimension_numbers<[1], [0], [0], [1], [0, 0, 1, 1], [], []>} : vector<128x128xbf16>, vector<128x128xbf16>, vector<128x128xf32> -> vector<128x128xf32>
    %41 = arith.addf %36, %40 : vector<128x128xf32>
    %42 = vector.extract_strided_slice %30 {offsets = [18, 0], sizes = [128, 128], strides = [1, 1]} : vector<152x128xbf16> to vector<128x128xbf16>
    %c2_30 = arith.constant 2 : index
    %c0_31 = arith.constant 0 : index
    %c0_32 = arith.constant 0 : index
    %43 = vector.load %arg3[%c2_30, %c0_31, %c0_32] : memref<4x128x128xbf16, #tpu.memory_space<vmem>>, vector<1x128x128xbf16>
    %44 = vector.shape_cast %43 : vector<1x128x128xbf16> to vector<128x128xbf16>
    %cst_33 = arith.constant dense<0.000000e+00> : vector<128x128xf32>
    %45 = tpu.matmul %42, %44, %cst_33 {dimension_numbers = #tpu.dot_dimension_numbers<[1], [0], [0], [1], [0, 0, 1, 1], [], []>} : vector<128x128xbf16>, vector<128x128xbf16>, vector<128x128xf32> -> vector<128x128xf32>
    %46 = arith.addf %41, %45 : vector<128x128xf32>
    %47 = vector.extract_strided_slice %30 {offsets = [20, 0], sizes = [128, 128], strides = [1, 1]} : vector<152x128xbf16> to vector<128x128xbf16>
    %c3_34 = arith.constant 3 : index
    %c0_35 = arith.constant 0 : index
    %c0_36 = arith.constant 0 : index
    %48 = vector.load %arg3[%c3_34, %c0_35, %c0_36] : memref<4x128x128xbf16, #tpu.memory_space<vmem>>, vector<1x128x128xbf16>
    %49 = vector.shape_cast %48 : vector<1x128x128xbf16> to vector<128x128xbf16>
    %cst_37 = arith.constant dense<0.000000e+00> : vector<128x128xf32>
    %50 = tpu.matmul %47, %49, %cst_37 {dimension_numbers = #tpu.dot_dimension_numbers<[1], [0], [0], [1], [0, 0, 1, 1], [], []>} : vector<128x128xbf16>, vector<128x128xbf16>, vector<128x128xf32> -> vector<128x128xf32>
    %51 = arith.addf %46, %50 : vector<128x128xf32>
    %c0_38 = arith.constant 0 : index
    %c0_39 = arith.constant 0 : index
    %52 = vector.load %arg4[%c0_38, %c0_39] : memref<1x128xf32, #tpu.memory_space<vmem>>, vector<1x128xf32>
    %53 = vector.broadcast %52 : vector<1x128xf32> to vector<128x128xf32>
    %54 = arith.addf %51, %53 : vector<128x128xf32>
    %cst_40 = arith.constant 0.000000e+00 : f32
    %55 = vector.broadcast %cst_40 : f32 to vector<128x128xf32>
    %56 = arith.maximumf %54, %55 : vector<128x128xf32>
    %57 = arith.truncf %56 : vector<128x128xf32> to vector<128x128xbf16>
    %58 = tpu.iota {dimensions = array<i32: 1>} : vector<88x128xi32>
    %c64_i32 = arith.constant 64 : i32
    %59 = vector.broadcast %c64_i32 : i32 to vector<88x128xi32>
    %60 = arith.cmpi slt, %58, %59 : vector<88x128xi32>
    %cst_41 = arith.constant 0.000000e+00 : f32
    %61 = vector.broadcast %cst_41 : f32 to vector<88x128xf32>
    %62 = vector.extract_strided_slice %57 {offsets = [0, 0], sizes = [88, 128], strides = [1, 1]} : vector<128x128xbf16> to vector<88x128xbf16>
    %63 = vector.extract_strided_slice %57 {offsets = [2, 0], sizes = [88, 128], strides = [1, 1]} : vector<128x128xbf16> to vector<88x128xbf16>
    %64 = arith.select %60, %62, %63 : vector<88x128xi1>, vector<88x128xbf16>
    %c0_42 = arith.constant 0 : index
    %c0_43 = arith.constant 0 : index
    %c0_44 = arith.constant 0 : index
    %65 = vector.load %arg5[%c0_42, %c0_43, %c0_44] : memref<5x128x128xbf16, #tpu.memory_space<vmem>>, vector<1x128x128xbf16>
    %66 = vector.shape_cast %65 : vector<1x128x128xbf16> to vector<128x128xbf16>
    %cst_45 = arith.constant dense<0.000000e+00> : vector<88x128xf32>
    %67 = tpu.matmul %64, %66, %cst_45 {dimension_numbers = #tpu.dot_dimension_numbers<[1], [0], [0], [1], [0, 0, 1, 1], [], []>} : vector<88x128xbf16>, vector<128x128xbf16>, vector<88x128xf32> -> vector<88x128xf32>
    %68 = arith.addf %61, %67 : vector<88x128xf32>
    %69 = vector.extract_strided_slice %57 {offsets = [4, 0], sizes = [88, 128], strides = [1, 1]} : vector<128x128xbf16> to vector<88x128xbf16>
    %70 = vector.extract_strided_slice %57 {offsets = [18, 0], sizes = [88, 128], strides = [1, 1]} : vector<128x128xbf16> to vector<88x128xbf16>
    %71 = arith.select %60, %69, %70 : vector<88x128xi1>, vector<88x128xbf16>
    %c1_46 = arith.constant 1 : index
    %c0_47 = arith.constant 0 : index
    %c0_48 = arith.constant 0 : index
    %72 = vector.load %arg5[%c1_46, %c0_47, %c0_48] : memref<5x128x128xbf16, #tpu.memory_space<vmem>>, vector<1x128x128xbf16>
    %73 = vector.shape_cast %72 : vector<1x128x128xbf16> to vector<128x128xbf16>
    %cst_49 = arith.constant dense<0.000000e+00> : vector<88x128xf32>
    %74 = tpu.matmul %71, %73, %cst_49 {dimension_numbers = #tpu.dot_dimension_numbers<[1], [0], [0], [1], [0, 0, 1, 1], [], []>} : vector<88x128xbf16>, vector<128x128xbf16>, vector<88x128xf32> -> vector<88x128xf32>
    %75 = arith.addf %68, %74 : vector<88x128xf32>
    %76 = vector.extract_strided_slice %57 {offsets = [20, 0], sizes = [88, 128], strides = [1, 1]} : vector<128x128xbf16> to vector<88x128xbf16>
    %77 = vector.extract_strided_slice %57 {offsets = [22, 0], sizes = [88, 128], strides = [1, 1]} : vector<128x128xbf16> to vector<88x128xbf16>
    %78 = arith.select %60, %76, %77 : vector<88x128xi1>, vector<88x128xbf16>
    %c2_50 = arith.constant 2 : index
    %c0_51 = arith.constant 0 : index
    %c0_52 = arith.constant 0 : index
    %79 = vector.load %arg5[%c2_50, %c0_51, %c0_52] : memref<5x128x128xbf16, #tpu.memory_space<vmem>>, vector<1x128x128xbf16>
    %80 = vector.shape_cast %79 : vector<1x128x128xbf16> to vector<128x128xbf16>
    %cst_53 = arith.constant dense<0.000000e+00> : vector<88x128xf32>
    %81 = tpu.matmul %78, %80, %cst_53 {dimension_numbers = #tpu.dot_dimension_numbers<[1], [0], [0], [1], [0, 0, 1, 1], [], []>} : vector<88x128xbf16>, vector<128x128xbf16>, vector<88x128xf32> -> vector<88x128xf32>
    %82 = arith.addf %75, %81 : vector<88x128xf32>
    %83 = vector.extract_strided_slice %57 {offsets = [36, 0], sizes = [88, 128], strides = [1, 1]} : vector<128x128xbf16> to vector<88x128xbf16>
    %84 = vector.extract_strided_slice %57 {offsets = [38, 0], sizes = [88, 128], strides = [1, 1]} : vector<128x128xbf16> to vector<88x128xbf16>
    %85 = arith.select %60, %83, %84 : vector<88x128xi1>, vector<88x128xbf16>
    %c3_54 = arith.constant 3 : index
    %c0_55 = arith.constant 0 : index
    %c0_56 = arith.constant 0 : index
    %86 = vector.load %arg5[%c3_54, %c0_55, %c0_56] : memref<5x128x128xbf16, #tpu.memory_space<vmem>>, vector<1x128x128xbf16>
    %87 = vector.shape_cast %86 : vector<1x128x128xbf16> to vector<128x128xbf16>
    %cst_57 = arith.constant dense<0.000000e+00> : vector<88x128xf32>
    %88 = tpu.matmul %85, %87, %cst_57 {dimension_numbers = #tpu.dot_dimension_numbers<[1], [0], [0], [1], [0, 0, 1, 1], [], []>} : vector<88x128xbf16>, vector<128x128xbf16>, vector<88x128xf32> -> vector<88x128xf32>
    %89 = arith.addf %82, %88 : vector<88x128xf32>
    %90 = vector.extract_strided_slice %57 {offsets = [40, 0], sizes = [88, 128], strides = [1, 1]} : vector<128x128xbf16> to vector<88x128xbf16>
    %c4 = arith.constant 4 : index
    %c0_58 = arith.constant 0 : index
    %c0_59 = arith.constant 0 : index
    %91 = vector.load %arg5[%c4, %c0_58, %c0_59] : memref<5x128x128xbf16, #tpu.memory_space<vmem>>, vector<1x128x128xbf16>
    %92 = vector.shape_cast %91 : vector<1x128x128xbf16> to vector<128x128xbf16>
    %cst_60 = arith.constant dense<0.000000e+00> : vector<88x128xf32>
    %93 = tpu.matmul %90, %92, %cst_60 {dimension_numbers = #tpu.dot_dimension_numbers<[1], [0], [0], [1], [0, 0, 1, 1], [], []>} : vector<88x128xbf16>, vector<128x128xbf16>, vector<88x128xf32> -> vector<88x128xf32>
    %94 = arith.addf %89, %93 : vector<88x128xf32>
    %c0_61 = arith.constant 0 : index
    %c0_62 = arith.constant 0 : index
    %95 = vector.load %arg6[%c0_61, %c0_62] : memref<1x128xf32, #tpu.memory_space<vmem>>, vector<1x128xf32>
    %96 = vector.broadcast %95 : vector<1x128xf32> to vector<88x128xf32>
    %97 = arith.addf %94, %96 : vector<88x128xf32>
    %cst_63 = arith.constant 0.000000e+00 : f32
    %98 = vector.broadcast %cst_63 : f32 to vector<88x128xf32>
    %99 = arith.maximumf %97, %98 : vector<88x128xf32>
    %100 = arith.truncf %99 : vector<88x128xf32> to vector<88x128xbf16>
    %c0_i32_64 = arith.constant 0 : i32
    %101 = tpu.memref_slice %arg14[%c0_i32_64] : memref<2x!tpu.dma_semaphore, #tpu.memory_space<semaphore_mem>> -> memref<1x!tpu.dma_semaphore, #tpu.memory_space<semaphore_mem>>
    %102 = tpu.memref_squeeze %101 : memref<1x!tpu.dma_semaphore, #tpu.memory_space<semaphore_mem>> -> memref<!tpu.dma_semaphore, #tpu.memory_space<semaphore_mem>>
    tpu.wait_dma2 semaphore(%102 : memref<!tpu.dma_semaphore, #tpu.memory_space<semaphore_mem>>) src(%arg7 : memref<13x128x512xbf16, #tpu.memory_space<any>>) dst(%arg12 : memref<13x128x512xbf16, #tpu.memory_space<vmem>>)
    %103 = tpu.iota {dimensions = array<i32: 1>} : vector<2x128xi32>
    %c64_i32_65 = arith.constant 64 : i32
    %104 = vector.broadcast %c64_i32_65 : i32 to vector<2x128xi32>
    %105 = arith.cmpi slt, %103, %104 : vector<2x128xi32>
    %cst_66 = arith.constant 0.000000e+00 : f32
    %106 = vector.broadcast %cst_66 : f32 to vector<2x512xf32>
    %107 = vector.extract_strided_slice %100 {offsets = [0, 0], sizes = [2, 128], strides = [1, 1]} : vector<88x128xbf16> to vector<2x128xbf16>
    %108 = vector.extract_strided_slice %100 {offsets = [2, 0], sizes = [2, 128], strides = [1, 1]} : vector<88x128xbf16> to vector<2x128xbf16>
    %109 = arith.select %105, %107, %108 : vector<2x128xi1>, vector<2x128xbf16>
    %c0_67 = arith.constant 0 : index
    %c0_68 = arith.constant 0 : index
    %c0_69 = arith.constant 0 : index
    %110 = vector.load %arg12[%c0_67, %c0_68, %c0_69] : memref<13x128x512xbf16, #tpu.memory_space<vmem>>, vector<1x128x512xbf16>
    %111 = vector.shape_cast %110 : vector<1x128x512xbf16> to vector<128x512xbf16>
    %cst_70 = arith.constant dense<0.000000e+00> : vector<2x512xf32>
    %112 = tpu.matmul %109, %111, %cst_70 {dimension_numbers = #tpu.dot_dimension_numbers<[1], [0], [0], [1], [0, 0, 1, 1], [], []>} : vector<2x128xbf16>, vector<128x512xbf16>, vector<2x512xf32> -> vector<2x512xf32>
    %113 = arith.addf %106, %112 : vector<2x512xf32>
    %114 = vector.extract_strided_slice %100 {offsets = [4, 0], sizes = [2, 128], strides = [1, 1]} : vector<88x128xbf16> to vector<2x128xbf16>
    %115 = vector.extract_strided_slice %100 {offsets = [6, 0], sizes = [2, 128], strides = [1, 1]} : vector<88x128xbf16> to vector<2x128xbf16>
    %116 = arith.select %105, %114, %115 : vector<2x128xi1>, vector<2x128xbf16>
    %c1_71 = arith.constant 1 : index
    %c0_72 = arith.constant 0 : index
    %c0_73 = arith.constant 0 : index
    %117 = vector.load %arg12[%c1_71, %c0_72, %c0_73] : memref<13x128x512xbf16, #tpu.memory_space<vmem>>, vector<1x128x512xbf16>
    %118 = vector.shape_cast %117 : vector<1x128x512xbf16> to vector<128x512xbf16>
    %cst_74 = arith.constant dense<0.000000e+00> : vector<2x512xf32>
    %119 = tpu.matmul %116, %118, %cst_74 {dimension_numbers = #tpu.dot_dimension_numbers<[1], [0], [0], [1], [0, 0, 1, 1], [], []>} : vector<2x128xbf16>, vector<128x512xbf16>, vector<2x512xf32> -> vector<2x512xf32>
    %120 = arith.addf %113, %119 : vector<2x512xf32>
    %121 = vector.extract_strided_slice %100 {offsets = [8, 0], sizes = [2, 128], strides = [1, 1]} : vector<88x128xbf16> to vector<2x128xbf16>
    %122 = vector.extract_strided_slice %100 {offsets = [18, 0], sizes = [2, 128], strides = [1, 1]} : vector<88x128xbf16> to vector<2x128xbf16>
    %123 = arith.select %105, %121, %122 : vector<2x128xi1>, vector<2x128xbf16>
    %c2_75 = arith.constant 2 : index
    %c0_76 = arith.constant 0 : index
    %c0_77 = arith.constant 0 : index
    %124 = vector.load %arg12[%c2_75, %c0_76, %c0_77] : memref<13x128x512xbf16, #tpu.memory_space<vmem>>, vector<1x128x512xbf16>
    %125 = vector.shape_cast %124 : vector<1x128x512xbf16> to vector<128x512xbf16>
    %cst_78 = arith.constant dense<0.000000e+00> : vector<2x512xf32>
    %126 = tpu.matmul %123, %125, %cst_78 {dimension_numbers = #tpu.dot_dimension_numbers<[1], [0], [0], [1], [0, 0, 1, 1], [], []>} : vector<2x128xbf16>, vector<128x512xbf16>, vector<2x512xf32> -> vector<2x512xf32>
    %127 = arith.addf %120, %126 : vector<2x512xf32>
    %128 = vector.extract_strided_slice %100 {offsets = [20, 0], sizes = [2, 128], strides = [1, 1]} : vector<88x128xbf16> to vector<2x128xbf16>
    %129 = vector.extract_strided_slice %100 {offsets = [22, 0], sizes = [2, 128], strides = [1, 1]} : vector<88x128xbf16> to vector<2x128xbf16>
    %130 = arith.select %105, %128, %129 : vector<2x128xi1>, vector<2x128xbf16>
    %c3_79 = arith.constant 3 : index
    %c0_80 = arith.constant 0 : index
    %c0_81 = arith.constant 0 : index
    %131 = vector.load %arg12[%c3_79, %c0_80, %c0_81] : memref<13x128x512xbf16, #tpu.memory_space<vmem>>, vector<1x128x512xbf16>
    %132 = vector.shape_cast %131 : vector<1x128x512xbf16> to vector<128x512xbf16>
    %cst_82 = arith.constant dense<0.000000e+00> : vector<2x512xf32>
    %133 = tpu.matmul %130, %132, %cst_82 {dimension_numbers = #tpu.dot_dimension_numbers<[1], [0], [0], [1], [0, 0, 1, 1], [], []>} : vector<2x128xbf16>, vector<128x512xbf16>, vector<2x512xf32> -> vector<2x512xf32>
    %134 = arith.addf %127, %133 : vector<2x512xf32>
    %135 = vector.extract_strided_slice %100 {offsets = [24, 0], sizes = [2, 128], strides = [1, 1]} : vector<88x128xbf16> to vector<2x128xbf16>
    %136 = vector.extract_strided_slice %100 {offsets = [26, 0], sizes = [2, 128], strides = [1, 1]} : vector<88x128xbf16> to vector<2x128xbf16>
    %137 = arith.select %105, %135, %136 : vector<2x128xi1>, vector<2x128xbf16>
    %c4_83 = arith.constant 4 : index
    %c0_84 = arith.constant 0 : index
    %c0_85 = arith.constant 0 : index
    %138 = vector.load %arg12[%c4_83, %c0_84, %c0_85] : memref<13x128x512xbf16, #tpu.memory_space<vmem>>, vector<1x128x512xbf16>
    %139 = vector.shape_cast %138 : vector<1x128x512xbf16> to vector<128x512xbf16>
    %cst_86 = arith.constant dense<0.000000e+00> : vector<2x512xf32>
    %140 = tpu.matmul %137, %139, %cst_86 {dimension_numbers = #tpu.dot_dimension_numbers<[1], [0], [0], [1], [0, 0, 1, 1], [], []>} : vector<2x128xbf16>, vector<128x512xbf16>, vector<2x512xf32> -> vector<2x512xf32>
    %141 = arith.addf %134, %140 : vector<2x512xf32>
    %142 = vector.extract_strided_slice %100 {offsets = [36, 0], sizes = [2, 128], strides = [1, 1]} : vector<88x128xbf16> to vector<2x128xbf16>
    %143 = vector.extract_strided_slice %100 {offsets = [38, 0], sizes = [2, 128], strides = [1, 1]} : vector<88x128xbf16> to vector<2x128xbf16>
    %144 = arith.select %105, %142, %143 : vector<2x128xi1>, vector<2x128xbf16>
    %c5 = arith.constant 5 : index
    %c0_87 = arith.constant 0 : index
    %c0_88 = arith.constant 0 : index
    %145 = vector.load %arg12[%c5, %c0_87, %c0_88] : memref<13x128x512xbf16, #tpu.memory_space<vmem>>, vector<1x128x512xbf16>
    %146 = vector.shape_cast %145 : vector<1x128x512xbf16> to vector<128x512xbf16>
    %cst_89 = arith.constant dense<0.000000e+00> : vector<2x512xf32>
    %147 = tpu.matmul %144, %146, %cst_89 {dimension_numbers = #tpu.dot_dimension_numbers<[1], [0], [0], [1], [0, 0, 1, 1], [], []>} : vector<2x128xbf16>, vector<128x512xbf16>, vector<2x512xf32> -> vector<2x512xf32>
    %148 = arith.addf %141, %147 : vector<2x512xf32>
    %149 = vector.extract_strided_slice %100 {offsets = [40, 0], sizes = [2, 128], strides = [1, 1]} : vector<88x128xbf16> to vector<2x128xbf16>
    %150 = vector.extract_strided_slice %100 {offsets = [42, 0], sizes = [2, 128], strides = [1, 1]} : vector<88x128xbf16> to vector<2x128xbf16>
    %151 = arith.select %105, %149, %150 : vector<2x128xi1>, vector<2x128xbf16>
    %c6 = arith.constant 6 : index
    %c0_90 = arith.constant 0 : index
    %c0_91 = arith.constant 0 : index
    %152 = vector.load %arg12[%c6, %c0_90, %c0_91] : memref<13x128x512xbf16, #tpu.memory_space<vmem>>, vector<1x128x512xbf16>
    %153 = vector.shape_cast %152 : vector<1x128x512xbf16> to vector<128x512xbf16>
    %cst_92 = arith.constant dense<0.000000e+00> : vector<2x512xf32>
    %154 = tpu.matmul %151, %153, %cst_92 {dimension_numbers = #tpu.dot_dimension_numbers<[1], [0], [0], [1], [0, 0, 1, 1], [], []>} : vector<2x128xbf16>, vector<128x512xbf16>, vector<2x512xf32> -> vector<2x512xf32>
    %155 = arith.addf %148, %154 : vector<2x512xf32>
    %156 = vector.extract_strided_slice %100 {offsets = [44, 0], sizes = [2, 128], strides = [1, 1]} : vector<88x128xbf16> to vector<2x128xbf16>
    %157 = vector.extract_strided_slice %100 {offsets = [54, 0], sizes = [2, 128], strides = [1, 1]} : vector<88x128xbf16> to vector<2x128xbf16>
    %158 = arith.select %105, %156, %157 : vector<2x128xi1>, vector<2x128xbf16>
    %c7 = arith.constant 7 : index
    %c0_93 = arith.constant 0 : index
    %c0_94 = arith.constant 0 : index
    %159 = vector.load %arg12[%c7, %c0_93, %c0_94] : memref<13x128x512xbf16, #tpu.memory_space<vmem>>, vector<1x128x512xbf16>
    %160 = vector.shape_cast %159 : vector<1x128x512xbf16> to vector<128x512xbf16>
    %cst_95 = arith.constant dense<0.000000e+00> : vector<2x512xf32>
    %161 = tpu.matmul %158, %160, %cst_95 {dimension_numbers = #tpu.dot_dimension_numbers<[1], [0], [0], [1], [0, 0, 1, 1], [], []>} : vector<2x128xbf16>, vector<128x512xbf16>, vector<2x512xf32> -> vector<2x512xf32>
    %162 = arith.addf %155, %161 : vector<2x512xf32>
    %163 = vector.extract_strided_slice %100 {offsets = [56, 0], sizes = [2, 128], strides = [1, 1]} : vector<88x128xbf16> to vector<2x128xbf16>
    %164 = vector.extract_strided_slice %100 {offsets = [58, 0], sizes = [2, 128], strides = [1, 1]} : vector<88x128xbf16> to vector<2x128xbf16>
    %165 = arith.select %105, %163, %164 : vector<2x128xi1>, vector<2x128xbf16>
    %c8 = arith.constant 8 : index
    %c0_96 = arith.constant 0 : index
    %c0_97 = arith.constant 0 : index
    %166 = vector.load %arg12[%c8, %c0_96, %c0_97] : memref<13x128x512xbf16, #tpu.memory_space<vmem>>, vector<1x128x512xbf16>
    %167 = vector.shape_cast %166 : vector<1x128x512xbf16> to vector<128x512xbf16>
    %cst_98 = arith.constant dense<0.000000e+00> : vector<2x512xf32>
    %168 = tpu.matmul %165, %167, %cst_98 {dimension_numbers = #tpu.dot_dimension_numbers<[1], [0], [0], [1], [0, 0, 1, 1], [], []>} : vector<2x128xbf16>, vector<128x512xbf16>, vector<2x512xf32> -> vector<2x512xf32>
    %169 = arith.addf %162, %168 : vector<2x512xf32>
    %170 = vector.extract_strided_slice %100 {offsets = [60, 0], sizes = [2, 128], strides = [1, 1]} : vector<88x128xbf16> to vector<2x128xbf16>
    %171 = vector.extract_strided_slice %100 {offsets = [62, 0], sizes = [2, 128], strides = [1, 1]} : vector<88x128xbf16> to vector<2x128xbf16>
    %172 = arith.select %105, %170, %171 : vector<2x128xi1>, vector<2x128xbf16>
    %c9 = arith.constant 9 : index
    %c0_99 = arith.constant 0 : index
    %c0_100 = arith.constant 0 : index
    %173 = vector.load %arg12[%c9, %c0_99, %c0_100] : memref<13x128x512xbf16, #tpu.memory_space<vmem>>, vector<1x128x512xbf16>
    %174 = vector.shape_cast %173 : vector<1x128x512xbf16> to vector<128x512xbf16>
    %cst_101 = arith.constant dense<0.000000e+00> : vector<2x512xf32>
    %175 = tpu.matmul %172, %174, %cst_101 {dimension_numbers = #tpu.dot_dimension_numbers<[1], [0], [0], [1], [0, 0, 1, 1], [], []>} : vector<2x128xbf16>, vector<128x512xbf16>, vector<2x512xf32> -> vector<2x512xf32>
    %176 = arith.addf %169, %175 : vector<2x512xf32>
    %177 = vector.extract_strided_slice %100 {offsets = [72, 0], sizes = [2, 128], strides = [1, 1]} : vector<88x128xbf16> to vector<2x128xbf16>
    %178 = vector.extract_strided_slice %100 {offsets = [74, 0], sizes = [2, 128], strides = [1, 1]} : vector<88x128xbf16> to vector<2x128xbf16>
    %179 = arith.select %105, %177, %178 : vector<2x128xi1>, vector<2x128xbf16>
    %c10 = arith.constant 10 : index
    %c0_102 = arith.constant 0 : index
    %c0_103 = arith.constant 0 : index
    %180 = vector.load %arg12[%c10, %c0_102, %c0_103] : memref<13x128x512xbf16, #tpu.memory_space<vmem>>, vector<1x128x512xbf16>
    %181 = vector.shape_cast %180 : vector<1x128x512xbf16> to vector<128x512xbf16>
    %cst_104 = arith.constant dense<0.000000e+00> : vector<2x512xf32>
    %182 = tpu.matmul %179, %181, %cst_104 {dimension_numbers = #tpu.dot_dimension_numbers<[1], [0], [0], [1], [0, 0, 1, 1], [], []>} : vector<2x128xbf16>, vector<128x512xbf16>, vector<2x512xf32> -> vector<2x512xf32>
    %183 = arith.addf %176, %182 : vector<2x512xf32>
    %184 = vector.extract_strided_slice %100 {offsets = [76, 0], sizes = [2, 128], strides = [1, 1]} : vector<88x128xbf16> to vector<2x128xbf16>
    %185 = vector.extract_strided_slice %100 {offsets = [78, 0], sizes = [2, 128], strides = [1, 1]} : vector<88x128xbf16> to vector<2x128xbf16>
    %186 = arith.select %105, %184, %185 : vector<2x128xi1>, vector<2x128xbf16>
    %c11 = arith.constant 11 : index
    %c0_105 = arith.constant 0 : index
    %c0_106 = arith.constant 0 : index
    %187 = vector.load %arg12[%c11, %c0_105, %c0_106] : memref<13x128x512xbf16, #tpu.memory_space<vmem>>, vector<1x128x512xbf16>
    %188 = vector.shape_cast %187 : vector<1x128x512xbf16> to vector<128x512xbf16>
    %cst_107 = arith.constant dense<0.000000e+00> : vector<2x512xf32>
    %189 = tpu.matmul %186, %188, %cst_107 {dimension_numbers = #tpu.dot_dimension_numbers<[1], [0], [0], [1], [0, 0, 1, 1], [], []>} : vector<2x128xbf16>, vector<128x512xbf16>, vector<2x512xf32> -> vector<2x512xf32>
    %190 = arith.addf %183, %189 : vector<2x512xf32>
    %191 = vector.extract_strided_slice %100 {offsets = [80, 0], sizes = [2, 128], strides = [1, 1]} : vector<88x128xbf16> to vector<2x128xbf16>
    %c12 = arith.constant 12 : index
    %c0_108 = arith.constant 0 : index
    %c0_109 = arith.constant 0 : index
    %192 = vector.load %arg12[%c12, %c0_108, %c0_109] : memref<13x128x512xbf16, #tpu.memory_space<vmem>>, vector<1x128x512xbf16>
    %193 = vector.shape_cast %192 : vector<1x128x512xbf16> to vector<128x512xbf16>
    %cst_110 = arith.constant dense<0.000000e+00> : vector<2x512xf32>
    %194 = tpu.matmul %191, %193, %cst_110 {dimension_numbers = #tpu.dot_dimension_numbers<[1], [0], [0], [1], [0, 0, 1, 1], [], []>} : vector<2x128xbf16>, vector<128x512xbf16>, vector<2x512xf32> -> vector<2x512xf32>
    %195 = arith.addf %190, %194 : vector<2x512xf32>
    %c0_111 = arith.constant 0 : index
    %c0_112 = arith.constant 0 : index
    %196 = vector.load %arg8[%c0_111, %c0_112] : memref<1x512xf32, #tpu.memory_space<vmem>>, vector<1x512xf32>
    %197 = vector.broadcast %196 : vector<1x512xf32> to vector<2x512xf32>
    %198 = arith.addf %195, %197 : vector<2x512xf32>
    %cst_113 = arith.constant 0.000000e+00 : f32
    %199 = vector.broadcast %cst_113 : f32 to vector<2x512xf32>
    %200 = arith.maximumf %198, %199 : vector<2x512xf32>
    %201 = arith.truncf %200 : vector<2x512xf32> to vector<2x512xbf16>
    %c1_i32_114 = arith.constant 1 : i32
    %202 = tpu.memref_slice %arg14[%c1_i32_114] : memref<2x!tpu.dma_semaphore, #tpu.memory_space<semaphore_mem>> -> memref<1x!tpu.dma_semaphore, #tpu.memory_space<semaphore_mem>>
    %203 = tpu.memref_squeeze %202 : memref<1x!tpu.dma_semaphore, #tpu.memory_space<semaphore_mem>> -> memref<!tpu.dma_semaphore, #tpu.memory_space<semaphore_mem>>
    tpu.wait_dma2 semaphore(%203 : memref<!tpu.dma_semaphore, #tpu.memory_space<semaphore_mem>>) src(%arg9 : memref<512x128xbf16, #tpu.memory_space<any>>) dst(%arg13 : memref<512x128xbf16, #tpu.memory_space<vmem>>)
    %c0_115 = arith.constant 0 : index
    %c0_116 = arith.constant 0 : index
    %204 = vector.load %arg13[%c0_115, %c0_116] : memref<512x128xbf16, #tpu.memory_space<vmem>>, vector<512x128xbf16>
    %cst_117 = arith.constant dense<0.000000e+00> : vector<2x128xf32>
    %205 = tpu.matmul %201, %204, %cst_117 {dimension_numbers = #tpu.dot_dimension_numbers<[1], [0], [0], [1], [0, 0, 1, 1], [], []>} : vector<2x512xbf16>, vector<512x128xbf16>, vector<2x128xf32> -> vector<2x128xf32>
    %c0_118 = arith.constant 0 : index
    %c0_119 = arith.constant 0 : index
    %206 = vector.load %arg10[%c0_118, %c0_119] : memref<1x128xf32, #tpu.memory_space<vmem>>, vector<1x128xf32>
    %207 = vector.broadcast %206 : vector<1x128xf32> to vector<2x128xf32>
    %208 = arith.addf %205, %207 : vector<2x128xf32>
    %c0_120 = arith.constant 0 : index
    %c0_121 = arith.constant 0 : index
    %209 = vector.load %arg11[%c0_120, %c0_121] : memref<2x128xf32, #tpu.memory_space<vmem>>, vector<2x128xf32>
    tpu.vector_store %arg11[%c0_120, %c0_121], %208 {strides = array<i32>} : memref<2x128xf32, #tpu.memory_space<vmem>>, vector<2x128xf32>,
    return
  }
}

</mosaic_0001>

<bundles_post_ra>
// kernel: _fused_forward.1
= control target key start
LH: loop header
LB: loop body
LE: loop exit
PB: predicated region body
PF: predicated region fallthrough
CT: control target
= control target key end

     0   :  { %16 = vsyncpa [#allocation6], 0  ;;  %s10275_s0 = inlined_call_operand.vmem [shape: bf16[176,128], index: 0, kind: input, shape index: {}]   ;;  %s10276_s1 = inlined_call_operand.hbm [shape: bf16[4,128,128], index: 1, kind: input, shape index: {}]   ;;  %s10277_s2 = inlined_call_operand.hbm [shape: f32[1,128], index: 2, kind: input, shape index: {}]   ;;  %s10278_s3 = inlined_call_operand.hbm [shape: bf16[4,128,128], index: 3, kind: input, shape index: {}]   ;;  %s10279_s4 = inlined_call_operand.hbm [shape: f32[1,128], index: 4, kind: input, shape index: {}]   ;;  %s10280_s5 = inlined_call_operand.hbm [shape: bf16[5,128,128], index: 5, kind: input, shape index: {}]   ;;  %s10281_s6 = inlined_call_operand.hbm [shape: f32[1,128], index: 6, kind: input, shape index: {}]   ;;  %s10282_s7 = inlined_call_operand.hbm [shape: bf16[13,128,512], index: 7, kind: input, shape index: {}]   ;;  %s10283_s8 = inlined_call_operand.hbm [shape: f32[1,512], index: 8, kind: input, shape index: {}]   ;;  %s10284_s9 = inlined_call_operand.hbm [shape: bf16[512,128], index: 9, kind: input, shape index: {}]   ;;  %s10285_s10 = inlined_call_operand.hbm [shape: f32[1,128], index: 10, kind: input, shape index: {}]   ;;  %s10286_s11 = inlined_call_operand.hbm [shape: f32[2,128], index: 11, kind: output, shape index: {}]  }
   0x1   :  { %17 = vsyncpa [#allocation9], 0 }
   0x2   :  { %18 = vsyncpa [#allocation12], 0 }
   0x3   :  { %19 = vsyncpa [#allocation15], 0 }
   0x4   :  { %20 = vsyncpa [#allocation18], 0 }
   0x5   :  { %21 = vsyncpa [#allocation7], 0  ;;  %s9313_s17 = smov [#allocation8]   ;;  %s9314_s19 = smov [#allocation11]  }
   0x6   :  { %s42_s18 = sshll.u32 %s9313_s17, 4  ;;  %s64_s20 = sshll.u32 %s9314_s19, 4  ;;  %s43_s18 = int_to_ptr.vmem [resolvable:$true] %s42_s18  ;;  %s65_s20 = int_to_ptr.vmem [resolvable:$true] %s64_s20 }
   0x7   :  { %s9085_s21 = scalar_lea.vmem %s43_s18, 16  ;;  %s9089_s22 = scalar_lea.vmem %s43_s18, 32 }
   0x8   :  { %p9086_p0 = scmp.ne.s32.totalorder %s43_s18, %s9085_s21  ;;  %p9090_p1 = scmp.lt.s32.totalorder %s43_s18, %s43_s18 }
   0x9   :  { %p9091_p2 = scmp.lt.s32.totalorder %s9089_s22, %s9085_s21 }
   0xb   :  { %p9092_p3 = por %p9091_p2, %p9090_p1 }
   0xd   :  { %p9093_p4 = pnand %p9092_p3, %p9086_p0 }
   0xf   :  { %9096 = shalt.err (!%p9093_p4)
}
  0x10   :  { %45 = dma.hbm_to_vmem [thread:$0]  %s10277_s2, 16, %s43_s18, [#allocation9]  }
  0x11   :  { %s9105_s25 = scalar_lea.vmem %s65_s20, 16  ;;  %s9109_s26 = scalar_lea.vmem %s65_s20, 32 }
  0x12   :  { %p9106_p5 = scmp.ne.s32.totalorder %s65_s20, %s9105_s25  ;;  %p9110_p6 = scmp.lt.s32.totalorder %s65_s20, %s65_s20 }
  0x13   :  { %p9111_p7 = scmp.lt.s32.totalorder %s9109_s26, %s9105_s25 }
  0x15   :  { %p9112_p8 = por %p9111_p7, %p9110_p6 }
  0x17   :  { %p9113_p9 = pnand %p9112_p8, %p9106_p5 }
  0x19   :  { %9116 = shalt.err (!%p9113_p9)
}
  0x1a   :  { %67 = dma.hbm_to_vmem [thread:$0]  %s10279_s4, 16, %s65_s20, [#allocation12]  }
  0x1b   :  { %s9315_s29 = smov [#allocation14]   ;;  %s9316_s12 = smov [#allocation5]  }
  0x1c   :  { %s86_s30 = sshll.u32 %s9315_s29, 4  ;;  %s29_s13 = sshll.u32 %s9316_s12, 4  ;;  %s87_s30 = int_to_ptr.vmem [resolvable:$true] %s86_s30  ;;  %s30_s13 = int_to_ptr.vmem [resolvable:$true] %s29_s13 }
  0x1d   :  { %s9125_s14 = scalar_lea.vmem %s87_s30, 16  ;;  %s9129_s2 = scalar_lea.vmem %s87_s30, 32 }
  0x1e   :  { %p9126_p10 = scmp.ne.s32.totalorder %s87_s30, %s9125_s14  ;;  %p9130_p11 = scmp.lt.s32.totalorder %s87_s30, %s87_s30 }
  0x1f   :  { %p9131_p12 = scmp.lt.s32.totalorder %s9129_s2, %s9125_s14 }
  0x21   :  { %p9132_p13 = por %p9131_p12, %p9130_p11 }
  0x23   :  { %p9133_p0 = pnand %p9132_p13, %p9126_p10 }
  0x25   :  { %9136 = shalt.err (!%p9133_p0)
}
  0x26   :  { %89 = dma.hbm_to_vmem [thread:$0]  %s10281_s6, 16, %s87_s30, [#allocation15]  }
  0x27   :  { %s9145_s17 = scalar_lea.vmem %s30_s13, 4096  ;;  %p9150_p2 = scmp.lt.s32.totalorder %s30_s13, %s30_s13 }
  0x28   :  { %p9146_p1 = scmp.ne.s32.totalorder %s30_s13, %s9145_s17  ;;  %p9151_p3 = scmp.lt.s32.totalorder %s9145_s17, %s9145_s17 }
  0x2a   :  { %p9152_p4 = por %p9151_p3, %p9150_p2 }
  0x2c   :  { %p9153_p5 = pnand %p9152_p4, %p9146_p1 }
  0x2e   :  { %9156 = shalt.err (!%p9153_p5)
}
  0x2f   :  { %s9317_s4 = smov 64   ;;  %s9318_s18 = smov 4  }
  0x30   :  { %35 = dma.hbm_to_vmem [thread:$0]  %s10276_s1, 4096, %s30_s13, [#allocation6], %s9317_s4, %s9317_s4, %s9318_s18  }
  0x31   :  { %s9319_s21 = smov [#allocation10]   ;;  %s9320_s23 = smov [#allocation13]  }
  0x32   :  { %s51_s22 = sshll.u32 %s9319_s21, 4  ;;  %s73_s24 = sshll.u32 %s9320_s23, 4  ;;  %s52_s22 = int_to_ptr.vmem [resolvable:$true] %s51_s22  ;;  %s74_s24 = int_to_ptr.vmem [resolvable:$true] %s73_s24 }
  0x33   :  { %s9165_s6 = scalar_lea.vmem %s52_s22, 4096  ;;  %p9170_p7 = scmp.lt.s32.totalorder %s52_s22, %s52_s22 }
  0x34   :  { %p9166_p6 = scmp.ne.s32.totalorder %s52_s22, %s9165_s6  ;;  %p9171_p8 = scmp.lt.s32.totalorder %s9165_s6, %s9165_s6 }
  0x36   :  { %p9172_p9 = por %p9171_p8, %p9170_p7 }
  0x38   :  { %p9173_p10 = pnand %p9172_p9, %p9166_p6 }
  0x3a   :  { %9176 = shalt.err (!%p9173_p10)
}
  0x3b   :  { %57 = dma.hbm_to_vmem [thread:$0]  %s10278_s3, 4096, %s52_s22, [#allocation9], %s9317_s4, %s9317_s4, %s9318_s18  }
  0x3c   :  { %s9185_s27 = scalar_lea.vmem %s74_s24, 5120  ;;  %p9190_p12 = scmp.lt.s32.totalorder %s74_s24, %s74_s24 }
  0x3d   :  { %p9186_p11 = scmp.ne.s32.totalorder %s74_s24, %s9185_s27  ;;  %p9191_p13 = scmp.lt.s32.totalorder %s9185_s27, %s9185_s27 }
  0x3f   :  { %p9192_p0 = por %p9191_p13, %p9190_p12 }
  0x41   :  { %p9193_p1 = pnand %p9192_p0, %p9186_p11 }
  0x43   :  { %9196 = shalt.err (!%p9193_p1)
}
  0x44   :  { %79 = dma.hbm_to_vmem [thread:$0]  %s10280_s5, 5120, %s74_s24, [#allocation12], %s9317_s4, %s9317_s4, %s9318_s18  }
  0x45   :  { %s9321_s29 = smov [#allocation16]   ;;  %s9322_s12 = smov [#allocation17]  }
  0x46   :  { %s96_s30 = sshll.u32 %s9321_s29, 4  ;;  %s106_s13 = sshll.u32 %s9322_s12, 4  ;;  %s97_s30 = int_to_ptr.vmem [resolvable:$true] %s96_s30  ;;  %s107_s13 = int_to_ptr.vmem [resolvable:$true] %s106_s13 }
  0x47   :  { %s9205_s14 = scalar_lea.vmem %s97_s30, 64  ;;  %p9210_p3 = scmp.lt.s32.totalorder %s97_s30, %s97_s30 }
  0x48   :  { %p9206_p2 = scmp.ne.s32.totalorder %s97_s30, %s9205_s14  ;;  %p9211_p4 = scmp.lt.s32.totalorder %s9205_s14, %s9205_s14 }
  0x4a   :  { %p9212_p5 = por %p9211_p4, %p9210_p3 }
  0x4c   :  { %p9213_p6 = pnand %p9212_p5, %p9206_p2 }
  0x4e   :  { %9216 = shalt.err (!%p9213_p6)
}
  0x4f   :  { %99 = dma.hbm_to_vmem [thread:$0]  %s10283_s8, 64, %s97_s30, [#allocation15]  }
  0x50   :  { %s9225_s15 = scalar_lea.vmem %s107_s13, 16  ;;  %s9229_s5 = scalar_lea.vmem %s107_s13, 32 }
  0x51   :  { %p9226_p7 = scmp.ne.s32.totalorder %s107_s13, %s9225_s15  ;;  %p9230_p8 = scmp.lt.s32.totalorder %s107_s13, %s107_s13 }
  0x52   :  { %p9231_p9 = scmp.lt.s32.totalorder %s9229_s5, %s9225_s15 }
  0x54   :  { %p9232_p10 = por %p9231_p9, %p9230_p8 }
  0x56   :  { %p9233_p11 = pnand %p9232_p10, %p9226_p7 }
  0x58   :  { %9236 = shalt.err (!%p9233_p11)
}
  0x59   :  { %109 = dma.hbm_to_vmem [thread:$0]  %s10285_s10, 16, %s107_s13, [#allocation18]  }
  0x5a   :  { %9297 = dma.done.wait [#allocation6], 4096  }
  0x5b   :  { %9298 = vsyncadd [#allocation6], 4294963200 }
  0x5c   :  { %9299 = dma.done.wait [#allocation9], 4112  }
  0x5d   :  { %9300 = vsyncadd [#allocation9], 4294963184 }
  0x5e   :  { %9301 = dma.done.wait [#allocation12], 5136  }
  0x5f   :  { %9302 = vsyncadd [#allocation12], 4294962160 }
  0x60   :  { %9303 = dma.done.wait [#allocation15], 80  }
  0x61   :  { %9304 = vsyncadd [#allocation15], 4294967216 }
  0x62   :  { %9305 = dma.done.wait [#allocation18], 16  }
  0x63   :  { %9306 = vsyncadd [#allocation18], 4294967280  ;;  %v8293_v0 = vld [vmem:[#allocation5 + $0x78] sm:$0xff]   ;;  %v8295_v2 = vld [vmem:[#allocation5 + $0x70] sm:$0xff]   ;;  %vm264_vm0 = vcmask 1046528   ;;  %vm948_vm1 = vcmask 1045504  }
  0x64   :  { %v8294_v1 = vld [vmem:[#allocation5 + $0x38] sm:$0xff]   ;;  %7867 = vmatprep.subr.bf16.mxu0 %v8293_v0  ;;  %v8296_v3 = vld [vmem:[#allocation5 + $0x30] sm:$0xff]   ;;  %v8297_v4 = vld [vmem:[#allocation5 + $0x68] sm:$0xff]   ;;  %vm2057_vm5 = vcmask 1040384   ;;  %vm2751_vm6 = vcmask 1043456   ;;  %s9325_s10 = smov [#allocation3]  }
  0x65   :  { %7903 = vmatprep.subr.bf16.mxu1 %v8294_v1  ;;  %7868 = vmatpush3.bf16.msra.mxu0 %v8293_v0  ;;  %v8298_v5 = vld [vmem:[#allocation5 + $0x28] sm:$0xff]   ;;  %v8299_v6 = vld [vmem:[#allocation5 + $0x60] sm:$0xff]   ;;  %v8301_v8 = vld [vmem:[#allocation5 + $0x58] sm:$0xff]   ;;  %s156_s4 = sshll.u32 %s9325_s10, 4  ;;  %s157_s4 = int_to_ptr.vmem [resolvable:$true] %s156_s4 }
  0x66   :  { %7904 = vmatpush3.bf16.msra.mxu1 %v8294_v1  ;;  %7869 = vmatprep.subr.bf16.mxu0 %v8295_v2  ;;  %v8300_v7 = vld [vmem:[#allocation5 + $0x20] sm:$0xff]   ;;  %v8302_v9 = vld [vmem:[#allocation5 + $0x18] sm:$0xff]   ;;  %v8303_v10 = vld [vmem:[#allocation5 + $0x50] sm:$0xff]  }
  0x67   :  { %7905 = vmatprep.subr.bf16.mxu1 %v8296_v3  ;;  %v8304_v11 = vld [vmem:[#allocation5 + $0x10] sm:$0xff]   ;;  %v161_v12 = vld [vmem:[%s10275_s0 + $0x4] sm:$0xf]  ;;  %v195_v13 = vld [vmem:[%s10275_s0] sm:$0xe] }
  0x68   :  { %v8310_v14 = vld [vmem:[%s10275_s0 + $0x8] sm:$0xff]   ;;  %v160_v15 = vld [vmem:[%s10275_s0] sm:$0xf]  ;;  %v7035_v16 = vcombine.low %v195_v13, %v161_v12  ;;  %v8312_v23 = vld [vmem:[%s10275_s0 + $0x10] sm:$0xff]  }
  0x69   :  { %7870 = vmatpush3.bf16.msra.mxu0 %v8295_v2  ;;  %v7053_v17 = vcombine.low %v160_v15, %v161_v12  ;;  %v266_v18 = vrot.slane %v8310_v14, 1  ;;  %v8305_v19 = vld [vmem:[#allocation5 + $0x48] sm:$0xff]   ;;  %v8307_v24 = vld [vmem:[#allocation5 + $0x40] sm:$0xff]   ;;  %v8316_v26 = vld [vmem:[%s10275_s0 + $0x18] sm:$0xff]   ;;  %v268_v27 = vrot.slane %v8312_v23, 1 }
  0x6a   :  { %7906 = vmatpush3.bf16.msra.mxu1 %v8296_v3  ;;  %7871 = vmatprep.subr.bf16.mxu0 %v8297_v4  ;;  %v265_v20 = vrot.slane %v7035_v16, 1  ;;  %v8306_v21 = vld [vmem:[#allocation5 + $0x8] sm:$0xff]   ;;  %v8308_v25 = vld [vmem:[#allocation5] sm:$0xff]   ;;  %v8313_v28 = vld [vmem:[#allocation5 + $0xb8] sm:$0xff]   ;;  %v270_v31 = vrot.slane %v8316_v26, 1 }
  0x6b   :  { %7907 = vmatprep.subr.bf16.mxu1 %v8298_v5  ;;  %7919 = vmatprep.mubr.bf16.mxu1 %v7053_v17  ;;  %v8314_v29 = vld [vmem:[#allocation5 + $0xf8] sm:$0xff]   ;;  %v8315_v30 = vld [vmem:[#allocation5 + $0xb0] sm:$0xff]   ;;  %v269_v32 = vsel %vm264_vm0, %v266_v18, %v268_v27  ;;  %v8318_v33 = vld [vmem:[%s10275_s0 + $0x20] sm:$0xff]  }
  0x6c   :  { %v267_v22 = vsel %vm264_vm0, %v265_v20, %v266_v18  ;;  %v8317_v34 = vld [vmem:[#allocation5 + $0xf0] sm:$0xff]   ;;  %v9437_v35 = vld [vmem:[%s10275_s0 + $0x28] sm:$0xff]   ;;  %v271_v36 = vsel %vm264_vm0, %v268_v27, %v270_v31  ;;  %v272_v38 = vrot.slane %v8318_v33, 1  ;;  %v9449_v42 = vld [vmem:[%s10275_s0 + $0x38] sm:$0xff]  }
  0x6d   :  { %7872 = vmatpush3.bf16.msra.mxu0 %v8297_v4  ;;  %7883 = vmatprep.mubr.bf16.mxu0 %v267_v22  ;;  %v8319_v37 = vld [vmem:[#allocation5 + $0xa8] sm:$0xff]   ;;  %v9443_v40 = vld [vmem:[%s10275_s0 + $0x30] sm:$0xff]   ;;  %v274_v41 = vrot.slane %v9437_v35, 1  ;;  %v8322_v46 = vld [vmem:[#allocation5 + $0xa0] sm:$0xff]   ;;  %v278_v52 = vrot.slane %v9449_v42, 1 }
  0x6e   :  { %7908 = vmatpush3.bf16.msra.mxu1 %v8298_v5  ;;  %7873 = vmatprep.subr.bf16.mxu0 %v8299_v6  ;;  %v8320_v39 = vld [vmem:[#allocation5 + $0xe8] sm:$0xff]   ;;  %v273_v45 = vsel %vm264_vm0, %v270_v31, %v272_v38  ;;  %v9463_v47 = vld [vmem:[%s10275_s0 + $0x40] sm:$0xff]   ;;  %v276_v51 = vrot.slane %v9443_v40, 1  ;;  %v8325_v53 = vld [vmem:[#allocation5 + $0x98] sm:$0xff]  }
  0x6f   :  { %7909 = vmatprep.subr.bf16.mxu1 %v8300_v7  ;;  %v9454_v43 = vld [vmem:[%s10275_s0 + $0x48] sm:$0xf]  ;;  %v196_v44 = vld [vmem:[%s10275_s0 + $0x4c] sm:$0x1]  ;;  %v8324_v48 = vld [vmem:[#allocation5 + $0xe0] sm:$0xff]   ;;  %v275_v50 = vsel %vm264_vm0, %v272_v38, %v274_v41  ;;  %v280_v57 = vrot.slane %v9463_v47, 1 }
  0x70   :  { %v7044_v49 = vcombine.low %v9454_v43, %v196_v44  ;;  %v628_v54 = vld [vmem:[%s10275_s0 + $0x8] sm:$0xe]  ;;  %v629_v55 = vld [vmem:[%s10275_s0 + $0xc] sm:$0xf]  ;;  %v8326_v56 = vld [vmem:[#allocation5 + $0xd8] sm:$0xff]   ;;  %v279_v15 = vsel %vm264_vm0, %v276_v51, %v278_v52 }
  0x71   :  { %7874 = vmatpush3.bf16.msra.mxu0 %v8299_v6  ;;  %v7063_v58 = vcombine.low %v628_v54, %v629_v55  ;;  %v9479_v59 = vld [vmem:[%s10275_s0 + $0x10] sm:$0xff]   ;;  %v923_v60 = vld [vmem:[%s10275_s0 + $0x8] sm:$0xc]  ;;  %v9489_v63 = vld [vmem:[%s10275_s0 + $0x18] sm:$0xff]  }
  0x72   :  { %7910 = vmatpush3.bf16.msra.mxu1 %v8300_v7  ;;  %7875 = vmatprep.subr.bf16.mxu0 %v8301_v8  ;;  %v9484_v61 = vrot.slane %v7044_v49, 1  ;;  %v7081_v62 = vcombine.low %v923_v60, %v629_v55  ;;  %v716_v1 = vrot.slane %v9479_v59, 1  ;;  %v950_v2 = vrot.slane %v9479_v59, 2  ;;  %v9498_v3 = vld [vmem:[%s10275_s0 + $0x20] sm:$0xff]   ;;  %v9507_v7 = vld [vmem:[%s10275_s0 + $0x28] sm:$0xff]   ;;  %v8330_v12 = vld [vmem:[#allocation5 + $0xd0] sm:$0xff]  }
  0x73   :  { %7911 = vmatprep.subr.bf16.mxu1 %v8302_v9  ;;  %v9491_v0 = vrot.slane %v7063_v58, 1  ;;  %v718_v5 = vrot.slane %v9489_v63, 1  ;;  %v952_v6 = vrot.slane %v9489_v63, 2  ;;  %v722_v13 = vrot.slane %v9507_v7, 1  ;;  %v9525_v17 = vld [vmem:[%s10275_s0 + $0x38] sm:$0xff]   ;;  %v8331_v18 = vld [vmem:[#allocation5 + $0x88] sm:$0xff]  }
  0x74   :  { %v9500_v4 = vrot.slane %v7081_v62, 2  ;;  %v956_v16 = vrot.slane %v9507_v7, 2  ;;  %v960_v22 = vrot.slane %v9525_v17, 2  ;;  %v647_v27 = vld [vmem:[%s10275_s0 + $0x54] sm:$0x1]  ;;  %v8336_v38 = vld [vmem:[#allocation5 + $0xc0] sm:$0xff]  }
  0x75   :  { %7876 = vmatpush3.bf16.msra.mxu0 %v8301_v8  ;;  %v277_v8 = vsel %vm264_vm0, %v274_v41, %v276_v51  ;;  %v7054_v41 = vcombine.low %v9454_v43, %v9454_v43  ;;  %v717_v44 = vsel %vm264_vm0, %v9491_v0, %v716_v1  ;;  %v719_v43 = vsel %vm264_vm0, %v716_v1, %v718_v5  ;;  %v8349_v60 = vld [vmem:[#allocation10 + $0x38] sm:$0xff]   ;;  %v8353_v63 = vld [vmem:[#allocation10 + $0x28] sm:$0xff]   ;;  %v8352_v0 = vld [vmem:[#allocation10 + $0x70] sm:$0xff]  }
  0x76   :  { %7912 = vmatpush3.bf16.msra.mxu1 %v8302_v9  ;;  %7877 = vmatprep.subr.bf16.mxu0 %v8303_v10  ;;  %v8329_v9 = vld [vmem:[#allocation5 + $0x90] sm:$0xff]   ;;  %v8350_v62 = vld [vmem:[#allocation10 + $0x78] sm:$0xff]   ;;  %v8355_v1 = vld [vmem:[#allocation10 + $0x20] sm:$0xff]  }
  0x77   :  { %7913 = vmatprep.subr.bf16.mxu1 %v8304_v11  ;;  %v8359_v7 = vld [vmem:[#allocation10 + $0x58] sm:$0xff]  }
  0x79   :  { %7878 = vmatpush3.bf16.msra.mxu0 %v8303_v10  ;;  %v720_v10 = vrot.slane %v9498_v3, 1 }
  0x7a   :  { %7914 = vmatpush3.bf16.msra.mxu1 %v8304_v11  ;;  %7879 = vmatprep.subr.bf16.mxu0 %v8305_v19  ;;  %v954_v11 = vrot.slane %v9498_v3, 2  ;;  %v8356_v3 = vld [vmem:[#allocation10 + $0x18] sm:$0xff]  }
  0x7b   :  { %7915 = vmatprep.subr.bf16.mxu1 %v8306_v21 }
  0x7c   :  { %v957_v49 = vsel %vm948_vm1, %v954_v11, %v956_v16 }
  0x7d   :  { %7880 = vmatpush3.bf16.msra.mxu0 %v8305_v19 }
  0x7e   :  { %7916 = vmatpush3.bf16.msra.mxu1 %v8306_v21  ;;  %7881 = vmatprep.subr.bf16.mxu0 %v8307_v24  ;;  %v726_v21 = vrot.slane %v9525_v17, 1 }
  0x7f   :  { %7917 = vmatprep.subr.bf16.mxu1 %v8308_v25 }
  0x81   :  { %7882 = vmatpush3.bf16.msra.mxu0 %v8307_v24  ;;  %v9540_v24 = vld [vmem:[%s10275_s0 + $0x48] sm:$0xff]  }
  0x82   :  { %7918 = vmatpush3.bf16.msra.mxu1 %v8308_v25  ;;  %7939 = vmatprep.subr.bf16.mxu0 %v8313_v28  ;;  %v8334_v25 = vld [vmem:[#allocation5 + $0xc8] sm:$0xff]   ;;  %v730_v31 = vrot.slane %v9540_v24, 1 }
  0x83   :  { %7975 = vmatprep.subr.bf16.mxu1 %v8314_v29 }
  0x84   :  { %7884 = vmatmul.mubr.bf16.vlgmr.msra.gmra.mxu0 %v269_v32  ;;  %v964_v32 = vrot.slane %v9540_v24, 2 }
  0x85   :  { %7920 = vmatmul.mubr.bf16.vlgmr.msra.gmra.mxu1 %v8310_v14  ;;  %7940 = vmatpush3.bf16.msra.mxu0 %v8313_v28  ;;  %v9516_v14 = vld [vmem:[%s10275_s0 + $0x30] sm:$0xff]  }
  0x86   :  { %7976 = vmatpush3.bf16.msra.mxu1 %v8314_v29  ;;  %7941 = vmatprep.subr.bf16.mxu0 %v8315_v30  ;;  %v724_v19 = vrot.slane %v9516_v14, 1  ;;  %v958_v20 = vrot.slane %v9516_v14, 2 }
  0x87   :  { %7887 = vmatprep.mubr.bf16.mxu0 %v271_v36  ;;  %7923 = vmatprep.mubr.bf16.mxu1 %v8312_v23  ;;  %v9535_v23 = vld [vmem:[%s10275_s0 + $0x40] sm:$0xff]  }
  0x88   :  { %7977 = vmatprep.subr.bf16.mxu1 %v8317_v34  ;;  %v728_v28 = vrot.slane %v9535_v23, 1  ;;  %v962_v29 = vrot.slane %v9535_v23, 2  ;;  %v8335_v36 = vld [vmem:[#allocation5 + $0x80] sm:$0xff]   ;;  %v959_v51 = vsel %vm948_vm1, %v956_v16, %v958_v20 }
  0x89   :  { %7942 = vmatpush3.bf16.msra.mxu0 %v8315_v30  ;;  %v924_v30 = vld [vmem:[%s10275_s0 + $0x54] sm:$0x3] }
  0x8a   :  { %7978 = vmatpush3.bf16.msra.mxu1 %v8317_v34  ;;  %7943 = vmatprep.subr.bf16.mxu0 %v8319_v37  ;;  %v729_v54 = vsel %vm264_vm0, %v726_v21, %v728_v28  ;;  %v963_v55 = vsel %vm948_vm1, %v960_v22, %v962_v29 }
  0x8b   :  { %7979 = vmatprep.subr.bf16.mxu1 %v8320_v39 }
  0x8c   :  { %7888 = vmatmul.mubr.bf16.gmra.mxu0 %v273_v45  ;;  %v953_v45 = vsel %vm948_vm1, %v950_v2, %v952_v6 }
  0x8d   :  { %7924 = vmatmul.mubr.bf16.gmra.mxu1 %v8316_v26  ;;  %7944 = vmatpush3.bf16.msra.mxu0 %v8319_v37  ;;  %v646_v26 = vld [vmem:[%s10275_s0 + $0x50] sm:$0xf]  ;;  %v283_v37 = vsel %vm264_vm0, %v280_v57, %v9484_v61  ;;  %s9324_s0 = smov [#allocation2]  }
  0x8e   :  { %7980 = vmatpush3.bf16.msra.mxu1 %v8320_v39  ;;  %7891 = vmatprep.mubr.bf16.mxu0 %v275_v50  ;;  %v7082_v34 = vcombine.low %v646_v26, %v924_v30  ;;  %v725_v50 = vsel %vm264_vm0, %v722_v13, %v724_v19  ;;  %s144_s8 = sshll.u32 %s9324_s0, 4  ;;  %s145_s8 = int_to_ptr.vmem [resolvable:$true] %s144_s8 }
  0x8f   :  { %7927 = vmatprep.mubr.bf16.mxu1 %v8318_v33  ;;  %7945 = vmatprep.subr.bf16.mxu0 %v8322_v46  ;;  %v7072_v33 = vcombine.low %v646_v26, %v647_v27  ;;  %s9245_s18 = scalar_lea.vmem %s145_s8, 53248  ;;  %p9250_p13 = scmp.lt.s32.totalorder %s145_s8, %s145_s8 }
  0x90   :  { %7981 = vmatprep.subr.bf16.mxu1 %v8324_v48  ;;  %p9246_p12 = scmp.ne.s32.totalorder %s145_s8, %s9245_s18  ;;  %p9251_p0 = scmp.lt.s32.totalorder %s9245_s18, %s9245_s18 }
  0x91   :  { %7946 = vmatpush3.bf16.msra.mxu0 %v8322_v46  ;;  %v732_v39 = vrot.slane %v7072_v33, 1  ;;  %v721_v46 = vsel %vm264_vm0, %v718_v5, %v720_v10  ;;  %v8357_v5 = vld [vmem:[#allocation10 + $0x60] sm:$0xff]  }
  0x92   :  { %7982 = vmatpush3.bf16.msra.mxu1 %v8324_v48  ;;  %7947 = vmatprep.subr.bf16.mxu0 %v8325_v53  ;;  %v723_v48 = vsel %vm264_vm0, %v720_v10, %v722_v13  ;;  %v9638_v10 = vld [vmem:[#allocation10 + $0xf8] sm:$0xff]   ;;  %p9252_p1 = por %p9251_p0, %p9250_p13 }
  0x93   :  { %7983 = vmatprep.subr.bf16.mxu1 %v8326_v56  ;;  %v733_v58 = vsel %vm264_vm0, %v730_v31, %v732_v39  ;;  %v9641_v13 = vld [vmem:[#allocation10 + $0xb8] sm:$0xff]  }
  0x94   :  { %7892 = vmatmul.mubr.bf16.gmra.mxu0 %v277_v8  ;;  %v8362_v8 = vld [vmem:[#allocation10] sm:$0xff]   ;;  %p9253_p2 = pnand %p9252_p1, %p9246_p12 }
  0x95   :  { %7928 = vmatmul.mubr.bf16.gmra.mxu1 %v9437_v35  ;;  %7948 = vmatpush3.bf16.msra.mxu0 %v8325_v53  ;;  %v281_v35 = vsel %vm264_vm0, %v278_v52, %v280_v57  ;;  %v727_v52 = vsel %vm264_vm0, %v724_v19, %v726_v21  ;;  %v961_v53 = vsel %vm948_vm1, %v958_v20, %v960_v22 }
  0x96   :  { %7895 = vmatprep.mubr.bf16.mxu0 %v279_v15  ;;  %7931 = vmatprep.mubr.bf16.mxu1 %v9443_v40  ;;  %v966_v40 = vrot.slane %v7082_v34, 2  ;;  %v965_v57 = vsel %vm948_vm1, %v962_v29, %v964_v32 }
  0x97   :  { %7984 = vmatpush3.bf16.msra.mxu1 %v8326_v56  ;;  %7949 = vmatprep.subr.bf16.mxu0 %v8329_v9  ;;  %v731_v56 = vsel %vm264_vm0, %v728_v28, %v730_v31 }
  0x98   :  { %7985 = vmatprep.subr.bf16.mxu1 %v8330_v12  ;;  %v967_v59 = vsel %vm948_vm1, %v964_v32, %v966_v40 }
  0x99   :  { %7950 = vmatpush3.bf16.msra.mxu0 %v8329_v9  ;;  %v8361_v9 = vld [vmem:[#allocation10 + $0x50] sm:$0xff]  }
  0x9a   :  { %7951 = vmatprep.subr.bf16.mxu0 %v8331_v18 }
  0x9b   :  { %7986 = vmatpush3.bf16.msra.mxu1 %v8330_v12  ;;  %v8366_v12 = vld [vmem:[#allocation10 + $0x40] sm:$0xff]  }
  0x9c   :  { %7896 = vmatmul.mubr.bf16.gmra.mxu0 %v281_v35  ;;  %7987 = vmatprep.subr.bf16.mxu1 %v8334_v25 }
  0x9d   :  { %7932 = vmatmul.mubr.bf16.gmra.mxu1 %v9449_v42  ;;  %7899 = vmatprep.mubr.bf16.mxu0 %v283_v37  ;;  %v951_v42 = vsel %vm948_vm1, %v9500_v4, %v950_v2  ;;  %v8354_v2 = vld [vmem:[#allocation10 + $0x68] sm:$0xff]   ;;  %v8358_v4 = vld [vmem:[#allocation10 + $0x10] sm:$0xff]  }
  0x9e   :  { %7935 = vmatprep.mubr.bf16.mxu1 %v9463_v47  ;;  %7952 = vmatpush3.bf16.msra.mxu0 %v8331_v18  ;;  %v955_v47 = vsel %vm948_vm1, %v952_v6, %v954_v11  ;;  %v8360_v6 = vld [vmem:[#allocation10 + $0x8] sm:$0xff]  }
  0x9f   :  { %7988 = vmatpush3.bf16.msra.mxu1 %v8334_v25  ;;  %7953 = vmatprep.subr.bf16.mxu0 %v8335_v36  ;;  %v8363_v11 = vld [vmem:[#allocation10 + $0x48] sm:$0xff]  }
  0xa0   :  { %7989 = vmatprep.subr.bf16.mxu1 %v8336_v38 }
  0xa2   :  { %7954 = vmatpush3.bf16.msra.mxu0 %v8335_v36 }
  0xa3   :  { %7990 = vmatpush3.bf16.msra.mxu1 %v8336_v38  ;;  %8011 = vmatprep.subr.bf16.mxu0 %v8350_v62 }
  0xa4   :  { %7900 = vmatmul.mubr.bf16.gmra.mxu0 %v9484_v61  ;;  %8043 = vmatprep.subr.bf16.mxu1 %v8349_v60  ;;  %v8351_v61 = vld [vmem:[#allocation10 + $0x30] sm:$0xff]  }
  0xa5   :  { %7936 = vmatmul.mubr.bf16.gmra.mxu1 %v7054_v41  ;;  %7955 = vmatprep.mubr.bf16.mxu0 %v717_v44 }
  0xa6   :  { %7991 = vmatprep.mubr.bf16.mxu1 %v951_v42 }
  0xac   :  { %7956 = vmatmul.mubr.bf16.vlgmr.msra.gmra.mxu0 %v719_v43 }
  0xad   :  { %7992 = vmatmul.mubr.bf16.vlgmr.msra.gmra.mxu1 %v953_v45  ;;  %7959 = vmatprep.mubr.bf16.mxu0 %v721_v46 }
  0xae   :  { %7995 = vmatprep.mubr.bf16.mxu1 %v955_v47  ;;  %8044 = vmatpush3.bf16.msra.mxu1 %v8349_v60 }
  0xaf   :  { %8045 = vmatprep.subr.bf16.mxu1 %v8351_v61  ;;  %8012 = vmatpush3.bf16.msra.mxu0 %v8350_v62 }
  0xb0   :  { %8013 = vmatprep.subr.bf16.mxu0 %v8352_v0 }
  0xb2   :  { %8046 = vmatpush3.bf16.msra.mxu1 %v8351_v61 }
  0xb3   :  { %8047 = vmatprep.subr.bf16.mxu1 %v8353_v63  ;;  %8014 = vmatpush3.bf16.msra.mxu0 %v8352_v0 }
  0xb4   :  { %7960 = vmatmul.mubr.bf16.gmra.mxu0 %v723_v48  ;;  %8015 = vmatprep.subr.bf16.mxu0 %v8354_v2 }
  0xb5   :  { %7996 = vmatmul.mubr.bf16.gmra.mxu1 %v957_v49  ;;  %7963 = vmatprep.mubr.bf16.mxu0 %v725_v50 }
  0xb6   :  { %7999 = vmatprep.mubr.bf16.mxu1 %v959_v51  ;;  %8048 = vmatpush3.bf16.msra.mxu1 %v8353_v63 }
  0xb7   :  { %8049 = vmatprep.subr.bf16.mxu1 %v8355_v1  ;;  %8016 = vmatpush3.bf16.msra.mxu0 %v8354_v2 }
  0xb8   :  { %8017 = vmatprep.subr.bf16.mxu0 %v8357_v5 }
  0xba   :  { %8050 = vmatpush3.bf16.msra.mxu1 %v8355_v1  ;;  %v9694_v1 = vld [vmem:[#allocation8] ss:$0 sm:$0xff] }
  0xbb   :  { %8051 = vmatprep.subr.bf16.mxu1 %v8356_v3  ;;  %8018 = vmatpush3.bf16.msra.mxu0 %v8357_v5 }
  0xbc   :  { %7964 = vmatmul.mubr.bf16.gmra.mxu0 %v727_v52  ;;  %8019 = vmatprep.subr.bf16.mxu0 %v8359_v7 }
  0xbd   :  { %8000 = vmatmul.mubr.bf16.gmra.mxu1 %v961_v53  ;;  %7967 = vmatprep.mubr.bf16.mxu0 %v729_v54 }
  0xbe   :  { %8003 = vmatprep.mubr.bf16.mxu1 %v963_v55  ;;  %8052 = vmatpush3.bf16.msra.mxu1 %v8356_v3 }
  0xbf   :  { %8053 = vmatprep.subr.bf16.mxu1 %v8358_v4  ;;  %8020 = vmatpush3.bf16.msra.mxu0 %v8359_v7 }
  0xc0   :  { %8021 = vmatprep.subr.bf16.mxu0 %v8361_v9 }
  0xc2   :  { %8054 = vmatpush3.bf16.msra.mxu1 %v8358_v4 }
  0xc3   :  { %8055 = vmatprep.subr.bf16.mxu1 %v8360_v6  ;;  %8022 = vmatpush3.bf16.msra.mxu0 %v8361_v9 }
  0xc4   :  { %7968 = vmatmul.mubr.bf16.gmra.mxu0 %v731_v56  ;;  %8023 = vmatprep.subr.bf16.mxu0 %v8363_v11 }
  0xc5   :  { %8004 = vmatmul.mubr.bf16.gmra.mxu1 %v965_v57  ;;  %7971 = vmatprep.mubr.bf16.mxu0 %v733_v58 }
  0xc6   :  { %8007 = vmatprep.mubr.bf16.mxu1 %v967_v59  ;;  %8056 = vmatpush3.bf16.msra.mxu1 %v8360_v6 }
  0xc7   :  { %8057 = vmatprep.subr.bf16.mxu1 %v8362_v8  ;;  %8024 = vmatpush3.bf16.msra.mxu0 %v8363_v11 }
  0xc8   :  { %8025 = vmatprep.subr.bf16.mxu0 %v8366_v12 }
  0xca   :  { %8058 = vmatpush3.bf16.msra.mxu1 %v8362_v8 }
  0xcb   :  { %8107 = vmatprep.subr.bf16.mxu1 %v9638_v10  ;;  %8026 = vmatpush3.bf16.msra.mxu0 %v8366_v12 }
  0xcc   :  { %7972 = vmatmul.mubr.bf16.gmra.mxu0 %v732_v39  ;;  %8075 = vmatprep.subr.bf16.mxu0 %v9641_v13 }
  0xcd   :  { %8008 = vmatmul.mubr.bf16.gmra.mxu1 %v966_v40 }
 0x144   :  { %v7885_v14 = vpop.f32.mrf.mxu0 }
 0x145   :  { %v7921_v15 = vpop.f32.mrf.mxu1 }
 0x146   :  { %v376_v16 = vpop.f32.mrf.mxu0  ;;  %v559_v54 = vadd.f32 %v7921_v15, %v7885_v14 }
 0x147   :  { %v550_v17 = vpop.f32.mrf.mxu1 }
 0x148   :  { %v7886_v18 = vpop.f32.mrf.mxu0  ;;  %v551_v57 = vadd.f32 %v550_v17, %v376_v16 }
 0x149   :  { %v7922_v19 = vpop.f32.mrf.mxu1 }
 0x14a   :  { %v379_v20 = vpop.f32.mrf.mxu0  ;;  %v562_v61 = vadd.f32 %v7922_v19, %v7886_v18 }
 0x14b   :  { %v553_v21 = vpop.f32.mrf.mxu1 }
 0x14c   :  { %v7889_v22 = vpop.f32.mrf.mxu0  ;;  %v554_v3 = vadd.f32 %v553_v21, %v379_v20 }
 0x14d   :  { %v7925_v23 = vpop.f32.mrf.mxu1 }
 0x14e   :  { %v392_v24 = vpop.f32.mrf.mxu0  ;;  %v575_v8 = vadd.f32 %v7925_v23, %v7889_v22 }
 0x14f   :  { %v566_v25 = vpop.f32.mrf.mxu1 }
 0x150   :  { %v9644_v26 = vpop.f32.mrf.mxu0  ;;  %v567_v15 = vadd.f32 %v566_v25, %v392_v24 }
 0x151   :  { %v9646_v27 = vpop.f32.mrf.mxu1 }
 0x152   :  { %v9648_v28 = vpop.f32.mrf.mxu0 }
 0x153   :  { %v9650_v29 = vpop.f32.mrf.mxu1 }
 0x154   :  { %v9652_v30 = vpop.f32.mrf.mxu0  ;;  %v570_v25 = vadd.f32 %v9650_v29, %v9648_v28 }
 0x155   :  { %v9654_v31 = vpop.f32.mrf.mxu1 }
 0x156   :  { %v9656_v32 = vpop.f32.mrf.mxu0 }
 0x157   :  { %v9658_v33 = vpop.f32.mrf.mxu1 }
 0x158   :  { %v9660_v34 = vpop.f32.mrf.mxu0 }
 0x159   :  { %v9662_v35 = vpop.f32.mrf.mxu1 }
 0x15a   :  { %v9664_v36 = vpop.f32.mrf.mxu0 }
 0x15b   :  { %v9666_v37 = vpop.f32.mrf.mxu1 }
 0x15c   :  { %v9668_v38 = vpop.f32.mrf.mxu0 }
 0x15d   :  { %v9670_v39 = vpop.f32.mrf.mxu1 }
 0x15e   :  { %v9672_v40 = vpop.f32.mrf.mxu0 }
 0x15f   :  { %v9674_v41 = vpop.f32.mrf.mxu1 }
 0x160   :  { %v9676_v44 = vpop.f32.mrf.mxu0 }
 0x161   :  { %v9678_v42 = vpop.f32.mrf.mxu1 }
 0x162   :  { %v9680_v43 = vpop.f32.mrf.mxu0 }
 0x163   :  { %v9682_v45 = vpop.f32.mrf.mxu1 }
 0x164   :  { %v7901_v46 = vpop.f32.mrf.mxu0 }
 0x165   :  { %v7937_v47 = vpop.f32.mrf.mxu1 }
 0x166   :  { %v9684_v48 = vadd.f32 %v7937_v47, %v7901_v46  ;;  %v9686_v49 = vpop.f32.mrf.mxu0 }
 0x167   :  { %v9688_v50 = vpop.f32.mrf.mxu1 }
 0x168   :  { %v7902_v51 = vpop.f32.mrf.mxu0 }
 0x169   :  { %v7938_v52 = vpop.f32.mrf.mxu1 }
 0x16a   :  { %v9690_v53 = vpop.f32.mrf.mxu0 }
 0x16b   :  { %v9692_v55 = vpop.f32.mrf.mxu1 }
 0x16c   :  { %v7957_v56 = vpop.f32.mrf.mxu0 }
 0x16d   :  { %v906_v58 = vadd.f32 %v7957_v56, %v559_v54  ;;  %v7993_v59 = vpop.f32.mrf.mxu1  ;;  %v578_v54 = vadd.f32 %v9646_v27, %v9644_v26  ;;  %v583_v26 = vadd.f32 %v9658_v33, %v9656_v32  ;;  %v594_v32 = vadd.f32 %v9662_v35, %v9660_v34 }
 0x16e   :  { %v826_v60 = vpop.f32.mrf.mxu0 }
 0x16f   :  { %v1140_v62 = vadd.f32 %v7993_v59, %v906_v58  ;;  %v904_v63 = vadd.f32 %v826_v60, %v551_v57  ;;  %v1060_v0 = vpop.f32.mrf.mxu1 }
 0x170   :  { %v7958_v2 = vpop.f32.mrf.mxu0 }
 0x171   :  { %v1138_v4 = vadd.f32 %v1060_v0, %v904_v63  ;;  %v907_v5 = vadd.f32 %v7958_v2, %v562_v61  ;;  %v7994_v6 = vpop.f32.mrf.mxu1  ;;  %v1166_v9 = vadd.f32 %v9694_v1, %v1140_v62  ;;  %v591_v0 = vadd.f32 %v9654_v31, %v9652_v30 }
 0x172   :  { %v829_v7 = vpop.f32.mrf.mxu0 }
 0x173   :  { %v1141_v11 = vadd.f32 %v7994_v6, %v907_v5  ;;  %v905_v12 = vadd.f32 %v829_v7, %v554_v3  ;;  %v1063_v14 = vpop.f32.mrf.mxu1  ;;  %v1164_v17 = vadd.f32 %v9694_v1, %v1138_v4  ;;  %v1185_v21 = vmax.f32 %v1166_v9, 0.0  ;;  %v8365_v5 = vld [vmem:[#allocation10 + $0xf0] sm:$0xff]  }
 0x174   :  { %v7961_v16 = vpop.f32.mrf.mxu0 }
 0x175   :  { %v1167_v18 = vadd.f32 %v9694_v1, %v1141_v11  ;;  %v1139_v19 = vadd.f32 %v1063_v14, %v905_v12  ;;  %v910_v46 = vadd.f32 %v7961_v16, %v575_v8  ;;  %v7997_v47 = vpop.f32.mrf.mxu1  ;;  %v1183_v57 = vmax.f32 %v1164_v17, 0.0 }
 0x176   :  { %v842_v20 = vpop.f32.mrf.mxu0 }
 0x177   :  { %v1186_v51 = vmax.f32 %v1167_v18, 0.0  ;;  %v1165_v52 = vadd.f32 %v9694_v1, %v1139_v19  ;;  %v908_v22 = vadd.f32 %v842_v20, %v567_v15  ;;  %v1076_v23 = vpop.f32.mrf.mxu1  ;;  %v1144_v56 = vadd.f32 %v7997_v47, %v910_v46  ;;  %v8367_v47 = vld [vmem:[#allocation10 + $0xe8] sm:$0xff]  }
 0x178   :  { %v7962_v24 = vpop.f32.mrf.mxu0  ;;  %v586_v20 = vadd.f32 %v9666_v37, %v9664_v36  ;;  %v599_v36 = vadd.f32 %v9674_v41, %v9672_v40 }
 0x179   :  { %v9704_v58 = vpack.c.bf16 %v1186_v51, %v1185_v21  ;;  %v1184_v59 = vmax.f32 %v1165_v52, 0.0  ;;  %v7998_v60 = vpop.f32.mrf.mxu1  ;;  %v1142_v61 = vadd.f32 %v1076_v23, %v908_v22  ;;  %v911_v62 = vadd.f32 %v7962_v24, %v578_v54 }
 0x17a   :  { %v845_v63 = vpop.f32.mrf.mxu0  ;;  %v1170_v27 = vadd.f32 %v9694_v1, %v1144_v56 }
 0x17b   :  { %v909_v2 = vadd.f32 %v845_v63, %v570_v25  ;;  %v1079_v3 = vpop.f32.mrf.mxu1  ;;  %v1202_v4 = vpack.c.bf16 %v1184_v59, %v1183_v57  ;;  %v1145_v28 = vadd.f32 %v7998_v60, %v911_v62  ;;  %v1255_v11 = vrot.slane %v9704_v58, 1  ;;  %v8369_v63 = vld [vmem:[#allocation10 + $0xe0] sm:$0xff]  }
 0x17c   :  { %v7965_v29 = vpop.f32.mrf.mxu0  ;;  %v1168_v30 = vadd.f32 %v9694_v1, %v1142_v61  ;;  %v1189_v17 = vmax.f32 %v1170_v27, 0.0  ;;  %v8370_v27 = vld [vmem:[#allocation10 + $0xb0] sm:$0xff]  }
 0x17d   :  { %v1143_v6 = vadd.f32 %v1079_v3, %v909_v2  ;;  %v914_v7 = vadd.f32 %v7965_v29, %v591_v0  ;;  %v8001_v8 = vpop.f32.mrf.mxu1  ;;  %v1254_v9 = vrot.slane %v1202_v4, 1  ;;  %8059 = vmatprep.mubr.bf16.mxu1 %v1202_v4  ;;  %v1171_v31 = vadd.f32 %v9694_v1, %v1145_v28 }
 0x17e   :  { %v858_v12 = vpop.f32.mrf.mxu0  ;;  %8060 = vmatmul.mubr.bf16.vlgmr.msra.gmra.mxu1 %v9704_v58  ;;  %v1187_v51 = vmax.f32 %v1168_v30, 0.0  ;;  %v610_v3 = vadd.f32 %v9678_v42, %v9676_v44  ;;  %v602_v44 = vadd.f32 %v9682_v45, %v9680_v43  ;;  %v8372_v43 = vld [vmem:[#allocation10 + $0xa8] sm:$0xff]  }
 0x17f   :  { %v1169_v33 = vadd.f32 %v9694_v1, %v1143_v6  ;;  %v912_v14 = vadd.f32 %v858_v12, %v583_v26  ;;  %v1092_v15 = vpop.f32.mrf.mxu1  ;;  %8108 = vmatpush3.bf16.msra.mxu1 %v9638_v10  ;;  %v1256_v16 = vsel %vm264_vm0, %v1254_v9, %v1255_v11  ;;  %v1190_v18 = vmax.f32 %v1171_v31, 0.0  ;;  %v8371_v31 = vld [vmem:[#allocation10 + $0xd8] sm:$0xff]  }
 0x180   :  { %v1148_v19 = vadd.f32 %v8001_v8, %v914_v7  ;;  %v7966_v46 = vpop.f32.mrf.mxu0  ;;  %8027 = vmatprep.mubr.bf16.mxu0 %v1256_v16  ;;  %8109 = vmatprep.subr.bf16.mxu1 %v8365_v5  ;;  %v607_v10 = vadd.f32 %v9670_v39, %v9668_v38 }
 0x181   :  { %v1188_v21 = vmax.f32 %v1169_v33, 0.0  ;;  %v915_v34 = vadd.f32 %v7966_v46, %v594_v32  ;;  %v8002_v35 = vpop.f32.mrf.mxu1  ;;  %v1146_v52 = vadd.f32 %v1092_v15, %v912_v14  ;;  %v9722_v23 = vpack.c.bf16 %v1190_v18, %v1189_v17 }
 0x182   :  { %v861_v22 = vpop.f32.mrf.mxu0  ;;  %v1174_v25 = vadd.f32 %v9694_v1, %v1148_v19  ;;  %v615_v18 = vadd.f32 %v9688_v50, %v9686_v49 }
 0x183   :  { %v1149_v54 = vadd.f32 %v8002_v35, %v915_v34  ;;  %v913_v56 = vadd.f32 %v861_v22, %v586_v20  ;;  %v1095_v24 = vpop.f32.mrf.mxu1  ;;  %8110 = vmatpush3.bf16.msra.mxu1 %v8365_v5  ;;  %v9727_v59 = vpack.c.bf16 %v1188_v21, %v1187_v51  ;;  %v1172_v38 = vadd.f32 %v9694_v1, %v1146_v52  ;;  %v8373_v20 = vld [vmem:[#allocation10 + $0xd0] sm:$0xff]   ;;  %v8374_v22 = vld [vmem:[#allocation10 + $0xa0] sm:$0xff]  }
 0x184   :  { %v7969_v57 = vpop.f32.mrf.mxu0  ;;  %8111 = vmatprep.subr.bf16.mxu1 %v8367_v47  ;;  %v1259_v2 = vrot.slane %v9722_v23, 1  ;;  %v1193_v28 = vmax.f32 %v1174_v25, 0.0  ;;  %v618_v25 = vadd.f32 %v9692_v55, %v9690_v53  ;;  %v8376_v55 = vld [vmem:[#allocation10 + $0x98] sm:$0xff]  }
 0x185   :  { %v1175_v37 = vadd.f32 %v9694_v1, %v1149_v54  ;;  %v1147_v60 = vadd.f32 %v1095_v24, %v913_v56  ;;  %v918_v61 = vadd.f32 %v7969_v57, %v607_v10  ;;  %v8005_v62 = vpop.f32.mrf.mxu1  ;;  %v1257_v39 = vrot.slane %v9727_v59, 1  ;;  %8063 = vmatprep.mubr.bf16.mxu1 %v9727_v59 }
 0x186   :  { %v874_v0 = vpop.f32.mrf.mxu0  ;;  %8064 = vmatmul.mubr.bf16.gmra.mxu1 %v9722_v23  ;;  %v1191_v12 = vmax.f32 %v1172_v38, 0.0  ;;  %v1769_v53 = vrot.slane %v9727_v59, 2 }
 0x187   :  { %v1194_v4 = vmax.f32 %v1175_v37, 0.0  ;;  %v1173_v40 = vadd.f32 %v9694_v1, %v1147_v60  ;;  %v916_v41 = vadd.f32 %v874_v0, %v599_v36  ;;  %v1108_v26 = vpop.f32.mrf.mxu1  ;;  %v1152_v29 = vadd.f32 %v8005_v62, %v918_v61  ;;  %8112 = vmatpush3.bf16.msra.mxu1 %v8367_v47  ;;  %v8375_v61 = vld [vmem:[#allocation10 + $0xc8] sm:$0xff]  }
 0x188   :  { %v7970_v5 = vpop.f32.mrf.mxu0  ;;  %v9741_v6 = vsel %vm264_vm0, %v1255_v11, %v1257_v39  ;;  %v9744_v7 = vsel %vm264_vm0, %v1257_v39, %v1259_v2  ;;  %8113 = vmatprep.subr.bf16.mxu1 %v8369_v63 }
 0x189   :  { %v1192_v42 = vmax.f32 %v1173_v40, 0.0  ;;  %v1150_v8 = vadd.f32 %v1108_v26, %v916_v41  ;;  %v919_v9 = vadd.f32 %v7970_v5, %v610_v3  ;;  %v8006_v30 = vpop.f32.mrf.mxu1  ;;  %8028 = vmatmul.mubr.bf16.vlgmr.msra.gmra.mxu0 %v9741_v6  ;;  %v9751_v32 = vpack.c.bf16 %v1194_v4, %v1193_v28  ;;  %v8377_v41 = vld [vmem:[#allocation10 + $0xc0] sm:$0xff]  }
 0x18a   :  { %8031 = vmatprep.mubr.bf16.mxu0 %v9744_v7  ;;  %8076 = vmatpush3.bf16.msra.mxu0 %v9641_v13  ;;  %v877_v11 = vpop.f32.mrf.mxu0  ;;  %v1178_v45 = vadd.f32 %v9694_v1, %v1152_v29  ;;  %v1768_v4 = vrot.slane %v9704_v58, 2  ;;  %v8378_v29 = vld [vmem:[#allocation10 + $0x90] sm:$0xff]  }
 0x18b   :  { %v1153_v33 = vadd.f32 %v8006_v30, %v919_v9  ;;  %v917_v14 = vadd.f32 %v877_v11, %v602_v44  ;;  %v1111_v15 = vpop.f32.mrf.mxu1  ;;  %8077 = vmatprep.subr.bf16.mxu0 %v8370_v27  ;;  %8114 = vmatpush3.bf16.msra.mxu1 %v8369_v63  ;;  %v9756_v17 = vpack.c.bf16 %v1192_v42, %v1191_v12  ;;  %v1263_v35 = vrot.slane %v9751_v32, 1  ;;  %v8379_v9 = vld [vmem:[#allocation10 + $0x88] sm:$0xff]  }
 0x18c   :  { %v9754_v16 = vpop.f32.mrf.mxu0  ;;  %v1176_v13 = vadd.f32 %v9694_v1, %v1150_v8  ;;  %8115 = vmatprep.subr.bf16.mxu1 %v8371_v31  ;;  %v1197_v10 = vmax.f32 %v1178_v45, 0.0  ;;  %v1770_v59 = vsel %vm948_vm1, %v1768_v4, %v1769_v53  ;;  %v1771_v30 = vrot.slane %v9722_v23, 2 }
 0x18d   :  { %v1179_v19 = vadd.f32 %v9694_v1, %v1153_v33  ;;  %v1151_v46 = vadd.f32 %v1111_v15, %v917_v14  ;;  %v9762_v47 = vpop.f32.mrf.mxu1  ;;  %8067 = vmatprep.mubr.bf16.mxu1 %v9756_v17  ;;  %v1261_v34 = vrot.slane %v9756_v17, 1  ;;  %v1773_v8 = vrot.slane %v9756_v17, 2  ;;  %v8380_v14 = vld [vmem:[#allocation10 + $0x80] sm:$0xff]  }
 0x18e   :  { %8078 = vmatpush3.bf16.msra.mxu0 %v8370_v27  ;;  %v890_v21 = vpop.f32.mrf.mxu0  ;;  %8068 = vmatmul.mubr.bf16.gmra.mxu1 %v9751_v32  ;;  %v1195_v57 = vmax.f32 %v1176_v13, 0.0  ;;  %v1772_v12 = vsel %vm948_vm1, %v1769_v53, %v1771_v30  ;;  %v922_v15 = vadd.f32 %v9754_v16, %v9684_v48  ;;  %v1775_v45 = vrot.slane %v9751_v32, 2 }
 0x18f   :  { %v1198_v51 = vmax.f32 %v1179_v19, 0.0  ;;  %v1177_v49 = vadd.f32 %v9694_v1, %v1151_v46  ;;  %v920_v50 = vadd.f32 %v890_v21, %v615_v18  ;;  %v1124_v52 = vpop.f32.mrf.mxu1  ;;  %8079 = vmatprep.subr.bf16.mxu0 %v8372_v43  ;;  %8116 = vmatpush3.bf16.msra.mxu1 %v8371_v31  ;;  %v9770_v56 = vsel %vm264_vm0, %v1259_v2, %v1261_v34  ;;  %v8381_v21 = vld [vmem:[#allocation13 + $0x38] sm:$0xff]  }
 0x190   :  { %v7974_v54 = vpop.f32.mrf.mxu0  ;;  %v9773_v24 = vsel %vm264_vm0, %v1261_v34, %v1263_v35  ;;  %8117 = vmatprep.subr.bf16.mxu1 %v8373_v20  ;;  %v1774_v11 = vsel %vm948_vm1, %v1771_v30, %v1773_v8  ;;  %v1776_v17 = vsel %vm948_vm1, %v1773_v8, %v1775_v45  ;;  %v8382_v34 = vld [vmem:[#allocation13 + $0x78] sm:$0xff]  }
 0x191   :  { %v1196_v36 = vmax.f32 %v1177_v49, 0.0  ;;  %v1154_v37 = vadd.f32 %v1124_v52, %v920_v50  ;;  %v8010_v60 = vpop.f32.mrf.mxu1  ;;  %8032 = vmatmul.mubr.bf16.gmra.mxu0 %v9770_v56  ;;  %v9779_v63 = vpack.c.bf16 %v1198_v51, %v1197_v10  ;;  %v8384_v51 = vld [vmem:[#allocation13 + $0x70] sm:$0xff]   ;;  %v8385_v49 = vld [vmem:[#allocation13 + $0x28] sm:$0xff]   ;;  %v8387_v52 = vld [vmem:[#allocation13 + $0x20] sm:$0xff]  }
 0x192   :  { %8035 = vmatprep.mubr.bf16.mxu0 %v9773_v24  ;;  %8080 = vmatpush3.bf16.msra.mxu0 %v8372_v43  ;;  %v893_v62 = vpop.f32.mrf.mxu0  ;;  %v1156_v43 = vadd.f32 %v9762_v47, %v922_v15  ;;  %v8386_v50 = vld [vmem:[#allocation13 + $0x68] sm:$0xff]   ;;  %v8389_v10 = vld [vmem:[#allocation13 + $0x18] sm:$0xff]  }
 0x193   :  { %v921_v38 = vadd.f32 %v893_v62, %v618_v25  ;;  %8081 = vmatprep.subr.bf16.mxu0 %v8374_v22  ;;  %v9781_v39 = vpack.c.bf16 %v1196_v36, %v1195_v57  ;;  %v1127_v0 = vpop.f32.mrf.mxu1  ;;  %8118 = vmatpush3.bf16.msra.mxu1 %v8373_v20  ;;  %v1180_v2 = vadd.f32 %v9694_v1, %v1154_v37  ;;  %v1267_v26 = vrot.slane %v9779_v63, 1  ;;  %v8390_v54 = vld [vmem:[#allocation13 + $0x58] sm:$0xff]   ;;  %v8393_v25 = vld [vmem:[#allocation13 + $0x8] sm:$0xff]   ;;  %v8395_v36 = vld [vmem:[#allocation13] sm:$0xff]  }
 0x194   :  { %8119 = vmatprep.subr.bf16.mxu1 %v8375_v61  ;;  %v1182_v48 = vadd.f32 %v9694_v1, %v1156_v43  ;;  %v1779_v13 = vrot.slane %v9779_v63, 2  ;;  %v8394_v57 = vld [vmem:[#allocation13 + $0x48] sm:$0xff]   ;;  %v8396_v37 = vld [vmem:[#allocation13 + $0x40] sm:$0xff]   ;;  %v9816_v60 = vld [vmem:[#allocation13 + $0xf8] sm:$0xff]  }
 0x195   :  { %v1155_v3 = vadd.f32 %v1127_v0, %v921_v38  ;;  %8071 = vmatprep.mubr.bf16.mxu1 %v9781_v39  ;;  %v1265_v40 = vrot.slane %v9781_v39, 1  ;;  %v1199_v5 = vmax.f32 %v1180_v2, 0.0  ;;  %v1777_v23 = vrot.slane %v9781_v39, 2 }
 0x196   :  { %8082 = vmatpush3.bf16.msra.mxu0 %v8374_v22  ;;  %8072 = vmatmul.mubr.bf16.gmra.mxu1 %v9779_v63  ;;  %v1201_v16 = vmax.f32 %v1182_v48, 0.0  ;;  %v8388_v22 = vld [vmem:[#allocation13 + $0x60] sm:$0xff]   ;;  %v2001_v48 = vlaneseq }
 0x197   :  { %v1181_v27 = vadd.f32 %v9694_v1, %v1155_v3  ;;  %v1266_v28 = vsel %vm264_vm0, %v1263_v35, %v1265_v40  ;;  %8083 = vmatprep.subr.bf16.mxu0 %v8376_v55  ;;  %8120 = vmatpush3.bf16.msra.mxu1 %v8375_v61  ;;  %v1268_v58 = vsel %vm264_vm0, %v1265_v40, %v1267_v26  ;;  %v8383_v35 = vld [vmem:[#allocation13 + $0x30] sm:$0xff]   ;;  %v9819_v61 = vld [vmem:[#allocation13 + $0xb8] sm:$0xff]  }
 0x198   :  { %8123 = vmatprep.mubr.bf16.mxu1 %v1770_v59  ;;  %8121 = vmatprep.subr.bf16.mxu1 %v8377_v41  ;;  %v1778_v18 = vsel %vm948_vm1, %v1775_v45, %v1777_v23  ;;  %v1780_v19 = vsel %vm948_vm1, %v1777_v23, %v1779_v13  ;;  %v1211_v46 = vpack.c.bf16 %v1201_v16, %v1201_v16 }
 0x199   :  { %v1200_v44 = vmax.f32 %v1181_v27, 0.0  ;;  %8036 = vmatmul.mubr.bf16.gmra.mxu0 %v1266_v28 }
 0x19a   :  { %8039 = vmatprep.mubr.bf16.mxu0 %v1268_v58  ;;  %8084 = vmatpush3.bf16.msra.mxu0 %v8376_v55  ;;  %v1783_v1 = vrot.slane %v1211_v46, 2 }
 0x19b   :  { %v1210_v42 = vpack.c.bf16 %v1200_v44, %v1199_v5  ;;  %8085 = vmatprep.subr.bf16.mxu0 %v8378_v29  ;;  %8122 = vmatpush3.bf16.msra.mxu1 %v8377_v41 }
 0x19c   :  { %8167 = vmatprep.subr.bf16.mxu1 %v8381_v21 }
 0x19d   :  { %v1269_v31 = vrot.slane %v1210_v42, 1 }
 0x19e   :  { %8086 = vmatpush3.bf16.msra.mxu0 %v8378_v29  ;;  %8124 = vmatmul.mubr.bf16.vlgmr.msra.gmra.mxu1 %v1772_v12 }
 0x19f   :  { %v1270_v33 = vsel %vm264_vm0, %v1267_v26, %v1269_v31  ;;  %8087 = vmatprep.subr.bf16.mxu0 %v8379_v9  ;;  %8127 = vmatprep.mubr.bf16.mxu1 %v1774_v11 }
 0x1a0   :  { %8168 = vmatpush3.bf16.msra.mxu1 %v8381_v21 }
 0x1a1   :  { %8040 = vmatmul.mubr.bf16.gmra.mxu0 %v1270_v33  ;;  %8169 = vmatprep.subr.bf16.mxu1 %v8383_v35 }
 0x1a2   :  { %8088 = vmatpush3.bf16.msra.mxu0 %v8379_v9  ;;  %8091 = vmatprep.mubr.bf16.mxu0 %v9741_v6  ;;  %v1781_v6 = vrot.slane %v1210_v42, 2 }
 0x1a3   :  { %8089 = vmatprep.subr.bf16.mxu0 %v8380_v14 }
 0x1a4   :  { %v1782_v32 = vsel %vm948_vm1, %v1779_v13, %v1781_v6  ;;  %v1784_v47 = vsel %vm948_vm1, %v1781_v6, %v1783_v1  ;;  %8170 = vmatpush3.bf16.msra.mxu1 %v8383_v35 }
 0x1a5   :  { %8171 = vmatprep.subr.bf16.mxu1 %v8385_v49 }
 0x1a6   :  { %8090 = vmatpush3.bf16.msra.mxu0 %v8380_v14  ;;  %8128 = vmatmul.mubr.bf16.gmra.mxu1 %v1776_v17 }
 0x1a7   :  { %8131 = vmatprep.mubr.bf16.mxu1 %v1778_v18  ;;  %8139 = vmatprep.subr.bf16.mxu0 %v8382_v34 }
 0x1a8   :  { %8172 = vmatpush3.bf16.msra.mxu1 %v8385_v49 }
 0x1a9   :  { %8092 = vmatmul.mubr.bf16.vlgmr.msra.gmra.mxu0 %v9744_v7  ;;  %v1587_v7 = vrot.slane %v1211_v46, 1  ;;  %8173 = vmatprep.subr.bf16.mxu1 %v8387_v52  ;;  %v2002_v46 = vand.u32 127, %v2001_v48 }
 0x1aa   :  { %8095 = vmatprep.mubr.bf16.mxu0 %v9770_v56  ;;  %8140 = vmatpush3.bf16.msra.mxu0 %v8382_v34  ;;  %v8391_v56 = vld [vmem:[#allocation13 + $0x10] sm:$0xff]  }
 0x1ab   :  { %v1588_v20 = vsel %vm264_vm0, %v1269_v31, %v1587_v7  ;;  %8141 = vmatprep.subr.bf16.mxu0 %v8384_v51  ;;  %vm2003_vm2 = vcmp.lt.s32.totalorder %v2002_v46, 64 }
 0x1ac   :  { %8174 = vmatpush3.bf16.msra.mxu1 %v8387_v52  ;;  %vm9863_vm3 = vmpackc.low %vm2003_vm2, %vm2003_vm2 }
 0x1ad   :  { %8175 = vmatprep.subr.bf16.mxu1 %v8389_v10 }
 0x1ae   :  { %8132 = vmatmul.mubr.bf16.gmra.mxu1 %v1780_v19  ;;  %8142 = vmatpush3.bf16.msra.mxu0 %v8384_v51  ;;  %v9858_v51 = vld [vmem:[#allocation11] ss:$0 sm:$0xff] }
 0x1af   :  { %8135 = vmatprep.mubr.bf16.mxu1 %v1782_v32  ;;  %8143 = vmatprep.subr.bf16.mxu0 %v8386_v50 }
 0x1b0   :  { %8176 = vmatpush3.bf16.msra.mxu1 %v8389_v10 }
 0x1b1   :  { %8096 = vmatmul.mubr.bf16.gmra.mxu0 %v9773_v24  ;;  %8177 = vmatprep.subr.bf16.mxu1 %v8391_v56  ;;  %v8392_v24 = vld [vmem:[#allocation13 + $0x50] sm:$0xff]  }
 0x1b2   :  { %8099 = vmatprep.mubr.bf16.mxu0 %v1266_v28  ;;  %8144 = vmatpush3.bf16.msra.mxu0 %v8386_v50 }
 0x1b3   :  { %8145 = vmatprep.subr.bf16.mxu0 %v8388_v22 }
 0x1b4   :  { %8178 = vmatpush3.bf16.msra.mxu1 %v8391_v56 }
 0x1b5   :  { %8179 = vmatprep.subr.bf16.mxu1 %v8393_v25 }
 0x1b6   :  { %8136 = vmatmul.mubr.bf16.gmra.mxu1 %v1784_v47  ;;  %8146 = vmatpush3.bf16.msra.mxu0 %v8388_v22 }
 0x1b7   :  { %8147 = vmatprep.subr.bf16.mxu0 %v8390_v54 }
 0x1b8   :  { %8180 = vmatpush3.bf16.msra.mxu1 %v8393_v25 }
 0x1b9   :  { %8100 = vmatmul.mubr.bf16.gmra.mxu0 %v1268_v58  ;;  %8181 = vmatprep.subr.bf16.mxu1 %v8395_v36 }
 0x1ba   :  { %8103 = vmatprep.mubr.bf16.mxu0 %v1270_v33  ;;  %8148 = vmatpush3.bf16.msra.mxu0 %v8390_v54 }
 0x1bb   :  { %8149 = vmatprep.subr.bf16.mxu0 %v8392_v24 }
 0x1bc   :  { %8182 = vmatpush3.bf16.msra.mxu1 %v8395_v36 }
 0x1bd   :  { %8223 = vmatprep.subr.bf16.mxu1 %v9816_v60 }
 0x1be   :  { %8150 = vmatpush3.bf16.msra.mxu0 %v8392_v24  ;;  %v9860_v24 = vshrl.u32 %v2001_v48, 7 }
 0x1bf   :  { %8151 = vmatprep.subr.bf16.mxu0 %v8394_v57 }
 0x1c1   :  { %8104 = vmatmul.mubr.bf16.gmra.mxu0 %v1588_v20 }
 0x1c2   :  { %8152 = vmatpush3.bf16.msra.mxu0 %v8394_v57 }
 0x1c3   :  { %8153 = vmatprep.subr.bf16.mxu0 %v8396_v37 }
 0x1c6   :  { %8154 = vmatpush3.bf16.msra.mxu0 %v8396_v37 }
 0x1c7   :  { %8195 = vmatprep.subr.bf16.mxu0 %v9819_v61 }
 0x23e   :  { %v8061_v62 = vpop.f32.mrf.mxu1 }
 0x240   :  { %v1506_v63 = vpop.f32.mrf.mxu1 }
 0x242   :  { %v8062_v38 = vpop.f32.mrf.mxu1 }
 0x244   :  { %v1509_v39 = vpop.f32.mrf.mxu1 }
 0x246   :  { %v8065_v53 = vpop.f32.mrf.mxu1 }
 0x248   :  { %v1522_v0 = vpop.f32.mrf.mxu1 }
 0x249   :  { %v8029_v55 = vpop.f32.mrf.mxu0 }
 0x24a   :  { %v9822_v3 = vpop.f32.mrf.mxu1  ;;  %v1515_v13 = vadd.f32 %v8061_v62, %v8029_v55 }
 0x24b   :  { %v1361_v2 = vpop.f32.mrf.mxu0 }
 0x24c   :  { %v9824_v40 = vpop.f32.mrf.mxu1  ;;  %v1507_v1 = vadd.f32 %v1506_v63, %v1361_v2 }
 0x24d   :  { %v8030_v4 = vpop.f32.mrf.mxu0 }
 0x24e   :  { %v9826_v26 = vpop.f32.mrf.mxu1  ;;  %v1518_v21 = vadd.f32 %v8062_v38, %v8030_v4 }
 0x24f   :  { %v1364_v41 = vpop.f32.mrf.mxu0 }
 0x250   :  { %v9828_v59 = vpop.f32.mrf.mxu1  ;;  %v1510_v52 = vadd.f32 %v1509_v39, %v1364_v41 }
 0x251   :  { %v8033_v27 = vpop.f32.mrf.mxu0 }
 0x252   :  { %v9830_v29 = vpop.f32.mrf.mxu1  ;;  %v1531_v25 = vadd.f32 %v8065_v53, %v8033_v27  ;;  %v2008_v27 = vsub.s32 0, %v9860_v24 }
 0x253   :  { %v1377_v28 = vpop.f32.mrf.mxu0 }
 0x254   :  { %v9832_v5 = vpop.f32.mrf.mxu1  ;;  %v1523_v63 = vadd.f32 %v1522_v0, %v1377_v28 }
 0x255   :  { %v8034_v58 = vpop.f32.mrf.mxu0 }
 0x256   :  { %v9834_v42 = vpop.f32.mrf.mxu1 }
 0x257   :  { %v1380_v44 = vpop.f32.mrf.mxu0 }
 0x258   :  { %v9838_v9 = vpop.f32.mrf.mxu1 }
 0x259   :  { %v9836_v8 = vpop.f32.mrf.mxu0 }
 0x25a   :  { %v9842_v31 = vpop.f32.mrf.mxu1 }
 0x25b   :  { %v9840_v30 = vpop.f32.mrf.mxu0 }
 0x25c   :  { %v9846_v11 = vpop.f32.mrf.mxu1 }
 0x25d   :  { %v9844_v12 = vpop.f32.mrf.mxu0 }
 0x25e   :  { %v8125_v14 = vpop.f32.mrf.mxu1 }
 0x25f   :  { %v9848_v33 = vpop.f32.mrf.mxu0 }
 0x260   :  { %v1875_v23 = vpop.f32.mrf.mxu1 }
 0x261   :  { %v9850_v15 = vpop.f32.mrf.mxu0 }
 0x262   :  { %v8126_v45 = vpop.f32.mrf.mxu1 }
 0x263   :  { %v9852_v43 = vpop.f32.mrf.mxu0 }
 0x264   :  { %v1878_v18 = vpop.f32.mrf.mxu1 }
 0x265   :  { %v9854_v17 = vpop.f32.mrf.mxu0 }
 0x266   :  { %v8129_v16 = vpop.f32.mrf.mxu1 }
 0x267   :  { %v9856_v6 = vpop.f32.mrf.mxu0 }
 0x268   :  { %v1891_v32 = vpop.f32.mrf.mxu1 }
 0x269   :  { %v8093_v19 = vpop.f32.mrf.mxu0 }
 0x26a   :  { %v1737_v47 = vadd.f32 %v8093_v19, %v1515_v13  ;;  %v8130_v20 = vpop.f32.mrf.mxu1  ;;  %v1534_v13 = vadd.f32 %v9822_v3, %v8034_v58  ;;  %v1526_v19 = vadd.f32 %v9824_v40, %v1380_v44  ;;  %v1539_v40 = vadd.f32 %v9828_v59, %v9840_v30 }
 0x26b   :  { %v1672_v7 = vpop.f32.mrf.mxu0 }
 0x26c   :  { %v1940_v34 = vadd.f32 %v8125_v14, %v1737_v47  ;;  %v1735_v35 = vadd.f32 %v1672_v7, %v1507_v1  ;;  %v1894_v50 = vpop.f32.mrf.mxu1 }
 0x26d   :  { %v8094_v49 = vpop.f32.mrf.mxu0 }
 0x26e   :  { %v1938_v22 = vadd.f32 %v1875_v23, %v1735_v35  ;;  %v1738_v10 = vadd.f32 %v8094_v49, %v1518_v21  ;;  %v8133_v56 = vpop.f32.mrf.mxu1  ;;  %v1963_v57 = vadd.f32 %v9858_v51, %v1940_v34  ;;  %v9323_v23 = vmov 0  }
 0x26f   :  { %v1675_v54 = vpop.f32.mrf.mxu0  ;;  %v2005_v53 = vsel %vm9863_vm3, 65537, %v9323_v23 }
 0x270   :  { %v1941_v36 = vadd.f32 %v8126_v45, %v1738_v10  ;;  %v1736_v37 = vadd.f32 %v1675_v54, %v1510_v52  ;;  %v1907_v55 = vpop.f32.mrf.mxu1  ;;  %v1961_v39 = vadd.f32 %v9858_v51, %v1938_v22  ;;  %v1979_v45 = vmax.f32 %v1963_v57, 0.0 }
 0x271   :  { %v8097_v38 = vpop.f32.mrf.mxu0  ;;  %v9880_v52 = vrot.slane %v2005_v53, %v2008_v27  ;;  %v1547_v22 = vadd.f32 %v9826_v26, %v9836_v8  ;;  %v1550_v26 = vadd.f32 %v9830_v29, %v9844_v12 }
 0x272   :  { %v1964_v2 = vadd.f32 %v9858_v51, %v1941_v36  ;;  %v1939_v4 = vadd.f32 %v1878_v18, %v1736_v37  ;;  %v1741_v41 = vadd.f32 %v8097_v38, %v1531_v25  ;;  %v8134_v18 = vpop.f32.mrf.mxu1  ;;  %v1977_v47 = vmax.f32 %v1961_v39, 0.0 }
 0x273   :  { %v1688_v14 = vpop.f32.mrf.mxu0  ;;  %vm2010_vm4 = vcmp.ne.s16.totalorder %v9880_v52, 0 }
 0x274   :  { %v1980_v48 = vmax.f32 %v1964_v2, 0.0  ;;  %v1962_v0 = vadd.f32 %v9858_v51, %v1939_v4  ;;  %v1739_v28 = vadd.f32 %v1688_v14, %v1523_v63  ;;  %v1944_v46 = vadd.f32 %v8129_v16, %v1741_v41  ;;  %v1910_v10 = vpop.f32.mrf.mxu1 }
 0x275   :  { %v8098_v1 = vpop.f32.mrf.mxu0 }
 0x276   :  { %v9876_v7 = vpack.c.bf16 %v1980_v48, %v1979_v45  ;;  %v1978_v21 = vmax.f32 %v1962_v0, 0.0  ;;  %v1942_v34 = vadd.f32 %v1891_v32, %v1739_v28  ;;  %v1742_v35 = vadd.f32 %v8098_v1, %v1534_v13  ;;  %v9898_v2 = vpop.f32.mrf.mxu1 }
 0x277   :  { %v1691_v49 = vpop.f32.mrf.mxu0  ;;  %v1967_v44 = vadd.f32 %v9858_v51, %v1944_v46  ;;  %v1558_v46 = vadd.f32 %v9846_v11, %v9856_v6 }
 0x278   :  { %v1740_v3 = vadd.f32 %v1691_v49, %v1526_v19  ;;  %v9884_v58 = vpack.c.bf16 %v1978_v21, %v1977_v47  ;;  %v1965_v16 = vadd.f32 %v9858_v51, %v1942_v34  ;;  %v1945_v32 = vadd.f32 %v8130_v20, %v1742_v35 }
 0x279   :  { %v8101_v54 = vpop.f32.mrf.mxu0  ;;  %v2018_v37 = vrot.slane %v9876_v7, 1  ;;  %v1555_v19 = vadd.f32 %v9838_v9, %v9852_v43  ;;  %v2058_v34 = vrot.slane %v9876_v7, 7 }
 0x27a   :  { %v1943_v25 = vadd.f32 %v1894_v50, %v1740_v3  ;;  %v1745_v57 = vadd.f32 %v8101_v54, %v1547_v22  ;;  %v2017_v36 = vrot.slane %v9884_v58, 1  ;;  %v1968_v8 = vadd.f32 %v9858_v51, %v1945_v32  ;;  %v8399_v3 = vld [vmem:[#allocation13 + $0xf0] sm:$0xff]  }
 0x27b   :  { %v1704_v63 = vpop.f32.mrf.mxu0  ;;  %v1983_v50 = vmax.f32 %v1967_v44, 0.0  ;;  %v1981_v12 = vmax.f32 %v1965_v16, 0.0 }
 0x27c   :  { %v1966_v59 = vadd.f32 %v9858_v51, %v1943_v25  ;;  %v1948_v30 = vadd.f32 %v8133_v56, %v1745_v57  ;;  %v1743_v20 = vadd.f32 %v1704_v63, %v1539_v40  ;;  %v2019_v38 = vsel %vm264_vm0, %v2017_v36, %v2018_v37 }
 0x27d   :  { %v1984_v39 = vmax.f32 %v1968_v8, 0.0  ;;  %v8102_v4 = vpop.f32.mrf.mxu0  ;;  %v2034_v29 = vsel %vm2010_vm4, %v9884_v58, %v2019_v38  ;;  %v1542_v56 = vadd.f32 %v9832_v5, %v9848_v33  ;;  %v1563_v38 = vadd.f32 %v9834_v42, %v9850_v15 }
 0x27e   :  { %v1982_v41 = vmax.f32 %v1966_v59, 0.0  ;;  %v1946_v14 = vadd.f32 %v1907_v55, %v1743_v20  ;;  %v1746_v53 = vadd.f32 %v8102_v4, %v1550_v26  ;;  %8183 = vmatprep.mubr.bf16.mxu1 %v2034_v29  ;;  %v1971_v48 = vadd.f32 %v9858_v51, %v1948_v30  ;;  %v1923_v55 = vpop.f32.mrf.mxu1 }
 0x27f   :  { %v9905_v45 = vpack.c.bf16 %v1984_v39, %v1983_v50  ;;  %v1707_v0 = vpop.f32.mrf.mxu0  ;;  %v2075_v26 = vsel %vm2010_vm4, %v9884_v58, %v2058_v34 }
 0x280   :  { %v9908_v28 = vpack.c.bf16 %v1982_v41, %v1981_v12  ;;  %v1949_v13 = vadd.f32 %v8134_v18, %v1746_v53  ;;  %v1744_v1 = vadd.f32 %v1707_v0, %v1542_v56  ;;  %v1969_v5 = vadd.f32 %v9858_v51, %v1946_v14  ;;  %v9924_v44 = vpop.f32.mrf.mxu1  ;;  %v8400_v53 = vld [vmem:[#allocation13 + $0xb0] sm:$0xff]  }
 0x281   :  { %v9914_v47 = vpop.f32.mrf.mxu0  ;;  %v1987_v18 = vmax.f32 %v1971_v48, 0.0  ;;  %v2022_v9 = vrot.slane %v9905_v45, 1  ;;  %v2061_v40 = vrot.slane %v9905_v45, 7  ;;  %v2104_v4 = vrot.slane %v2075_v26, 2 }
 0x282   :  { %v1972_v33 = vadd.f32 %v9858_v51, %v1949_v13  ;;  %v2020_v21 = vrot.slane %v9908_v28, 1  ;;  %v1947_v35 = vadd.f32 %v1910_v10, %v1744_v1  ;;  %v2059_v11 = vrot.slane %v9908_v28, 7  ;;  %v1926_v58 = vpop.f32.mrf.mxu1  ;;  %v8403_v1 = vld [vmem:[#allocation13 + $0xe0] sm:$0xff]  }
 0x283   :  { %v1720_v49 = vpop.f32.mrf.mxu0  ;;  %v1985_v57 = vmax.f32 %v1969_v5, 0.0  ;;  %v2752_v52 = vrot.slane %v9908_v28, 4 }
 0x284   :  { %v1988_v43 = vmax.f32 %v1972_v33, 0.0  ;;  %v1747_v6 = vadd.f32 %v1720_v49, %v1555_v19  ;;  %v2021_v22 = vsel %vm264_vm0, %v2018_v37, %v2020_v21  ;;  %v1970_v16 = vadd.f32 %v9858_v51, %v1947_v35  ;;  %v8402_v49 = vld [vmem:[#allocation13 + $0xa8] sm:$0xff]  }
 0x285   :  { %v8106_v32 = vpop.f32.mrf.mxu0  ;;  %v9930_v10 = vsel %vm2010_vm4, %v9876_v7, %v2021_v22  ;;  %v2023_v54 = vsel %vm264_vm0, %v2020_v21, %v2022_v9  ;;  %v2060_v25 = vsel %vm2057_vm5, %v2058_v34, %v2059_v11  ;;  %v2062_v20 = vsel %vm2057_vm5, %v2059_v11, %v2061_v40 }
 0x286   :  { %v9934_v36 = vpack.c.bf16 %v1988_v43, %v1987_v18  ;;  %v1950_v37 = vadd.f32 %v1923_v55, %v1747_v6  ;;  %8184 = vmatmul.mubr.bf16.vlgmr.msra.gmra.mxu1 %v9930_v10  ;;  %v1986_v8 = vmax.f32 %v1970_v16, 0.0  ;;  %v9944_v59 = vsel %vm2010_vm4, %v9908_v28, %v2023_v54 }
 0x287   :  { %8224 = vmatpush3.bf16.msra.mxu1 %v9816_v60  ;;  %v1723_v63 = vpop.f32.mrf.mxu0  ;;  %v2076_v30 = vsel %vm2010_vm4, %v9876_v7, %v2060_v25  ;;  %8187 = vmatprep.mubr.bf16.mxu1 %v9944_v59  ;;  %v8401_v60 = vld [vmem:[#allocation13 + $0xe8] sm:$0xff]   ;;  %v2077_v12 = vsel %vm2010_vm4, %v9908_v28, %v2062_v20  ;;  %v1566_v7 = vadd.f32 %v9842_v31, %v9854_v17  ;;  %v8404_v25 = vld [vmem:[#allocation13 + $0xa0] sm:$0xff]   ;;  %v2407_v26 = vrot.slane %v9944_v59, 2 }
 0x288   :  { %v1748_v50 = vadd.f32 %v1723_v63, %v1558_v46  ;;  %8225 = vmatprep.subr.bf16.mxu1 %v8399_v3  ;;  %v9953_v39 = vpack.c.bf16 %v1986_v8, %v1985_v57  ;;  %v2105_v29 = vrot.slane %v2076_v30, 2  ;;  %v1973_v41 = vadd.f32 %v9858_v51, %v1950_v37  ;;  %v8407_v8 = vld [vmem:[#allocation13 + $0xd0] sm:$0xff]  }
 0x289   :  { %v2107_v15 = vrot.slane %v2077_v12, 2  ;;  %v9964_v48 = vrot.slane %v9934_v36, 1  ;;  %v1750_v13 = vadd.f32 %v8106_v32, %v1566_v7  ;;  %v2065_v5 = vrot.slane %v9934_v36, 7  ;;  %v8409_v12 = vld [vmem:[#allocation13 + $0xc8] sm:$0xff]  }
 0x28a   :  { %v1951_v42 = vadd.f32 %v1926_v58, %v1748_v50  ;;  %v2106_v14 = vsel %vm948_vm1, %v2104_v4, %v2105_v29  ;;  %v2024_v56 = vrot.slane %v9953_v39, 1  ;;  %v2063_v0 = vrot.slane %v9953_v39, 7 }
 0x28b   :  { %8226 = vmatpush3.bf16.msra.mxu1 %v8399_v3  ;;  %8155 = vmatprep.mubr.bf16.mxu0 %v2106_v14  ;;  %v2108_v31 = vsel %vm948_vm1, %v2105_v29, %v2107_v15  ;;  %v1989_v33 = vmax.f32 %v1973_v41, 0.0  ;;  %v8405_v3 = vld [vmem:[#allocation13 + $0xd8] sm:$0xff]   ;;  %v2755_v20 = vrot.slane %v9953_v39, 4  ;;  %v2757_v4 = vrot.slane %v9934_v36, 4 }
 0x28c   :  { %v1974_v19 = vadd.f32 %v9858_v51, %v1951_v42  ;;  %8227 = vmatprep.subr.bf16.mxu1 %v8401_v60  ;;  %8156 = vmatmul.mubr.bf16.vlgmr.msra.gmra.mxu0 %v2108_v31  ;;  %v2025_v17 = vsel %vm264_vm0, %v2022_v9, %v2024_v56  ;;  %v2027_v46 = vsel %vm264_vm0, %v2024_v56, %v9964_v48  ;;  %v2406_v29 = vrot.slane %v9930_v10, 2 }
 0x28d   :  { %v2064_v55 = vsel %vm2057_vm5, %v2061_v40, %v2063_v0  ;;  %8196 = vmatpush3.bf16.msra.mxu0 %v9819_v61  ;;  %v9978_v34 = vsel %vm2010_vm4, %v9905_v45, %v2025_v17  ;;  %v9983_v18 = vsel %vm2010_vm4, %v9953_v39, %v2027_v46  ;;  %v2066_v61 = vsel %vm2057_vm5, %v2063_v0, %v2065_v5  ;;  %v8412_v46 = vld [vmem:[#allocation13 + $0x80] sm:$0xff]  }
 0x28e   :  { %v1990_v21 = vmax.f32 %v1974_v19, 0.0  ;;  %8197 = vmatprep.subr.bf16.mxu0 %v8400_v53  ;;  %8188 = vmatmul.mubr.bf16.gmra.mxu1 %v9978_v34  ;;  %v2078_v35 = vsel %vm2010_vm4, %v9905_v45, %v2064_v55  ;;  %v1749_v9 = vadd.f32 %v9914_v47, %v1563_v38  ;;  %v2079_v6 = vsel %vm2010_vm4, %v9953_v39, %v2066_v61  ;;  %v8406_v38 = vld [vmem:[#allocation13 + $0x98] sm:$0xff]  }
 0x28f   :  { %8228 = vmatpush3.bf16.msra.mxu1 %v8401_v60  ;;  %8191 = vmatprep.mubr.bf16.mxu1 %v9983_v18  ;;  %v2109_v43 = vrot.slane %v2078_v35, 2  ;;  %v2111_v22 = vrot.slane %v2079_v6, 2  ;;  %v1953_v40 = vadd.f32 %v9924_v44, %v1750_v13  ;;  %v2409_v32 = vrot.slane %v9978_v34, 2  ;;  %v8410_v13 = vld [vmem:[#allocation13 + $0x88] sm:$0xff]   ;;  %v8414_v34 = vld [vmem:[#allocation13 + $0x130] sm:$0xff]  }
 0x290   :  { %v9991_v11 = vpack.c.bf16 %v1990_v21, %v1989_v33  ;;  %8229 = vmatprep.subr.bf16.mxu1 %v8403_v1  ;;  %v1952_v57 = vadd.f32 %v9898_v2, %v1749_v9  ;;  %v2039_v2 = vsel %vm2010_vm4, %v9934_v36, %v9964_v48  ;;  %v2408_v10 = vsel %vm948_vm1, %v2406_v29, %v2407_v26 }
 0x291   :  { %8198 = vmatpush3.bf16.msra.mxu0 %v8400_v53  ;;  %v2110_v16 = vsel %vm948_vm1, %v2107_v15, %v2109_v43  ;;  %v2112_v54 = vsel %vm948_vm1, %v2109_v43, %v2111_v22  ;;  %v1976_v63 = vadd.f32 %v9858_v51, %v1953_v40  ;;  %v2410_v59 = vsel %vm948_vm1, %v2407_v26, %v2409_v32  ;;  %v8408_v15 = vld [vmem:[#allocation13 + $0x90] sm:$0xff]   ;;  %v8411_v53 = vld [vmem:[#allocation13 + $0xc0] sm:$0xff]   ;;  %v8415_v43 = vld [vmem:[#allocation13 + $0x128] sm:$0xff]  }
 0x292   :  { %v2067_v47 = vrot.slane %v9991_v11, 7  ;;  %8159 = vmatprep.mubr.bf16.mxu0 %v2110_v16  ;;  %8199 = vmatprep.subr.bf16.mxu0 %v8402_v49  ;;  %v2759_v50 = vrot.slane %v9991_v11, 4  ;;  %v1975_v60 = vadd.f32 %v9858_v51, %v1952_v57  ;;  %v2377_v7 = vrot.slane %v9991_v11, 1  ;;  %v8417_v40 = vld [vmem:[#allocation13 + $0x118] sm:$0xff]  }
 0x293   :  { %8230 = vmatpush3.bf16.msra.mxu1 %v8403_v1  ;;  %v1992_v41 = vmax.f32 %v1976_v63, 0.0  ;;  %v10026_v51 = vsel %vm2751_vm6, %v2755_v20, %v2757_v4  ;;  %v2411_v17 = vrot.slane %v9983_v18, 2  ;;  %v2753_v16 = vrot.slane %v9905_v45, 4 }
 0x294   :  { %v2068_v37 = vsel %vm2057_vm5, %v2065_v5, %v2067_v47  ;;  %8160 = vmatmul.mubr.bf16.gmra.mxu0 %v2112_v54  ;;  %8231 = vmatprep.subr.bf16.mxu1 %v8405_v3  ;;  %v10031_v42 = vsel %vm2751_vm6, %v2757_v4, %v2759_v50  ;;  %v1991_v14 = vmax.f32 %v1975_v60, 0.0  ;;  %v2378_v56 = vsel %vm264_vm0, %v9964_v48, %v2377_v7  ;;  %v8413_v5 = vld [vmem:[#allocation13 + $0x138] sm:$0xff]   ;;  %v8418_v47 = vld [vmem:[#allocation13 + $0x110] sm:$0xff]   ;;  %v8419_v54 = vld [vmem:[#allocation13 + $0x108] sm:$0xff]  }
 0x295   :  { %v2080_v44 = vsel %vm2010_vm4, %v9934_v36, %v2068_v37  ;;  %8200 = vmatpush3.bf16.msra.mxu0 %v8402_v49  ;;  %v2381_v19 = vsel %vm2010_vm4, %v9934_v36, %v2378_v56  ;;  %v2412_v1 = vsel %vm948_vm1, %v2409_v32, %v2411_v17  ;;  %v2382_v61 = vsel %vm2010_vm4, %v9991_v11, %v2377_v7 }
 0x296   :  { %v2113_v30 = vrot.slane %v2080_v44, 2  ;;  %8201 = vmatprep.subr.bf16.mxu0 %v8404_v25  ;;  %8192 = vmatmul.mubr.bf16.gmra.mxu1 %v2039_v2  ;;  %v10036_v0 = vpack.c.bf16 %v1992_v41, %v1991_v14  ;;  %v2413_v48 = vrot.slane %v2381_v19, 2  ;;  %v2415_v6 = vrot.slane %v2382_v61, 2 }
 0x297   :  { %8232 = vmatpush3.bf16.msra.mxu1 %v8405_v3  ;;  %8239 = vmatprep.mubr.bf16.mxu1 %v2410_v59  ;;  %v2754_v32 = vsel %vm2751_vm6, %v2752_v52, %v2753_v16  ;;  %v2756_v28 = vsel %vm2751_vm6, %v2753_v16, %v2755_v20 }
 0x298   :  { %v2114_v58 = vsel %vm948_vm1, %v2111_v22, %v2113_v30  ;;  %8233 = vmatprep.subr.bf16.mxu1 %v8407_v8  ;;  %v2563_v31 = vrot.slane %v10036_v0, 1  ;;  %v2414_v36 = vsel %vm948_vm1, %v2411_v17, %v2413_v48  ;;  %v8416_v22 = vld [vmem:[#allocation13 + $0x120] sm:$0xff]   ;;  %v2416_v3 = vsel %vm948_vm1, %v2413_v48, %v2415_v6 }
 0x299   :  { %8163 = vmatprep.mubr.bf16.mxu0 %v2114_v58  ;;  %8202 = vmatpush3.bf16.msra.mxu0 %v8404_v25  ;;  %v8420_v25 = vld [vmem:[#allocation13 + $0x100] sm:$0xff]   ;;  %v2761_v45 = vrot.slane %v10036_v0, 4 }
 0x29a   :  { %8203 = vmatprep.subr.bf16.mxu0 %v8406_v38  ;;  %v2564_v55 = vsel %vm264_vm0, %v2377_v7, %v2563_v31  ;;  %v2568_v18 = vsel %vm2010_vm4, %v10036_v0, %v2563_v31 }
 0x29b   :  { %8234 = vmatpush3.bf16.msra.mxu1 %v8407_v8  ;;  %v2567_v33 = vsel %vm2010_vm4, %v9991_v11, %v2564_v55  ;;  %v2590_v35 = vrot.slane %v2568_v18, 2  ;;  %v2762_v57 = vsel %vm2751_vm6, %v2759_v50, %v2761_v45 }
 0x29c   :  { %8164 = vmatmul.mubr.bf16.gmra.mxu0 %v2113_v30  ;;  %8235 = vmatprep.subr.bf16.mxu1 %v8409_v12  ;;  %v2588_v21 = vrot.slane %v2567_v33, 2 }
 0x29d   :  { %8204 = vmatpush3.bf16.msra.mxu0 %v8406_v38  ;;  %8211 = vmatprep.mubr.bf16.mxu0 %v2408_v10 }
 0x29e   :  { %8205 = vmatprep.subr.bf16.mxu0 %v8408_v15  ;;  %v2589_v49 = vsel %vm948_vm1, %v2413_v48, %v2588_v21  ;;  %v2591_v9 = vsel %vm948_vm1, %v2588_v21, %v2590_v35 }
 0x29f   :  { %8236 = vmatpush3.bf16.msra.mxu1 %v8409_v12 }
 0x2a0   :  { %8237 = vmatprep.subr.bf16.mxu1 %v8411_v53 }
 0x2a1   :  { %8206 = vmatpush3.bf16.msra.mxu0 %v8408_v15 }
 0x2a2   :  { %8207 = vmatprep.subr.bf16.mxu0 %v8410_v13 }
 0x2a3   :  { %8238 = vmatpush3.bf16.msra.mxu1 %v8411_v53 }
 0x2a5   :  { %8208 = vmatpush3.bf16.msra.mxu0 %v8410_v13 }
 0x2a6   :  { %8209 = vmatprep.subr.bf16.mxu0 %v8412_v46  ;;  %8240 = vmatmul.mubr.bf16.vlgmr.msra.gmra.mxu1 %v2412_v1 }
 0x2a7   :  { %8243 = vmatprep.mubr.bf16.mxu1 %v2414_v36 }
 0x2a9   :  { %8210 = vmatpush3.bf16.msra.mxu0 %v8412_v46 }
 0x2aa   :  { %8251 = vmatprep.subr.bf16.mxu0 %v8413_v5 }
 0x2ac   :  { %8212 = vmatmul.mubr.bf16.vlgmr.msra.gmra.mxu0 %v2410_v59 }
 0x2ad   :  { %8215 = vmatprep.mubr.bf16.mxu0 %v2412_v1  ;;  %8252 = vmatpush3.bf16.msra.mxu0 %v8413_v5 }
 0x2ae   :  { %8244 = vmatmul.mubr.bf16.gmra.mxu1 %v2589_v49  ;;  %8253 = vmatprep.subr.bf16.mxu0 %v8414_v34 }
 0x2af   :  { %8247 = vmatprep.mubr.bf16.mxu1 %v2591_v9 }
 0x2b1   :  { %8254 = vmatpush3.bf16.msra.mxu0 %v8414_v34 }
 0x2b2   :  { %8255 = vmatprep.subr.bf16.mxu0 %v8415_v43 }
 0x2b4   :  { %8216 = vmatmul.mubr.bf16.gmra.mxu0 %v2414_v36 }
 0x2b5   :  { %8219 = vmatprep.mubr.bf16.mxu0 %v2416_v3  ;;  %8256 = vmatpush3.bf16.msra.mxu0 %v8415_v43 }
 0x2b6   :  { %8248 = vmatmul.mubr.bf16.gmra.mxu1 %v2590_v35  ;;  %8257 = vmatprep.subr.bf16.mxu0 %v8416_v22 }
 0x2b9   :  { %8258 = vmatpush3.bf16.msra.mxu0 %v8416_v22 }
 0x2ba   :  { %8259 = vmatprep.subr.bf16.mxu0 %v8417_v40 }
 0x2bc   :  { %8220 = vmatmul.mubr.bf16.gmra.mxu0 %v2415_v6 }
 0x2bd   :  { %8260 = vmatpush3.bf16.msra.mxu0 %v8417_v40  ;;  %8267 = vmatprep.mubr.bf16.mxu0 %v2754_v32 }
 0x2be   :  { %8261 = vmatprep.subr.bf16.mxu0 %v8418_v47 }
 0x2c1   :  { %8262 = vmatpush3.bf16.msra.mxu0 %v8418_v47 }
 0x2c2   :  { %8263 = vmatprep.subr.bf16.mxu0 %v8419_v54 }
 0x2c5   :  { %8264 = vmatpush3.bf16.msra.mxu0 %v8419_v54 }
 0x2c6   :  { %8265 = vmatprep.subr.bf16.mxu0 %v8420_v25 }
 0x2c9   :  { %8266 = vmatpush3.bf16.msra.mxu0 %v8420_v25 }
 0x2cc   :  { %8268 = vmatmul.mubr.bf16.vlgmr.msra.gmra.mxu0 %v2756_v28 }
 0x2cd   :  { %8271 = vmatprep.mubr.bf16.mxu0 %v10026_v51 }
 0x2d4   :  { %8272 = vmatmul.mubr.bf16.gmra.mxu0 %v10031_v42 }
 0x2d5   :  { %8275 = vmatprep.mubr.bf16.mxu0 %v2762_v57 }
 0x2dc   :  { %8276 = vmatmul.mubr.bf16.gmra.mxu0 %v2761_v45 }
 0x2dd   :  { %9256 = shalt.err (!%p9253_p2)  }
 0x2de   :  { %147 = dma.hbm_to_vmem [thread:$0]  %s10282_s7, 53248, %s145_s8, [#allocation4] }
 0x2df   :  { %s9265_s21 = scalar_lea.vmem %s157_s4, 4096  ;;  %p9270_p4 = scmp.lt.s32.totalorder %s157_s4, %s157_s4 }
 0x2e0   :  { %p9266_p3 = scmp.ne.s32.totalorder %s157_s4, %s9265_s21  ;;  %p9271_p5 = scmp.lt.s32.totalorder %s9265_s21, %s9265_s21 }
 0x2e2   :  { %p9272_p6 = por %p9271_p5, %p9270_p4 }
 0x2e4   :  { %p9273_p7 = pnand %p9272_p6, %p9266_p3 }
 0x2e6   :  { %9276 = shalt.err (!%p9273_p7)  }
 0x2e7   :  { %159 = dma.hbm_to_vmem [thread:$0]  %s10284_s9, 4096, %s157_s4, [#allocation4 + $0x1] }
 0x346   :  { %v8185_v39 = vpop.f32.mrf.mxu1 }
 0x348   :  { %v2331_v11 = vpop.f32.mrf.mxu1 }
 0x34a   :  { %v8186_v37 = vpop.f32.mrf.mxu1 }
 0x34c   :  { %v2334_v26 = vpop.f32.mrf.mxu1  ;;  %v8157_v44 = vpop.f32.mrf.mxu0 }
 0x34d   :  { %v2340_v8 = vadd.f32 %v8185_v39, %v8157_v44  ;;  %v10084_v44 = vld [vmem:[#allocation14] ss:$0 sm:$0xff] }
 0x34e   :  { %v2203_v63 = vpop.f32.mrf.mxu0  ;;  %v8189_v2 = vpop.f32.mrf.mxu1 }
 0x34f   :  { %v2332_v30 = vadd.f32 %v2331_v11, %v2203_v63 }
 0x350   :  { %v8158_v20 = vpop.f32.mrf.mxu0  ;;  %v2347_v59 = vpop.f32.mrf.mxu1 }
 0x351   :  { %v2343_v38 = vadd.f32 %v8186_v37, %v8158_v20 }
 0x352   :  { %v2206_v50 = vpop.f32.mrf.mxu0  ;;  %v8190_v60 = vpop.f32.mrf.mxu1 }
 0x353   :  { %v2335_v58 = vadd.f32 %v2334_v26, %v2206_v50 }
 0x354   :  { %v8161_v4 = vpop.f32.mrf.mxu0  ;;  %v2350_v29 = vpop.f32.mrf.mxu1 }
 0x355   :  { %v2356_v12 = vadd.f32 %v8189_v2, %v8161_v4 }
 0x356   :  { %v2219_v7 = vpop.f32.mrf.mxu0  ;;  %v8193_v41 = vpop.f32.mrf.mxu1 }
 0x357   :  { %v2348_v51 = vadd.f32 %v2347_v59, %v2219_v7 }
 0x358   :  { %v8162_v42 = vpop.f32.mrf.mxu0  ;;  %v10078_v15 = vpop.f32.mrf.mxu1 }
 0x359   :  { %v2359_v14 = vadd.f32 %v8190_v60, %v8162_v42 }
 0x35a   :  { %v2222_v10 = vpop.f32.mrf.mxu0  ;;  %v8194_v53 = vpop.f32.mrf.mxu1 }
 0x35b   :  { %v2351_v56 = vadd.f32 %v2350_v29, %v2222_v10 }
 0x35c   :  { %v8165_v0 = vpop.f32.mrf.mxu0  ;;  %v10080_v17 = vpop.f32.mrf.mxu1 }
 0x35d   :  { %v2372_v13 = vadd.f32 %v8193_v41, %v8165_v0 }
 0x35e   :  { %v2235_v19 = vpop.f32.mrf.mxu0 }
 0x360   :  { %v8166_v31 = vpop.f32.mrf.mxu0 }
 0x362   :  { %v10082_v55 = vpop.f32.mrf.mxu0 }
 0x366   :  { %v8241_v46 = vpop.f32.mrf.mxu1 }
 0x368   :  { %v2677_v48 = vpop.f32.mrf.mxu1 }
 0x36a   :  { %v8242_v1 = vpop.f32.mrf.mxu1 }
 0x36c   :  { %v8213_v36 = vpop.f32.mrf.mxu0  ;;  %v2680_v5 = vpop.f32.mrf.mxu1 }
 0x36d   :  { %v2553_v54 = vadd.f32 %v8213_v36, %v2340_v8 }
 0x36e   :  { %v2505_v33 = vpop.f32.mrf.mxu0  ;;  %v8245_v21 = vpop.f32.mrf.mxu1 }
 0x36f   :  { %v2551_v25 = vadd.f32 %v2505_v33, %v2332_v30  ;;  %v2725_v57 = vadd.f32 %v8241_v46, %v2553_v54 }
 0x370   :  { %v8214_v18 = vpop.f32.mrf.mxu0  ;;  %v2693_v34 = vpop.f32.mrf.mxu1 }
 0x371   :  { %v2554_v45 = vadd.f32 %v8214_v18, %v2343_v38  ;;  %v2723_v26 = vadd.f32 %v2677_v48, %v2551_v25  ;;  %v2364_v48 = vadd.f32 %v10078_v15, %v2235_v19 }
 0x372   :  { %v2508_v35 = vpop.f32.mrf.mxu0  ;;  %v8246_v49 = vpop.f32.mrf.mxu1 }
 0x373   :  { %v2552_v11 = vadd.f32 %v2508_v35, %v2335_v58  ;;  %v2726_v59 = vadd.f32 %v8242_v1, %v2554_v45 }
 0x374   :  { %v8217_v61 = vpop.f32.mrf.mxu0  ;;  %v2696_v9 = vpop.f32.mrf.mxu1 }
 0x375   :  { %v2557_v2 = vadd.f32 %v8217_v61, %v2356_v12  ;;  %v2724_v8 = vadd.f32 %v2680_v5, %v2552_v11 }
 0x376   :  { %v2521_v43 = vpop.f32.mrf.mxu0  ;;  %v8249_v6 = vpop.f32.mrf.mxu1 }
 0x377   :  { %v2555_v50 = vadd.f32 %v2521_v43, %v2348_v51  ;;  %v2729_v42 = vadd.f32 %v8245_v21, %v2557_v2 }
 0x378   :  { %v8218_v22 = vpop.f32.mrf.mxu0  ;;  %v2709_v3 = vpop.f32.mrf.mxu1 }
 0x379   :  { %v2558_v30 = vadd.f32 %v8218_v22, %v2359_v14  ;;  %v2727_v0 = vadd.f32 %v2693_v34, %v2555_v50 }
 0x37a   :  { %v2524_v40 = vpop.f32.mrf.mxu0  ;;  %v8250_v52 = vpop.f32.mrf.mxu1 }
 0x37b   :  { %v2556_v10 = vadd.f32 %v2524_v40, %v2351_v56  ;;  %v2730_v14 = vadd.f32 %v8246_v49, %v2558_v30  ;;  %v2367_v40 = vadd.f32 %v10080_v17, %v10082_v55 }
 0x37c   :  { %v8221_v16 = vpop.f32.mrf.mxu0 }
 0x37d   :  { %v2561_v1 = vadd.f32 %v8221_v16, %v2372_v13  ;;  %v2728_v22 = vadd.f32 %v2696_v9, %v2556_v10 }
 0x37e   :  { %v2537_v47 = vpop.f32.mrf.mxu0 }
 0x37f   :  { %v2559_v61 = vadd.f32 %v2537_v47, %v2364_v48  ;;  %v2733_v52 = vadd.f32 %v8249_v6, %v2561_v1 }
 0x380   :  { %v8222_v32 = vpop.f32.mrf.mxu0 }
 0x381   :  { %v2731_v47 = vadd.f32 %v2709_v3, %v2559_v61 }
 0x382   :  { %v2540_v28 = vpop.f32.mrf.mxu0 }
 0x383   :  { %v2560_v16 = vadd.f32 %v2540_v28, %v2367_v40 }
 0x38c   :  { %v8269_v39 = vpop.f32.mrf.mxu0 }
 0x38d   :  { %v2899_v37 = vadd.f32 %v8269_v39, %v2725_v57 }
 0x38e   :  { %v2851_v63 = vpop.f32.mrf.mxu0 }
 0x38f   :  { %v2897_v20 = vadd.f32 %v2851_v63, %v2723_v26  ;;  %v2917_v4 = vadd.f32 %v10084_v44, %v2899_v37  ;;  %v2712_v26 = vpop.f32.mrf.mxu1 }
 0x390   :  { %v8270_v60 = vpop.f32.mrf.mxu0  ;;  %v2732_v28 = vadd.f32 %v2712_v26, %v2560_v16 }
 0x391   :  { %v2900_v29 = vadd.f32 %v8270_v60, %v2726_v59  ;;  %v2915_v38 = vadd.f32 %v10084_v44, %v2897_v20  ;;  %v2928_v12 = vmax.f32 %v2917_v4, 0.0 }
 0x392   :  { %v2854_v7 = vpop.f32.mrf.mxu0 }
 0x393   :  { %v2918_v58 = vadd.f32 %v10084_v44, %v2900_v29  ;;  %v2898_v41 = vadd.f32 %v2854_v7, %v2724_v8  ;;  %v2926_v5 = vmax.f32 %v2915_v38, 0.0 }
 0x394   :  { %v8273_v53 = vpop.f32.mrf.mxu0 }
 0x395   :  { %v2929_v31 = vmax.f32 %v2918_v58, 0.0  ;;  %v2916_v51 = vadd.f32 %v10084_v44, %v2898_v41  ;;  %v2903_v46 = vadd.f32 %v8273_v53, %v2729_v42 }
 0x396   :  { %v2867_v36 = vpop.f32.mrf.mxu0 }
 0x397   :  { %v10091_v33 = vpack.c.bf16 %v2929_v31, %v2928_v12  ;;  %v2927_v18 = vmax.f32 %v2916_v51, 0.0  ;;  %v2901_v35 = vadd.f32 %v2867_v36, %v2727_v0  ;;  %v2921_v34 = vadd.f32 %v10084_v44, %v2903_v46 }
 0x398   :  { %v8274_v21 = vpop.f32.mrf.mxu0 }
 0x399   :  { %v10093_v56 = vpack.c.bf16 %v2927_v18, %v2926_v5  ;;  %v2904_v43 = vadd.f32 %v8274_v21, %v2730_v14  ;;  %v2919_v15 = vadd.f32 %v10084_v44, %v2901_v35  ;;  %v2932_v54 = vmax.f32 %v2921_v34, 0.0 }
 0x39a   :  { %v2870_v13 = vpop.f32.mrf.mxu0 }
 0x39b   :  { %v2922_v19 = vadd.f32 %v10084_v44, %v2904_v43  ;;  %v2902_v49 = vadd.f32 %v2870_v13, %v2728_v22  ;;  %v2930_v39 = vmax.f32 %v2919_v15, 0.0 }
 0x39c   :  { %v8277_v32 = vpop.f32.mrf.mxu0 }
 0x39d   :  { %v2933_v25 = vmax.f32 %v2922_v19, 0.0  ;;  %v2920_v45 = vadd.f32 %v10084_v44, %v2902_v49  ;;  %v2907_v57 = vadd.f32 %v8277_v32, %v2733_v52 }
 0x39e   :  { %v2883_v9 = vpop.f32.mrf.mxu0 }
 0x39f   :  { %v10101_v11 = vpack.c.bf16 %v2933_v25, %v2932_v54  ;;  %v2931_v17 = vmax.f32 %v2920_v45, 0.0  ;;  %v2925_v55 = vadd.f32 %v10084_v44, %v2907_v57  ;;  %v2905_v37 = vadd.f32 %v2883_v9, %v2731_v47 }
 0x3a0   :  { %v8278_v63 = vpop.f32.mrf.mxu0 }
 0x3a1   :  { %v10104_v2 = vpack.c.bf16 %v2931_v17, %v2930_v39  ;;  %v2936_v6 = vmax.f32 %v2925_v55, 0.0  ;;  %v2923_v59 = vadd.f32 %v10084_v44, %v2905_v37 }
 0x3a2   :  { %v2886_v3 = vpop.f32.mrf.mxu0 }
 0x3a3   :  { %v10106_v20 = vpack.c.bf16 %v2936_v6, %v2936_v6  ;;  %v2906_v50 = vadd.f32 %v2886_v3, %v2732_v28  ;;  %v2934_v4 = vmax.f32 %v2923_v59, 0.0 }
 0x3a5   :  { %v2924_v60 = vadd.f32 %v10084_v44, %v2906_v50 }
 0x3a7   :  { %v2935_v29 = vmax.f32 %v2924_v60, 0.0 }
 0x3a9   :  { %v10110_v8 = vpack.c.bf16 %v2935_v29, %v2934_v4 }
 0x3aa   :  { %9307 = dma.done.wait [#allocation4], 53248 }
 0x3ab   :  { %9308 = vsyncadd [#allocation4], 4294914048  ;;  %3212 = vmatprep.mubr.bf16.mxu1 %v9323_v23  ;;  %3253 = vmatprep.mubr.bf16.mxu0 %v9323_v23  ;;  %v8421_v30 = vld [vmem:[#allocation2 + $0x1e4] ss:$16 sps:$4 sm:$0xff]   ;;  %v8423_v7 = vld [vmem:[#allocation2 + $0x1ec] ss:$16 sps:$4 sm:$0xff]  }
 0x3ac   :  { %3180 = vmatprep.subr.bf16.mxu1 %v8421_v30  ;;  %v8425_v38 = vld [vmem:[#allocation2 + $0x1e0] ss:$16 sps:$4 sm:$0xff]   ;;  %v8426_v58 = vld [vmem:[#allocation2 + $0x1e8] ss:$16 sps:$4 sm:$0xff]   ;;  %3221 = vmatprep.subr.bf16.mxu0 %v8423_v7  ;;  %v8427_v41 = vld [vmem:[#allocation2 + $0x1c4] ss:$16 sps:$4 sm:$0xff]  }
 0x3ad   :  { %3181 = vmatpush1.bf16.msra.mxu1 %v8425_v38  ;;  %3222 = vmatpush1.bf16.msra.mxu0 %v8426_v58  ;;  %v8429_v44 = vld [vmem:[#allocation2 + $0x1cc] ss:$16 sps:$4 sm:$0xff]   ;;  %v8431_v42 = vld [vmem:[#allocation2 + $0x1c0] ss:$16 sps:$4 sm:$0xff]   ;;  %v8432_v10 = vld [vmem:[#allocation2 + $0x1c8] ss:$16 sps:$4 sm:$0xff]  }
 0x3ae   :  { %3182 = vmatprep.subr.bf16.mxu1 %v8427_v41  ;;  %3223 = vmatprep.subr.bf16.mxu0 %v8429_v44  ;;  %v8433_v53 = vld [vmem:[#allocation2 + $0x1a4] ss:$16 sps:$4 sm:$0xff]   ;;  %v8435_v0 = vld [vmem:[#allocation2 + $0x1ac] ss:$16 sps:$4 sm:$0xff]   ;;  %v8437_v12 = vld [vmem:[#allocation2 + $0x1a0] ss:$16 sps:$4 sm:$0xff]  }
 0x3af   :  { %v8438_v31 = vld [vmem:[#allocation2 + $0x1a8] ss:$16 sps:$4 sm:$0xff]   ;;  %v8439_v51 = vld [vmem:[#allocation2 + $0x184] ss:$16 sps:$4 sm:$0xff]   ;;  %v8441_v46 = vld [vmem:[#allocation2 + $0x18c] ss:$16 sps:$4 sm:$0xff]  }
 0x3b0   :  { %v8443_v48 = vld [vmem:[#allocation2 + $0x180] ss:$16 sps:$4 sm:$0xff]   ;;  %v8444_v1 = vld [vmem:[#allocation2 + $0x188] ss:$16 sps:$4 sm:$0xff]   ;;  %v8445_v36 = vld [vmem:[#allocation2 + $0x164] ss:$16 sps:$4 sm:$0xff]  }
 0x3b1   :  { %3183 = vmatpush1.bf16.msra.mxu1 %v8431_v42  ;;  %3224 = vmatpush1.bf16.msra.mxu0 %v8432_v10  ;;  %v8447_v14 = vld [vmem:[#allocation2 + $0x16c] ss:$16 sps:$4 sm:$0xff]   ;;  %v8449_v5 = vld [vmem:[#allocation2 + $0x160] ss:$16 sps:$4 sm:$0xff]   ;;  %v8450_v18 = vld [vmem:[#allocation2 + $0x168] ss:$16 sps:$4 sm:$0xff]  }
 0x3b2   :  { %3184 = vmatprep.subr.bf16.mxu1 %v8433_v53  ;;  %3225 = vmatprep.subr.bf16.mxu0 %v8435_v0  ;;  %v8451_v35 = vld [vmem:[#allocation2 + $0x144] ss:$16 sps:$4 sm:$0xff]   ;;  %v8453_v61 = vld [vmem:[#allocation2 + $0x14c] ss:$16 sps:$4 sm:$0xff]   ;;  %v8455_v21 = vld [vmem:[#allocation2 + $0x140] ss:$16 sps:$4 sm:$0xff]  }
 0x3b3   :  { %v8456_v34 = vld [vmem:[#allocation2 + $0x148] ss:$16 sps:$4 sm:$0xff]   ;;  %v8457_v43 = vld [vmem:[#allocation2 + $0x124] ss:$16 sps:$4 sm:$0xff]   ;;  %v8459_v22 = vld [vmem:[#allocation2 + $0x12c] ss:$16 sps:$4 sm:$0xff]  }
 0x3b4   :  { %v8461_v40 = vld [vmem:[#allocation2 + $0x120] ss:$16 sps:$4 sm:$0xff]   ;;  %v8462_v15 = vld [vmem:[#allocation2 + $0x128] ss:$16 sps:$4 sm:$0xff]   ;;  %v8463_v13 = vld [vmem:[#allocation2 + $0x104] ss:$16 sps:$4 sm:$0xff]  }
 0x3b5   :  { %3185 = vmatpush1.bf16.msra.mxu1 %v8437_v12  ;;  %3226 = vmatpush1.bf16.msra.mxu0 %v8438_v31  ;;  %v2949_v19 = vrot.slane %v10093_v56, 1  ;;  %v8465_v49 = vld [vmem:[#allocation2 + $0x10c] ss:$16 sps:$4 sm:$0xff]   ;;  %v8467_v52 = vld [vmem:[#allocation2 + $0x100] ss:$16 sps:$4 sm:$0xff]  }
 0x3b6   :  { %3186 = vmatprep.subr.bf16.mxu1 %v8439_v51  ;;  %3227 = vmatprep.subr.bf16.mxu0 %v8441_v46  ;;  %v8468_v16 = vld [vmem:[#allocation2 + $0x108] ss:$16 sps:$4 sm:$0xff]   ;;  %v8471_v47 = vld [vmem:[#allocation2 + $0xe4] ss:$16 sps:$4 sm:$0xff]   ;;  %v8474_v54 = vld [vmem:[#allocation2 + $0xec] ss:$16 sps:$4 sm:$0xff]  }
 0x3b7   :  { %v10118_v32 = vsel %vm9863_vm3, %v10093_v56, %v2949_v19  ;;  %v8469_v45 = vld [vmem:[#allocation2 + $0xe0] ss:$16 sps:$4 sm:$0xff]   ;;  %v8472_v57 = vld [vmem:[#allocation2 + $0xe8] ss:$16 sps:$4 sm:$0xff]   ;;  %v8477_v39 = vld [vmem:[#allocation2 + $0xc4] ss:$16 sps:$4 sm:$0xff]  }
 0x3b8   :  { %v3018_v25 = vrot.slane %v10118_v32, 2  ;;  %v8480_v9 = vld [vmem:[#allocation2 + $0xcc] ss:$16 sps:$4 sm:$0xff]   ;;  %v8475_v17 = vld [vmem:[#allocation2 + $0xc0] ss:$16 sps:$4 sm:$0xff]  }
 0x3b9   :  { %3187 = vmatpush1.bf16.msra.mxu1 %v8443_v48  ;;  %3228 = vmatpush1.bf16.msra.mxu0 %v8444_v1  ;;  %v8478_v55 = vld [vmem:[#allocation2 + $0xc8] ss:$16 sps:$4 sm:$0xff]   ;;  %v8483_v37 = vld [vmem:[#allocation2 + $0xa4] ss:$16 sps:$4 sm:$0xff]   ;;  %v8486_v26 = vld [vmem:[#allocation2 + $0xac] ss:$16 sps:$4 sm:$0xff]  }
 0x3ba   :  { %3188 = vmatprep.subr.bf16.mxu1 %v8445_v36  ;;  %3229 = vmatprep.subr.bf16.mxu0 %v8447_v14  ;;  %v8481_v63 = vld [vmem:[#allocation2 + $0xa0] ss:$16 sps:$4 sm:$0xff]   ;;  %v8484_v6 = vld [vmem:[#allocation2 + $0xa8] ss:$16 sps:$4 sm:$0xff]   ;;  %v8489_v28 = vld [vmem:[#allocation2 + $0x84] ss:$16 sps:$4 sm:$0xff]  }
 0x3bb   :  { %v8492_v3 = vld [vmem:[#allocation2 + $0x8c] ss:$16 sps:$4 sm:$0xff]   ;;  %v8487_v59 = vld [vmem:[#allocation2 + $0x80] ss:$16 sps:$4 sm:$0xff]   ;;  %v8490_v50 = vld [vmem:[#allocation2 + $0x88] ss:$16 sps:$4 sm:$0xff]  }
 0x3bc   :  { %v8495_v60 = vld [vmem:[#allocation2 + $0x64] ss:$16 sps:$4 sm:$0xff]   ;;  %v8498_v4 = vld [vmem:[#allocation2 + $0x6c] ss:$16 sps:$4 sm:$0xff]   ;;  %v8493_v29 = vld [vmem:[#allocation2 + $0x60] ss:$16 sps:$4 sm:$0xff]  }
 0x3bd   :  { %3189 = vmatpush1.bf16.msra.mxu1 %v8449_v5  ;;  %3230 = vmatpush1.bf16.msra.mxu0 %v8450_v18  ;;  %v8496_v30 = vld [vmem:[#allocation2 + $0x68] ss:$16 sps:$4 sm:$0xff]   ;;  %v8501_v7 = vld [vmem:[#allocation2 + $0x44] ss:$16 sps:$4 sm:$0xff]   ;;  %v8504_v38 = vld [vmem:[#allocation2 + $0x4c] ss:$16 sps:$4 sm:$0xff]  }
 0x3be   :  { %3190 = vmatprep.subr.bf16.mxu1 %v8451_v35  ;;  %3231 = vmatprep.subr.bf16.mxu0 %v8453_v61  ;;  %v8499_v58 = vld [vmem:[#allocation2 + $0x40] ss:$16 sps:$4 sm:$0xff]   ;;  %v8502_v41 = vld [vmem:[#allocation2 + $0x48] ss:$16 sps:$4 sm:$0xff]   ;;  %v8507_v44 = vld [vmem:[#allocation2 + $0x24] ss:$16 sps:$4 sm:$0xff]  }
 0x3bf   :  { %v8510_v42 = vld [vmem:[#allocation2 + $0x2c] ss:$16 sps:$4 sm:$0xff]   ;;  %v8505_v10 = vld [vmem:[#allocation2 + $0x20] ss:$16 sps:$4 sm:$0xff]   ;;  %v8508_v53 = vld [vmem:[#allocation2 + $0x28] ss:$16 sps:$4 sm:$0xff]  }
 0x3c0   :  { %v8513_v0 = vld [vmem:[#allocation2 + $0x4] ss:$16 sps:$4 sm:$0xff]   ;;  %v8516_v12 = vld [vmem:[#allocation2 + $0xc] ss:$16 sps:$4 sm:$0xff]   ;;  %v8511_v31 = vld [vmem:[#allocation2] ss:$16 sps:$4 sm:$0xff]  }
 0x3c1   :  { %3191 = vmatpush1.bf16.msra.mxu1 %v8455_v21  ;;  %3232 = vmatpush1.bf16.msra.mxu0 %v8456_v34  ;;  %v8514_v51 = vld [vmem:[#allocation2 + $0x8] ss:$16 sps:$4 sm:$0xff]   ;;  %v8519_v46 = vld [vmem:[#allocation2 + $0x2e4] ss:$16 sps:$4 sm:$0xff]   ;;  %v8522_v48 = vld [vmem:[#allocation2 + $0x2ec] ss:$16 sps:$4 sm:$0xff]  }
 0x3c2   :  { %3192 = vmatprep.subr.bf16.mxu1 %v8457_v43  ;;  %3233 = vmatprep.subr.bf16.mxu0 %v8459_v22  ;;  %v8517_v1 = vld [vmem:[#allocation2 + $0x2e0] ss:$16 sps:$4 sm:$0xff]   ;;  %v8520_v36 = vld [vmem:[#allocation2 + $0x2e8] ss:$16 sps:$4 sm:$0xff]   ;;  %v8525_v14 = vld [vmem:[#allocation2 + $0x2c4] ss:$16 sps:$4 sm:$0xff]  }
 0x3c3   :  { %v8528_v5 = vld [vmem:[#allocation2 + $0x2cc] ss:$16 sps:$4 sm:$0xff]   ;;  %v8523_v18 = vld [vmem:[#allocation2 + $0x2c0] ss:$16 sps:$4 sm:$0xff]   ;;  %v8526_v35 = vld [vmem:[#allocation2 + $0x2c8] ss:$16 sps:$4 sm:$0xff]  }
 0x3c4   :  { %v8531_v61 = vld [vmem:[#allocation2 + $0x2a4] ss:$16 sps:$4 sm:$0xff]   ;;  %v8534_v21 = vld [vmem:[#allocation2 + $0x2ac] ss:$16 sps:$4 sm:$0xff]   ;;  %v8529_v34 = vld [vmem:[#allocation2 + $0x2a0] ss:$16 sps:$4 sm:$0xff]  }
 0x3c5   :  { %3193 = vmatpush1.bf16.msra.mxu1 %v8461_v40  ;;  %3234 = vmatpush1.bf16.msra.mxu0 %v8462_v15  ;;  %v8532_v43 = vld [vmem:[#allocation2 + $0x2a8] ss:$16 sps:$4 sm:$0xff]   ;;  %v8537_v22 = vld [vmem:[#allocation2 + $0x284] ss:$16 sps:$4 sm:$0xff]   ;;  %v8540_v40 = vld [vmem:[#allocation2 + $0x28c] ss:$16 sps:$4 sm:$0xff]  }
 0x3c6   :  { %3194 = vmatprep.subr.bf16.mxu1 %v8463_v13  ;;  %3235 = vmatprep.subr.bf16.mxu0 %v8465_v49  ;;  %v8535_v15 = vld [vmem:[#allocation2 + $0x280] ss:$16 sps:$4 sm:$0xff]   ;;  %v8538_v13 = vld [vmem:[#allocation2 + $0x288] ss:$16 sps:$4 sm:$0xff]   ;;  %v8543_v19 = vld [vmem:[#allocation2 + $0x264] ss:$16 sps:$4 sm:$0xff]  }
 0x3c7   :  { %v8546_v49 = vld [vmem:[#allocation2 + $0x26c] ss:$16 sps:$4 sm:$0xff]  }
 0x3c9   :  { %3195 = vmatpush1.bf16.msra.mxu1 %v8467_v52  ;;  %3236 = vmatpush1.bf16.msra.mxu0 %v8468_v16  ;;  %v8541_v52 = vld [vmem:[#allocation2 + $0x260] ss:$16 sps:$4 sm:$0xff]   ;;  %v8544_v16 = vld [vmem:[#allocation2 + $0x268] ss:$16 sps:$4 sm:$0xff]  }
 0x3ca   :  { %3422 = vmatprep.subr.bf16.mxu1 %v8471_v47  ;;  %3463 = vmatprep.subr.bf16.mxu0 %v8474_v54  ;;  %v8552_v47 = vld [vmem:[#allocation2 + $0x24c] ss:$16 sps:$4 sm:$0xff]   ;;  %v8547_v54 = vld [vmem:[#allocation2 + $0x240] ss:$16 sps:$4 sm:$0xff]  }
 0x3cc   :  { %3213 = vmatmul.mubr.bf16.vlgmr.msra.gmra.mxu1 %v3018_v25  ;;  %3254 = vmatmul.mubr.bf16.vlgmr.msra.gmra.mxu0 %v3018_v25  ;;  %v8550_v25 = vld [vmem:[#allocation2 + $0x248] ss:$16 sps:$4 sm:$0xff]  }
 0x3cd   :  { %3423 = vmatpush1.bf16.msra.mxu1 %v8469_v45  ;;  %3464 = vmatpush1.bf16.msra.mxu0 %v8472_v57  ;;  %v8555_v45 = vld [vmem:[#allocation2 + $0x224] ss:$16 sps:$4 sm:$0xff]   ;;  %v8558_v57 = vld [vmem:[#allocation2 + $0x22c] ss:$16 sps:$4 sm:$0xff]  }
 0x3ce   :  { %3424 = vmatprep.subr.bf16.mxu1 %v8477_v39  ;;  %3465 = vmatprep.subr.bf16.mxu0 %v8480_v9  ;;  %v8553_v39 = vld [vmem:[#allocation2 + $0x220] ss:$16 sps:$4 sm:$0xff]   ;;  %v8556_v9 = vld [vmem:[#allocation2 + $0x228] ss:$16 sps:$4 sm:$0xff]  }
 0x3cf   :  { %3454 = vmatprep.mubr.bf16.mxu1 %v9323_v23  ;;  %3495 = vmatprep.mubr.bf16.mxu0 %v9323_v23 }
 0x3d1   :  { %3425 = vmatpush1.bf16.msra.mxu1 %v8475_v17  ;;  %3466 = vmatpush1.bf16.msra.mxu0 %v8478_v55  ;;  %v8561_v17 = vld [vmem:[#allocation2 + $0x204] ss:$16 sps:$4 sm:$0xff]   ;;  %v3505_v55 = vrot.slane %v10091_v33, 5 }
 0x3d2   :  { %3426 = vmatprep.subr.bf16.mxu1 %v8483_v37  ;;  %3467 = vmatprep.subr.bf16.mxu0 %v8486_v26  ;;  %v8564_v37 = vld [vmem:[#allocation2 + $0x20c] ss:$16 sps:$4 sm:$0xff]   ;;  %v8559_v26 = vld [vmem:[#allocation2 + $0x200] ss:$16 sps:$4 sm:$0xff]  }
 0x3d5   :  { %3427 = vmatpush1.bf16.msra.mxu1 %v8481_v63  ;;  %3468 = vmatpush1.bf16.msra.mxu0 %v8484_v6  ;;  %v8562_v63 = vld [vmem:[#allocation2 + $0x208] ss:$16 sps:$4 sm:$0xff]   ;;  %v3507_v6 = vsel %vm9863_vm3, %v10093_v56, %v3505_v55  ;;  %v8579_v56 = vld [vmem:[#allocation2 + $0x3a4] ss:$16 sps:$4 sm:$0xff]  }
 0x3d6   :  { %3428 = vmatprep.subr.bf16.mxu1 %v8489_v28  ;;  %3469 = vmatprep.subr.bf16.mxu0 %v8492_v3  ;;  %v8567_v28 = vld [vmem:[#allocation2 + $0x3e4] ss:$16 sps:$4 sm:$0xff]   ;;  %v8570_v3 = vld [vmem:[#allocation2 + $0x3ec] ss:$16 sps:$4 sm:$0xff]   ;;  %v8634_v55 = vld [vmem:[#allocation2 + $0x488] ss:$16 sps:$4 sm:$0xff]  }
 0x3d9   :  { %3429 = vmatpush1.bf16.msra.mxu1 %v8487_v59  ;;  %3470 = vmatpush1.bf16.msra.mxu0 %v8490_v50  ;;  %v3542_v59 = vrot.slane %v3507_v6, 4  ;;  %v8565_v50 = vld [vmem:[#allocation2 + $0x3e0] ss:$16 sps:$4 sm:$0xff]   ;;  %v8640_v6 = vld [vmem:[#allocation2 + $0x468] ss:$16 sps:$4 sm:$0xff]  }
 0x3da   :  { %3430 = vmatprep.subr.bf16.mxu1 %v8495_v60  ;;  %3471 = vmatprep.subr.bf16.mxu0 %v8498_v4  ;;  %v8568_v60 = vld [vmem:[#allocation2 + $0x3e8] ss:$16 sps:$4 sm:$0xff]   ;;  %v8573_v4 = vld [vmem:[#allocation2 + $0x3c4] ss:$16 sps:$4 sm:$0xff]  }
 0x3dd   :  { %3431 = vmatpush1.bf16.msra.mxu1 %v8493_v29  ;;  %3472 = vmatpush1.bf16.msra.mxu0 %v8496_v30  ;;  %v8576_v29 = vld [vmem:[#allocation2 + $0x3cc] ss:$16 sps:$4 sm:$0xff]   ;;  %v8571_v30 = vld [vmem:[#allocation2 + $0x3c0] ss:$16 sps:$4 sm:$0xff]  }
 0x3de   :  { %3432 = vmatprep.subr.bf16.mxu1 %v8501_v7  ;;  %3473 = vmatprep.subr.bf16.mxu0 %v8504_v38  ;;  %v8574_v7 = vld [vmem:[#allocation2 + $0x3c8] ss:$16 sps:$4 sm:$0xff]   ;;  %v8582_v38 = vld [vmem:[#allocation2 + $0x3ac] ss:$16 sps:$4 sm:$0xff]  }
 0x3e1   :  { %3433 = vmatpush1.bf16.msra.mxu1 %v8499_v58  ;;  %3474 = vmatpush1.bf16.msra.mxu0 %v8502_v41  ;;  %v8577_v58 = vld [vmem:[#allocation2 + $0x3a0] ss:$16 sps:$4 sm:$0xff]   ;;  %v8580_v41 = vld [vmem:[#allocation2 + $0x3a8] ss:$16 sps:$4 sm:$0xff]  }
 0x3e2   :  { %3434 = vmatprep.subr.bf16.mxu1 %v8507_v44  ;;  %3475 = vmatprep.subr.bf16.mxu0 %v8510_v42  ;;  %v8585_v44 = vld [vmem:[#allocation2 + $0x384] ss:$16 sps:$4 sm:$0xff]   ;;  %v8588_v42 = vld [vmem:[#allocation2 + $0x38c] ss:$16 sps:$4 sm:$0xff]  }
 0x3e5   :  { %3435 = vmatpush1.bf16.msra.mxu1 %v8505_v10  ;;  %3476 = vmatpush1.bf16.msra.mxu0 %v8508_v53  ;;  %v8583_v10 = vld [vmem:[#allocation2 + $0x380] ss:$16 sps:$4 sm:$0xff]   ;;  %v8586_v53 = vld [vmem:[#allocation2 + $0x388] ss:$16 sps:$4 sm:$0xff]  }
 0x3e6   :  { %3436 = vmatprep.subr.bf16.mxu1 %v8513_v0  ;;  %3477 = vmatprep.subr.bf16.mxu0 %v8516_v12  ;;  %v8591_v0 = vld [vmem:[#allocation2 + $0x364] ss:$16 sps:$4 sm:$0xff]   ;;  %v8594_v12 = vld [vmem:[#allocation2 + $0x36c] ss:$16 sps:$4 sm:$0xff]  }
 0x3e9   :  { %3437 = vmatpush1.bf16.msra.mxu1 %v8511_v31  ;;  %3478 = vmatpush1.bf16.msra.mxu0 %v8514_v51  ;;  %v8589_v31 = vld [vmem:[#allocation2 + $0x360] ss:$16 sps:$4 sm:$0xff]   ;;  %v8592_v51 = vld [vmem:[#allocation2 + $0x368] ss:$16 sps:$4 sm:$0xff]  }
 0x3ea   :  { %3704 = vmatprep.subr.bf16.mxu1 %v8519_v46  ;;  %3745 = vmatprep.subr.bf16.mxu0 %v8522_v48  ;;  %v8597_v46 = vld [vmem:[#allocation2 + $0x344] ss:$16 sps:$4 sm:$0xff]   ;;  %v8600_v48 = vld [vmem:[#allocation2 + $0x34c] ss:$16 sps:$4 sm:$0xff]  }
 0x3ec   :  { %3455 = vmatmul.mubr.bf16.vlgmr.msra.gmra.mxu1 %v10118_v32  ;;  %3496 = vmatmul.mubr.bf16.vlgmr.msra.gmra.mxu0 %v10118_v32  ;;  %v8549_v32 = vld [vmem:[#allocation2 + $0x244] ss:$16 sps:$4 sm:$0xff]  }
 0x3ed   :  { %3705 = vmatpush1.bf16.msra.mxu1 %v8517_v1  ;;  %3746 = vmatpush1.bf16.msra.mxu0 %v8520_v36  ;;  %v8595_v1 = vld [vmem:[#allocation2 + $0x340] ss:$16 sps:$4 sm:$0xff]   ;;  %v8598_v36 = vld [vmem:[#allocation2 + $0x348] ss:$16 sps:$4 sm:$0xff]  }
 0x3ee   :  { %3706 = vmatprep.subr.bf16.mxu1 %v8525_v14  ;;  %3747 = vmatprep.subr.bf16.mxu0 %v8528_v5  ;;  %v8603_v14 = vld [vmem:[#allocation2 + $0x324] ss:$16 sps:$4 sm:$0xff]   ;;  %v8606_v5 = vld [vmem:[#allocation2 + $0x32c] ss:$16 sps:$4 sm:$0xff]  }
 0x3ef   :  { %3736 = vmatprep.mubr.bf16.mxu1 %v9323_v23  ;;  %3777 = vmatprep.mubr.bf16.mxu0 %v9323_v23 }
 0x3f1   :  { %3707 = vmatpush1.bf16.msra.mxu1 %v8523_v18  ;;  %3748 = vmatpush1.bf16.msra.mxu0 %v8526_v35  ;;  %v8601_v18 = vld [vmem:[#allocation2 + $0x320] ss:$16 sps:$4 sm:$0xff]   ;;  %v8604_v35 = vld [vmem:[#allocation2 + $0x328] ss:$16 sps:$4 sm:$0xff]  }
 0x3f2   :  { %3708 = vmatprep.subr.bf16.mxu1 %v8531_v61  ;;  %3749 = vmatprep.subr.bf16.mxu0 %v8534_v21  ;;  %v8609_v61 = vld [vmem:[#allocation2 + $0x304] ss:$16 sps:$4 sm:$0xff]   ;;  %v3790_v21 = vrot.slane %v10091_v33, 1 }
 0x3f5   :  { %3709 = vmatpush1.bf16.msra.mxu1 %v8529_v34  ;;  %3750 = vmatpush1.bf16.msra.mxu0 %v8532_v43  ;;  %v8612_v34 = vld [vmem:[#allocation2 + $0x30c] ss:$16 sps:$4 sm:$0xff]   ;;  %v8607_v43 = vld [vmem:[#allocation2 + $0x300] ss:$16 sps:$4 sm:$0xff]  }
 0x3f6   :  { %3710 = vmatprep.subr.bf16.mxu1 %v8537_v22  ;;  %3751 = vmatprep.subr.bf16.mxu0 %v8540_v40  ;;  %v8610_v22 = vld [vmem:[#allocation2 + $0x308] ss:$16 sps:$4 sm:$0xff]   ;;  %v10137_v40 = vsel %vm9863_vm3, %v10091_v33, %v3790_v21  ;;  %v8627_v33 = vld [vmem:[#allocation2 + $0x4a4] ss:$16 sps:$4 sm:$0xff]   ;;  %v8690_v21 = vld [vmem:[#allocation2 + $0x56c] ss:$16 sps:$4 sm:$0xff]  }
 0x3f9   :  { %3711 = vmatpush1.bf16.msra.mxu1 %v8535_v15  ;;  %3752 = vmatpush1.bf16.msra.mxu0 %v8538_v13  ;;  %v8615_v15 = vld [vmem:[#allocation2 + $0x4e4] ss:$16 sps:$4 sm:$0xff]   ;;  %v8618_v13 = vld [vmem:[#allocation2 + $0x4ec] ss:$16 sps:$4 sm:$0xff]  }
 0x3fa   :  { %3712 = vmatprep.subr.bf16.mxu1 %v8543_v19  ;;  %3753 = vmatprep.subr.bf16.mxu0 %v8546_v49  ;;  %v3827_v19 = vrot.slane %v10137_v40, 2  ;;  %v8613_v49 = vld [vmem:[#allocation2 + $0x4e0] ss:$16 sps:$4 sm:$0xff]  }
 0x3fd   :  { %3713 = vmatpush1.bf16.msra.mxu1 %v8541_v52  ;;  %3754 = vmatpush1.bf16.msra.mxu0 %v8544_v16  ;;  %v8616_v52 = vld [vmem:[#allocation2 + $0x4e8] ss:$16 sps:$4 sm:$0xff]   ;;  %v8621_v16 = vld [vmem:[#allocation2 + $0x4c4] ss:$16 sps:$4 sm:$0xff]  }
 0x3fe   :  { %3714 = vmatprep.subr.bf16.mxu1 %v8549_v32  ;;  %3755 = vmatprep.subr.bf16.mxu0 %v8552_v47  ;;  %v8624_v32 = vld [vmem:[#allocation2 + $0x4cc] ss:$16 sps:$4 sm:$0xff]   ;;  %v8619_v47 = vld [vmem:[#allocation2 + $0x4c0] ss:$16 sps:$4 sm:$0xff]  }
 0x401   :  { %3715 = vmatpush1.bf16.msra.mxu1 %v8547_v54  ;;  %3756 = vmatpush1.bf16.msra.mxu0 %v8550_v25  ;;  %v8622_v54 = vld [vmem:[#allocation2 + $0x4c8] ss:$16 sps:$4 sm:$0xff]   ;;  %v8630_v25 = vld [vmem:[#allocation2 + $0x4ac] ss:$16 sps:$4 sm:$0xff]  }
 0x402   :  { %3716 = vmatprep.subr.bf16.mxu1 %v8555_v45  ;;  %3757 = vmatprep.subr.bf16.mxu0 %v8558_v57  ;;  %v8625_v45 = vld [vmem:[#allocation2 + $0x4a0] ss:$16 sps:$4 sm:$0xff]   ;;  %v8628_v57 = vld [vmem:[#allocation2 + $0x4a8] ss:$16 sps:$4 sm:$0xff]  }
 0x405   :  { %3717 = vmatpush1.bf16.msra.mxu1 %v8553_v39  ;;  %3758 = vmatpush1.bf16.msra.mxu0 %v8556_v9  ;;  %v8633_v39 = vld [vmem:[#allocation2 + $0x484] ss:$16 sps:$4 sm:$0xff]   ;;  %v8636_v9 = vld [vmem:[#allocation2 + $0x48c] ss:$16 sps:$4 sm:$0xff]  }
 0x406   :  { %3718 = vmatprep.subr.bf16.mxu1 %v8561_v17  ;;  %3759 = vmatprep.subr.bf16.mxu0 %v8564_v37  ;;  %v8631_v17 = vld [vmem:[#allocation2 + $0x480] ss:$16 sps:$4 sm:$0xff]   ;;  %v8639_v37 = vld [vmem:[#allocation2 + $0x464] ss:$16 sps:$4 sm:$0xff]  }
 0x409   :  { %3719 = vmatpush1.bf16.msra.mxu1 %v8559_v26  ;;  %3760 = vmatpush1.bf16.msra.mxu0 %v8562_v63  ;;  %v8642_v26 = vld [vmem:[#allocation2 + $0x46c] ss:$16 sps:$4 sm:$0xff]   ;;  %v8637_v63 = vld [vmem:[#allocation2 + $0x460] ss:$16 sps:$4 sm:$0xff]  }
 0x40a   :  { %3989 = vmatprep.subr.bf16.mxu1 %v8567_v28  ;;  %4030 = vmatprep.subr.bf16.mxu0 %v8570_v3  ;;  %v8645_v28 = vld [vmem:[#allocation2 + $0x444] ss:$16 sps:$4 sm:$0xff]   ;;  %v8648_v3 = vld [vmem:[#allocation2 + $0x44c] ss:$16 sps:$4 sm:$0xff]  }
 0x40c   :  { %3737 = vmatmul.mubr.bf16.vlgmr.msra.gmra.mxu1 %v3542_v59  ;;  %3778 = vmatmul.mubr.bf16.vlgmr.msra.gmra.mxu0 %v3542_v59  ;;  %v8643_v59 = vld [vmem:[#allocation2 + $0x440] ss:$16 sps:$4 sm:$0xff]  }
 0x40d   :  { %3990 = vmatpush1.bf16.msra.mxu1 %v8565_v50  ;;  %4031 = vmatpush1.bf16.msra.mxu0 %v8568_v60  ;;  %v8646_v50 = vld [vmem:[#allocation2 + $0x448] ss:$16 sps:$4 sm:$0xff]   ;;  %v8651_v60 = vld [vmem:[#allocation2 + $0x424] ss:$16 sps:$4 sm:$0xff]  }
 0x40e   :  { %3991 = vmatprep.subr.bf16.mxu1 %v8573_v4  ;;  %4032 = vmatprep.subr.bf16.mxu0 %v8576_v29  ;;  %v8654_v4 = vld [vmem:[#allocation2 + $0x42c] ss:$16 sps:$4 sm:$0xff]   ;;  %v8649_v29 = vld [vmem:[#allocation2 + $0x420] ss:$16 sps:$4 sm:$0xff]  }
 0x40f   :  { %4021 = vmatprep.mubr.bf16.mxu1 %v9323_v23  ;;  %4062 = vmatprep.mubr.bf16.mxu0 %v9323_v23 }
 0x411   :  { %3992 = vmatpush1.bf16.msra.mxu1 %v8571_v30  ;;  %4033 = vmatpush1.bf16.msra.mxu0 %v8574_v7  ;;  %v8652_v30 = vld [vmem:[#allocation2 + $0x428] ss:$16 sps:$4 sm:$0xff]   ;;  %v8657_v7 = vld [vmem:[#allocation2 + $0x404] ss:$16 sps:$4 sm:$0xff]  }
 0x412   :  { %3993 = vmatprep.subr.bf16.mxu1 %v8579_v56  ;;  %4034 = vmatprep.subr.bf16.mxu0 %v8582_v38  ;;  %v8660_v56 = vld [vmem:[#allocation2 + $0x40c] ss:$16 sps:$4 sm:$0xff]   ;;  %v8655_v38 = vld [vmem:[#allocation2 + $0x400] ss:$16 sps:$4 sm:$0xff]  }
 0x415   :  { %3994 = vmatpush1.bf16.msra.mxu1 %v8577_v58  ;;  %4035 = vmatpush1.bf16.msra.mxu0 %v8580_v41  ;;  %v8658_v58 = vld [vmem:[#allocation2 + $0x408] ss:$16 sps:$4 sm:$0xff]   ;;  %v8663_v41 = vld [vmem:[#allocation2 + $0x5e4] ss:$16 sps:$4 sm:$0xff]  }
 0x416   :  { %3995 = vmatprep.subr.bf16.mxu1 %v8585_v44  ;;  %4036 = vmatprep.subr.bf16.mxu0 %v8588_v42  ;;  %v8666_v44 = vld [vmem:[#allocation2 + $0x5ec] ss:$16 sps:$4 sm:$0xff]   ;;  %v4108_v42 = vrot.slane %v10137_v40, 4 }
 0x417   :  { %v8696_v40 = vld [vmem:[#allocation2 + $0x54c] ss:$16 sps:$4 sm:$0xff]  }
 0x419   :  { %3996 = vmatpush1.bf16.msra.mxu1 %v8583_v10  ;;  %4037 = vmatpush1.bf16.msra.mxu0 %v8586_v53  ;;  %v8661_v10 = vld [vmem:[#allocation2 + $0x5e0] ss:$16 sps:$4 sm:$0xff]   ;;  %v8664_v53 = vld [vmem:[#allocation2 + $0x5e8] ss:$16 sps:$4 sm:$0xff]  }
 0x41a   :  { %3997 = vmatprep.subr.bf16.mxu1 %v8591_v0  ;;  %4038 = vmatprep.subr.bf16.mxu0 %v8594_v12  ;;  %v8669_v0 = vld [vmem:[#allocation2 + $0x5c4] ss:$16 sps:$4 sm:$0xff]   ;;  %v8672_v12 = vld [vmem:[#allocation2 + $0x5cc] ss:$16 sps:$4 sm:$0xff]  }
 0x41d   :  { %3998 = vmatpush1.bf16.msra.mxu1 %v8589_v31  ;;  %4039 = vmatpush1.bf16.msra.mxu0 %v8592_v51  ;;  %v8667_v31 = vld [vmem:[#allocation2 + $0x5c0] ss:$16 sps:$4 sm:$0xff]   ;;  %v8670_v51 = vld [vmem:[#allocation2 + $0x5c8] ss:$16 sps:$4 sm:$0xff]  }
 0x41e   :  { %3999 = vmatprep.subr.bf16.mxu1 %v8597_v46  ;;  %4040 = vmatprep.subr.bf16.mxu0 %v8600_v48  ;;  %v8675_v46 = vld [vmem:[#allocation2 + $0x5a4] ss:$16 sps:$4 sm:$0xff]   ;;  %v8678_v48 = vld [vmem:[#allocation2 + $0x5ac] ss:$16 sps:$4 sm:$0xff]  }
 0x421   :  { %4000 = vmatpush1.bf16.msra.mxu1 %v8595_v1  ;;  %4041 = vmatpush1.bf16.msra.mxu0 %v8598_v36  ;;  %v8673_v1 = vld [vmem:[#allocation2 + $0x5a0] ss:$16 sps:$4 sm:$0xff]   ;;  %v8676_v36 = vld [vmem:[#allocation2 + $0x5a8] ss:$16 sps:$4 sm:$0xff]  }
 0x422   :  { %4001 = vmatprep.subr.bf16.mxu1 %v8603_v14  ;;  %4042 = vmatprep.subr.bf16.mxu0 %v8606_v5  ;;  %v8681_v14 = vld [vmem:[#allocation2 + $0x584] ss:$16 sps:$4 sm:$0xff]   ;;  %v8684_v5 = vld [vmem:[#allocation2 + $0x58c] ss:$16 sps:$4 sm:$0xff]  }
 0x425   :  { %4002 = vmatpush1.bf16.msra.mxu1 %v8601_v18  ;;  %4043 = vmatpush1.bf16.msra.mxu0 %v8604_v35  ;;  %v8679_v18 = vld [vmem:[#allocation2 + $0x580] ss:$16 sps:$4 sm:$0xff]   ;;  %v8682_v35 = vld [vmem:[#allocation2 + $0x588] ss:$16 sps:$4 sm:$0xff]  }
 0x426   :  { %4003 = vmatprep.subr.bf16.mxu1 %v8609_v61  ;;  %4044 = vmatprep.subr.bf16.mxu0 %v8612_v34  ;;  %v8687_v61 = vld [vmem:[#allocation2 + $0x564] ss:$16 sps:$4 sm:$0xff]   ;;  %v8685_v34 = vld [vmem:[#allocation2 + $0x560] ss:$16 sps:$4 sm:$0xff]  }
 0x429   :  { %4004 = vmatpush1.bf16.msra.mxu1 %v8607_v43  ;;  %4045 = vmatpush1.bf16.msra.mxu0 %v8610_v22  ;;  %v8688_v43 = vld [vmem:[#allocation2 + $0x568] ss:$16 sps:$4 sm:$0xff]   ;;  %v8693_v22 = vld [vmem:[#allocation2 + $0x544] ss:$16 sps:$4 sm:$0xff]  }
 0x42a   :  { %4270 = vmatprep.subr.bf16.mxu1 %v8615_v15  ;;  %4311 = vmatprep.subr.bf16.mxu0 %v8618_v13  ;;  %v8691_v15 = vld [vmem:[#allocation2 + $0x540] ss:$16 sps:$4 sm:$0xff]   ;;  %v8694_v13 = vld [vmem:[#allocation2 + $0x548] ss:$16 sps:$4 sm:$0xff]  }
 0x42c   :  { %4022 = vmatmul.mubr.bf16.vlgmr.msra.gmra.mxu1 %v3827_v19  ;;  %4063 = vmatmul.mubr.bf16.vlgmr.msra.gmra.mxu0 %v3827_v19  ;;  %v8699_v19 = vld [vmem:[#allocation2 + $0x524] ss:$16 sps:$4 sm:$0xff]  }
 0x42d   :  { %4271 = vmatpush1.bf16.msra.mxu1 %v8613_v49  ;;  %4312 = vmatpush1.bf16.msra.mxu0 %v8616_v52  ;;  %v8702_v49 = vld [vmem:[#allocation2 + $0x52c] ss:$16 sps:$4 sm:$0xff]   ;;  %v8697_v52 = vld [vmem:[#allocation2 + $0x520] ss:$16 sps:$4 sm:$0xff]  }
 0x42e   :  { %4272 = vmatprep.subr.bf16.mxu1 %v8621_v16  ;;  %4313 = vmatprep.subr.bf16.mxu0 %v8624_v32  ;;  %v8700_v16 = vld [vmem:[#allocation2 + $0x528] ss:$16 sps:$4 sm:$0xff]   ;;  %v8705_v32 = vld [vmem:[#allocation2 + $0x504] ss:$16 sps:$4 sm:$0xff]  }
 0x42f   :  { %4302 = vmatprep.mubr.bf16.mxu1 %v9323_v23  ;;  %4343 = vmatprep.mubr.bf16.mxu0 %v9323_v23 }
 0x431   :  { %4273 = vmatpush1.bf16.msra.mxu1 %v8619_v47  ;;  %4314 = vmatpush1.bf16.msra.mxu0 %v8622_v54  ;;  %v4357_v47 = vrot.slane %v10104_v2, 1  ;;  %v8708_v54 = vld [vmem:[#allocation2 + $0x50c] ss:$16 sps:$4 sm:$0xff]  }
 0x432   :  { %4274 = vmatprep.subr.bf16.mxu1 %v8627_v33  ;;  %4315 = vmatprep.subr.bf16.mxu0 %v8630_v25  ;;  %v8703_v33 = vld [vmem:[#allocation2 + $0x500] ss:$16 sps:$4 sm:$0xff]   ;;  %v8706_v25 = vld [vmem:[#allocation2 + $0x508] ss:$16 sps:$4 sm:$0xff]  }
 0x435   :  { %4275 = vmatpush1.bf16.msra.mxu1 %v8625_v45  ;;  %4316 = vmatpush1.bf16.msra.mxu0 %v8628_v57  ;;  %v10149_v45 = vsel %vm9863_vm3, %v10104_v2, %v4357_v47  ;;  %v8711_v57 = vld [vmem:[#allocation2 + $0x6e4] ss:$16 sps:$4 sm:$0xff]   ;;  %v8772_v47 = vld [vmem:[#allocation2 + $0x7a8] ss:$16 sps:$4 sm:$0xff]  }
 0x436   :  { %4276 = vmatprep.subr.bf16.mxu1 %v8633_v39  ;;  %4317 = vmatprep.subr.bf16.mxu0 %v8636_v9  ;;  %v8714_v39 = vld [vmem:[#allocation2 + $0x6ec] ss:$16 sps:$4 sm:$0xff]   ;;  %v4394_v9 = vrot.slane %v10149_v45, 2 }
 0x439   :  { %4277 = vmatpush1.bf16.msra.mxu1 %v8631_v17  ;;  %4318 = vmatpush1.bf16.msra.mxu0 %v8634_v55  ;;  %v8709_v17 = vld [vmem:[#allocation2 + $0x6e0] ss:$16 sps:$4 sm:$0xff]   ;;  %v8712_v55 = vld [vmem:[#allocation2 + $0x6e8] ss:$16 sps:$4 sm:$0xff]  }
 0x43a   :  { %4278 = vmatprep.subr.bf16.mxu1 %v8639_v37  ;;  %4319 = vmatprep.subr.bf16.mxu0 %v8642_v26  ;;  %v8717_v37 = vld [vmem:[#allocation2 + $0x6c4] ss:$16 sps:$4 sm:$0xff]   ;;  %v8720_v26 = vld [vmem:[#allocation2 + $0x6cc] ss:$16 sps:$4 sm:$0xff]  }
 0x43d   :  { %4279 = vmatpush1.bf16.msra.mxu1 %v8637_v63  ;;  %4320 = vmatpush1.bf16.msra.mxu0 %v8640_v6  ;;  %v8715_v63 = vld [vmem:[#allocation2 + $0x6c0] ss:$16 sps:$4 sm:$0xff]   ;;  %v8718_v6 = vld [vmem:[#allocation2 + $0x6c8] ss:$16 sps:$4 sm:$0xff]  }
 0x43e   :  { %4280 = vmatprep.subr.bf16.mxu1 %v8645_v28  ;;  %4321 = vmatprep.subr.bf16.mxu0 %v8648_v3  ;;  %v8723_v28 = vld [vmem:[#allocation2 + $0x6a4] ss:$16 sps:$4 sm:$0xff]   ;;  %v8726_v3 = vld [vmem:[#allocation2 + $0x6ac] ss:$16 sps:$4 sm:$0xff]  }
 0x441   :  { %4281 = vmatpush1.bf16.msra.mxu1 %v8643_v59  ;;  %4322 = vmatpush1.bf16.msra.mxu0 %v8646_v50  ;;  %v8721_v59 = vld [vmem:[#allocation2 + $0x6a0] ss:$16 sps:$4 sm:$0xff]   ;;  %v8724_v50 = vld [vmem:[#allocation2 + $0x6a8] ss:$16 sps:$4 sm:$0xff]  }
 0x442   :  { %4282 = vmatprep.subr.bf16.mxu1 %v8651_v60  ;;  %4323 = vmatprep.subr.bf16.mxu0 %v8654_v4  ;;  %v8729_v60 = vld [vmem:[#allocation2 + $0x684] ss:$16 sps:$4 sm:$0xff]   ;;  %v8732_v4 = vld [vmem:[#allocation2 + $0x68c] ss:$16 sps:$4 sm:$0xff]  }
 0x445   :  { %4283 = vmatpush1.bf16.msra.mxu1 %v8649_v29  ;;  %4324 = vmatpush1.bf16.msra.mxu0 %v8652_v30  ;;  %v8727_v29 = vld [vmem:[#allocation2 + $0x680] ss:$16 sps:$4 sm:$0xff]   ;;  %v8730_v30 = vld [vmem:[#allocation2 + $0x688] ss:$16 sps:$4 sm:$0xff]  }
 0x446   :  { %4284 = vmatprep.subr.bf16.mxu1 %v8657_v7  ;;  %4325 = vmatprep.subr.bf16.mxu0 %v8660_v56  ;;  %v8735_v7 = vld [vmem:[#allocation2 + $0x664] ss:$16 sps:$4 sm:$0xff]   ;;  %v8738_v56 = vld [vmem:[#allocation2 + $0x66c] ss:$16 sps:$4 sm:$0xff]  }
 0x449   :  { %4285 = vmatpush1.bf16.msra.mxu1 %v8655_v38  ;;  %4326 = vmatpush1.bf16.msra.mxu0 %v8658_v58  ;;  %v8733_v38 = vld [vmem:[#allocation2 + $0x660] ss:$16 sps:$4 sm:$0xff]   ;;  %v8736_v58 = vld [vmem:[#allocation2 + $0x668] ss:$16 sps:$4 sm:$0xff]  }
 0x44a   :  { %4556 = vmatprep.subr.bf16.mxu1 %v8663_v41  ;;  %4597 = vmatprep.subr.bf16.mxu0 %v8666_v44  ;;  %v8741_v41 = vld [vmem:[#allocation2 + $0x644] ss:$16 sps:$4 sm:$0xff]   ;;  %v8744_v44 = vld [vmem:[#allocation2 + $0x64c] ss:$16 sps:$4 sm:$0xff]  }
 0x44c   :  { %4303 = vmatmul.mubr.bf16.vlgmr.msra.gmra.mxu1 %v4108_v42  ;;  %4344 = vmatmul.mubr.bf16.vlgmr.msra.gmra.mxu0 %v4108_v42  ;;  %v8739_v42 = vld [vmem:[#allocation2 + $0x640] ss:$16 sps:$4 sm:$0xff]  }
 0x44d   :  { %4557 = vmatpush1.bf16.msra.mxu1 %v8661_v10  ;;  %4598 = vmatpush1.bf16.msra.mxu0 %v8664_v53  ;;  %v8742_v10 = vld [vmem:[#allocation2 + $0x648] ss:$16 sps:$4 sm:$0xff]   ;;  %v8747_v53 = vld [vmem:[#allocation2 + $0x624] ss:$16 sps:$4 sm:$0xff]  }
 0x44e   :  { %4558 = vmatprep.subr.bf16.mxu1 %v8669_v0  ;;  %4599 = vmatprep.subr.bf16.mxu0 %v8672_v12  ;;  %v8750_v0 = vld [vmem:[#allocation2 + $0x62c] ss:$16 sps:$4 sm:$0xff]   ;;  %v8745_v12 = vld [vmem:[#allocation2 + $0x620] ss:$16 sps:$4 sm:$0xff]  }
 0x44f   :  { %4588 = vmatprep.mubr.bf16.mxu1 %v9323_v23  ;;  %4629 = vmatprep.mubr.bf16.mxu0 %v9323_v23 }
 0x451   :  { %4559 = vmatpush1.bf16.msra.mxu1 %v8667_v31  ;;  %4600 = vmatpush1.bf16.msra.mxu0 %v8670_v51  ;;  %v8748_v31 = vld [vmem:[#allocation2 + $0x628] ss:$16 sps:$4 sm:$0xff]   ;;  %v8753_v51 = vld [vmem:[#allocation2 + $0x604] ss:$16 sps:$4 sm:$0xff]  }
 0x452   :  { %4560 = vmatprep.subr.bf16.mxu1 %v8675_v46  ;;  %4601 = vmatprep.subr.bf16.mxu0 %v8678_v48  ;;  %v8756_v46 = vld [vmem:[#allocation2 + $0x60c] ss:$16 sps:$4 sm:$0xff]   ;;  %v8751_v48 = vld [vmem:[#allocation2 + $0x600] ss:$16 sps:$4 sm:$0xff]  }
 0x455   :  { %4561 = vmatpush1.bf16.msra.mxu1 %v8673_v1  ;;  %4602 = vmatpush1.bf16.msra.mxu0 %v8676_v36  ;;  %v8754_v1 = vld [vmem:[#allocation2 + $0x608] ss:$16 sps:$4 sm:$0xff]   ;;  %v8759_v36 = vld [vmem:[#allocation2 + $0x7e4] ss:$16 sps:$4 sm:$0xff]  }
 0x456   :  { %4562 = vmatprep.subr.bf16.mxu1 %v8681_v14  ;;  %4603 = vmatprep.subr.bf16.mxu0 %v8684_v5  ;;  %v8762_v14 = vld [vmem:[#allocation2 + $0x7ec] ss:$16 sps:$4 sm:$0xff]   ;;  %v4675_v5 = vrot.slane %v10149_v45, 4 }
 0x457   :  { %v8780_v45 = vld [vmem:[#allocation2 + $0x78c] ss:$16 sps:$4 sm:$0xff]  }
 0x459   :  { %4563 = vmatpush1.bf16.msra.mxu1 %v8679_v18  ;;  %4604 = vmatpush1.bf16.msra.mxu0 %v8682_v35  ;;  %v8757_v18 = vld [vmem:[#allocation2 + $0x7e0] ss:$16 sps:$4 sm:$0xff]   ;;  %v8760_v35 = vld [vmem:[#allocation2 + $0x7e8] ss:$16 sps:$4 sm:$0xff]  }
 0x45a   :  { %4564 = vmatprep.subr.bf16.mxu1 %v8687_v61  ;;  %4605 = vmatprep.subr.bf16.mxu0 %v8690_v21  ;;  %v8765_v61 = vld [vmem:[#allocation2 + $0x7c4] ss:$16 sps:$4 sm:$0xff]   ;;  %v8768_v21 = vld [vmem:[#allocation2 + $0x7cc] ss:$16 sps:$4 sm:$0xff]  }
 0x45d   :  { %4565 = vmatpush1.bf16.msra.mxu1 %v8685_v34  ;;  %4606 = vmatpush1.bf16.msra.mxu0 %v8688_v43 }
 0x45e   :  { %4566 = vmatprep.subr.bf16.mxu1 %v8693_v22  ;;  %4607 = vmatprep.subr.bf16.mxu0 %v8696_v40  ;;  %v8763_v22 = vld [vmem:[#allocation2 + $0x7c0] ss:$16 sps:$4 sm:$0xff]   ;;  %v8766_v40 = vld [vmem:[#allocation2 + $0x7c8] ss:$16 sps:$4 sm:$0xff]  }
 0x461   :  { %4567 = vmatpush1.bf16.msra.mxu1 %v8691_v15  ;;  %4608 = vmatpush1.bf16.msra.mxu0 %v8694_v13  ;;  %v8771_v15 = vld [vmem:[#allocation2 + $0x7a4] ss:$16 sps:$4 sm:$0xff]  }
 0x462   :  { %4568 = vmatprep.subr.bf16.mxu1 %v8699_v19  ;;  %4609 = vmatprep.subr.bf16.mxu0 %v8702_v49  ;;  %v8774_v49 = vld [vmem:[#allocation2 + $0x7ac] ss:$16 sps:$4 sm:$0xff]  }
 0x465   :  { %4569 = vmatpush1.bf16.msra.mxu1 %v8697_v52  ;;  %4610 = vmatpush1.bf16.msra.mxu0 %v8700_v16 }
 0x466   :  { %4570 = vmatprep.subr.bf16.mxu1 %v8705_v32  ;;  %4611 = vmatprep.subr.bf16.mxu0 %v8708_v54  ;;  %v8769_v32 = vld [vmem:[#allocation2 + $0x7a0] ss:$16 sps:$4 sm:$0xff]   ;;  %v8777_v54 = vld [vmem:[#allocation2 + $0x784] ss:$16 sps:$4 sm:$0xff]  }
 0x469   :  { %4571 = vmatpush1.bf16.msra.mxu1 %v8703_v33  ;;  %4612 = vmatpush1.bf16.msra.mxu0 %v8706_v25 }
 0x46a   :  { %4837 = vmatprep.subr.bf16.mxu1 %v8711_v57  ;;  %4878 = vmatprep.subr.bf16.mxu0 %v8714_v39  ;;  %v8775_v57 = vld [vmem:[#allocation2 + $0x780] ss:$16 sps:$4 sm:$0xff]   ;;  %v8778_v39 = vld [vmem:[#allocation2 + $0x788] ss:$16 sps:$4 sm:$0xff]  }
 0x46c   :  { %4589 = vmatmul.mubr.bf16.vlgmr.msra.gmra.mxu1 %v4394_v9  ;;  %4630 = vmatmul.mubr.bf16.vlgmr.msra.gmra.mxu0 %v4394_v9  ;;  %v8783_v9 = vld [vmem:[#allocation2 + $0x764] ss:$16 sps:$4 sm:$0xff]  }
 0x46d   :  { %4838 = vmatpush1.bf16.msra.mxu1 %v8709_v17  ;;  %4879 = vmatpush1.bf16.msra.mxu0 %v8712_v55  ;;  %v8786_v17 = vld [vmem:[#allocation2 + $0x76c] ss:$16 sps:$4 sm:$0xff]   ;;  %v8781_v55 = vld [vmem:[#allocation2 + $0x760] ss:$16 sps:$4 sm:$0xff]  }
 0x46e   :  { %4839 = vmatprep.subr.bf16.mxu1 %v8717_v37  ;;  %4880 = vmatprep.subr.bf16.mxu0 %v8720_v26  ;;  %v8784_v37 = vld [vmem:[#allocation2 + $0x768] ss:$16 sps:$4 sm:$0xff]   ;;  %v8789_v26 = vld [vmem:[#allocation2 + $0x744] ss:$16 sps:$4 sm:$0xff]  }
 0x46f   :  { %4869 = vmatprep.mubr.bf16.mxu1 %v9323_v23  ;;  %4910 = vmatprep.mubr.bf16.mxu0 %v9323_v23 }
 0x471   :  { %4840 = vmatpush1.bf16.msra.mxu1 %v8715_v63  ;;  %4881 = vmatpush1.bf16.msra.mxu0 %v8718_v6  ;;  %v8792_v63 = vld [vmem:[#allocation2 + $0x74c] ss:$16 sps:$4 sm:$0xff]   ;;  %v8787_v6 = vld [vmem:[#allocation2 + $0x740] ss:$16 sps:$4 sm:$0xff]  }
 0x472   :  { %4841 = vmatprep.subr.bf16.mxu1 %v8723_v28  ;;  %4882 = vmatprep.subr.bf16.mxu0 %v8726_v3  ;;  %v8790_v28 = vld [vmem:[#allocation2 + $0x748] ss:$16 sps:$4 sm:$0xff]   ;;  %v8795_v3 = vld [vmem:[#allocation2 + $0x724] ss:$16 sps:$4 sm:$0xff]  }
 0x475   :  { %4842 = vmatpush1.bf16.msra.mxu1 %v8721_v59  ;;  %4883 = vmatpush1.bf16.msra.mxu0 %v8724_v50  ;;  %v8798_v59 = vld [vmem:[#allocation2 + $0x72c] ss:$16 sps:$4 sm:$0xff]   ;;  %v8793_v50 = vld [vmem:[#allocation2 + $0x720] ss:$16 sps:$4 sm:$0xff]  }
 0x476   :  { %4843 = vmatprep.subr.bf16.mxu1 %v8729_v60  ;;  %4884 = vmatprep.subr.bf16.mxu0 %v8732_v4  ;;  %v8796_v60 = vld [vmem:[#allocation2 + $0x728] ss:$16 sps:$4 sm:$0xff]   ;;  %v8801_v4 = vld [vmem:[#allocation2 + $0x704] ss:$16 sps:$4 sm:$0xff]  }
 0x479   :  { %4844 = vmatpush1.bf16.msra.mxu1 %v8727_v29  ;;  %4885 = vmatpush1.bf16.msra.mxu0 %v8730_v30  ;;  %v4924_v29 = vrot.slane %v10101_v11, 5  ;;  %v8804_v30 = vld [vmem:[#allocation2 + $0x70c] ss:$16 sps:$4 sm:$0xff]  }
 0x47a   :  { %4845 = vmatprep.subr.bf16.mxu1 %v8735_v7  ;;  %4886 = vmatprep.subr.bf16.mxu0 %v8738_v56  ;;  %v8799_v7 = vld [vmem:[#allocation2 + $0x700] ss:$16 sps:$4 sm:$0xff]   ;;  %v8802_v56 = vld [vmem:[#allocation2 + $0x708] ss:$16 sps:$4 sm:$0xff]  }
 0x47d   :  { %4846 = vmatpush1.bf16.msra.mxu1 %v8733_v38  ;;  %4887 = vmatpush1.bf16.msra.mxu0 %v8736_v58  ;;  %v4926_v38 = vsel %vm9863_vm3, %v10104_v2, %v4924_v29  ;;  %v8807_v58 = vld [vmem:[#allocation2 + $0x8e4] ss:$16 sps:$4 sm:$0xff]  }
 0x47e   :  { %4847 = vmatprep.subr.bf16.mxu1 %v8741_v41  ;;  %4888 = vmatprep.subr.bf16.mxu0 %v8744_v44  ;;  %v8810_v41 = vld [vmem:[#allocation2 + $0x8ec] ss:$16 sps:$4 sm:$0xff]   ;;  %v4961_v44 = vrot.slane %v4926_v38, 6  ;;  %v8861_v29 = vld [vmem:[#allocation2 + $0x9c4] ss:$16 sps:$4 sm:$0xff]  }
 0x481   :  { %4848 = vmatpush1.bf16.msra.mxu1 %v8739_v42  ;;  %4889 = vmatpush1.bf16.msra.mxu0 %v8742_v10  ;;  %v8805_v42 = vld [vmem:[#allocation2 + $0x8e0] ss:$16 sps:$4 sm:$0xff]   ;;  %v8808_v10 = vld [vmem:[#allocation2 + $0x8e8] ss:$16 sps:$4 sm:$0xff]  }
 0x482   :  { %4849 = vmatprep.subr.bf16.mxu1 %v8747_v53  ;;  %4890 = vmatprep.subr.bf16.mxu0 %v8750_v0  ;;  %v8813_v53 = vld [vmem:[#allocation2 + $0x8c4] ss:$16 sps:$4 sm:$0xff]   ;;  %v8816_v0 = vld [vmem:[#allocation2 + $0x8cc] ss:$16 sps:$4 sm:$0xff]  }
 0x485   :  { %4850 = vmatpush1.bf16.msra.mxu1 %v8745_v12  ;;  %4891 = vmatpush1.bf16.msra.mxu0 %v8748_v31  ;;  %v8811_v12 = vld [vmem:[#allocation2 + $0x8c0] ss:$16 sps:$4 sm:$0xff]   ;;  %v8814_v31 = vld [vmem:[#allocation2 + $0x8c8] ss:$16 sps:$4 sm:$0xff]  }
 0x486   :  { %4851 = vmatprep.subr.bf16.mxu1 %v8753_v51  ;;  %4892 = vmatprep.subr.bf16.mxu0 %v8756_v46 }
 0x489   :  { %4852 = vmatpush1.bf16.msra.mxu1 %v8751_v48  ;;  %4893 = vmatpush1.bf16.msra.mxu0 %v8754_v1 }
 0x48a   :  { %5123 = vmatprep.subr.bf16.mxu1 %v8759_v36  ;;  %5164 = vmatprep.subr.bf16.mxu0 %v8762_v14  ;;  %v8819_v14 = vld [vmem:[#allocation2 + $0x8a4] ss:$16 sps:$4 sm:$0xff]  }
 0x48c   :  { %v10155_v34 = vpop.f32.mrf.mxu1  ;;  %v10157_v43 = vpop.f32.mrf.mxu0  ;;  %4870 = vmatmul.mubr.bf16.vlgmr.msra.gmra.mxu1 %v4675_v5  ;;  %4911 = vmatmul.mubr.bf16.vlgmr.msra.gmra.mxu0 %v4675_v5  ;;  %v8822_v5 = vld [vmem:[#allocation2 + $0x8ac] ss:$16 sps:$4 sm:$0xff]  }
 0x48d   :  { %5124 = vmatpush1.bf16.msra.mxu1 %v8757_v18  ;;  %5165 = vmatpush1.bf16.msra.mxu0 %v8760_v35 }
 0x48e   :  { %v10159_v13 = vpop.f32.mrf.mxu1  ;;  %v10161_v19 = vpop.f32.mrf.mxu0  ;;  %5125 = vmatprep.subr.bf16.mxu1 %v8765_v61  ;;  %5166 = vmatprep.subr.bf16.mxu0 %v8768_v21  ;;  %v8817_v61 = vld [vmem:[#allocation2 + $0x8a0] ss:$16 sps:$4 sm:$0xff]   ;;  %v8820_v21 = vld [vmem:[#allocation2 + $0x8a8] ss:$16 sps:$4 sm:$0xff]  }
 0x48f   :  { %5155 = vmatprep.mubr.bf16.mxu1 %v9323_v23  ;;  %5196 = vmatprep.mubr.bf16.mxu0 %v9323_v23 }
 0x490   :  { %v3218_v52 = vpop.f32.mrf.mxu1  ;;  %v3259_v16 = vpop.f32.mrf.mxu0 }
 0x491   :  { %5126 = vmatpush1.bf16.msra.mxu1 %v8763_v22  ;;  %5167 = vmatpush1.bf16.msra.mxu0 %v8766_v40  ;;  %v8831_v52 = vld [vmem:[#allocation2 + $0x864] ss:$16 sps:$4 sm:$0xff]   ;;  %v8834_v16 = vld [vmem:[#allocation2 + $0x86c] ss:$16 sps:$4 sm:$0xff]  }
 0x492   :  { %v3219_v33 = vpop.f32.mrf.mxu1  ;;  %v3260_v25 = vpop.f32.mrf.mxu0  ;;  %5127 = vmatprep.subr.bf16.mxu1 %v8771_v15  ;;  %5168 = vmatprep.subr.bf16.mxu0 %v8774_v49  ;;  %v8825_v15 = vld [vmem:[#allocation2 + $0x884] ss:$16 sps:$4 sm:$0xff]   ;;  %v8826_v49 = vld [vmem:[#allocation2 + $0x888] ss:$16 sps:$4 sm:$0xff]  }
 0x493   :  { %v8840_v33 = vld [vmem:[#allocation2 + $0x84c] ss:$16 sps:$4 sm:$0xff]   ;;  %v8835_v25 = vld [vmem:[#allocation2 + $0x840] ss:$16 sps:$4 sm:$0xff]  }
 0x495   :  { %5128 = vmatpush1.bf16.msra.mxu1 %v8769_v32  ;;  %5169 = vmatpush1.bf16.msra.mxu0 %v8772_v47  ;;  %v8829_v32 = vld [vmem:[#allocation2 + $0x860] ss:$16 sps:$4 sm:$0xff]   ;;  %v8832_v47 = vld [vmem:[#allocation2 + $0x868] ss:$16 sps:$4 sm:$0xff]  }
 0x496   :  { %5129 = vmatprep.subr.bf16.mxu1 %v8777_v54  ;;  %5170 = vmatprep.subr.bf16.mxu0 %v8780_v45  ;;  %v8837_v54 = vld [vmem:[#allocation2 + $0x844] ss:$16 sps:$4 sm:$0xff]   ;;  %v8838_v45 = vld [vmem:[#allocation2 + $0x848] ss:$16 sps:$4 sm:$0xff]  }
 0x499   :  { %5130 = vmatpush1.bf16.msra.mxu1 %v8775_v57  ;;  %5171 = vmatpush1.bf16.msra.mxu0 %v8778_v39  ;;  %v8843_v57 = vld [vmem:[#allocation2 + $0x824] ss:$16 sps:$4 sm:$0xff]   ;;  %v8846_v39 = vld [vmem:[#allocation2 + $0x82c] ss:$16 sps:$4 sm:$0xff]  }
 0x49a   :  { %5131 = vmatprep.subr.bf16.mxu1 %v8783_v9  ;;  %5172 = vmatprep.subr.bf16.mxu0 %v8786_v17  ;;  %v8841_v9 = vld [vmem:[#allocation2 + $0x820] ss:$16 sps:$4 sm:$0xff]   ;;  %v8844_v17 = vld [vmem:[#allocation2 + $0x828] ss:$16 sps:$4 sm:$0xff]  }
 0x49d   :  { %5132 = vmatpush1.bf16.msra.mxu1 %v8781_v55  ;;  %5173 = vmatpush1.bf16.msra.mxu0 %v8784_v37  ;;  %v5209_v55 = vrot.slane %v10101_v11, 1  ;;  %v8849_v37 = vld [vmem:[#allocation2 + $0x804] ss:$16 sps:$4 sm:$0xff]  }
 0x49e   :  { %5133 = vmatprep.subr.bf16.mxu1 %v8789_v26  ;;  %5174 = vmatprep.subr.bf16.mxu0 %v8792_v63  ;;  %v8852_v26 = vld [vmem:[#allocation2 + $0x80c] ss:$16 sps:$4 sm:$0xff]   ;;  %v8847_v63 = vld [vmem:[#allocation2 + $0x800] ss:$16 sps:$4 sm:$0xff]  }
 0x4a1   :  { %5134 = vmatpush1.bf16.msra.mxu1 %v8787_v6  ;;  %5175 = vmatpush1.bf16.msra.mxu0 %v8790_v28  ;;  %v8850_v6 = vld [vmem:[#allocation2 + $0x808] ss:$16 sps:$4 sm:$0xff]   ;;  %v10187_v28 = vsel %vm9863_vm3, %v10101_v11, %v5209_v55 }
 0x4a2   :  { %5135 = vmatprep.subr.bf16.mxu1 %v8795_v3  ;;  %5176 = vmatprep.subr.bf16.mxu0 %v8798_v59  ;;  %v8855_v3 = vld [vmem:[#allocation2 + $0x9e4] ss:$16 sps:$4 sm:$0xff]   ;;  %v8858_v59 = vld [vmem:[#allocation2 + $0x9ec] ss:$16 sps:$4 sm:$0xff]  }
 0x4a5   :  { %5136 = vmatpush1.bf16.msra.mxu1 %v8793_v50  ;;  %5177 = vmatpush1.bf16.msra.mxu0 %v8796_v60  ;;  %v5246_v50 = vrot.slane %v10187_v28, 4  ;;  %v8853_v60 = vld [vmem:[#allocation2 + $0x9e0] ss:$16 sps:$4 sm:$0xff]  }
 0x4a6   :  { %5137 = vmatprep.subr.bf16.mxu1 %v8801_v4  ;;  %5178 = vmatprep.subr.bf16.mxu0 %v8804_v30  ;;  %v8856_v4 = vld [vmem:[#allocation2 + $0x9e8] ss:$16 sps:$4 sm:$0xff]   ;;  %v8864_v30 = vld [vmem:[#allocation2 + $0x9cc] ss:$16 sps:$4 sm:$0xff]  }
 0x4a9   :  { %5138 = vmatpush1.bf16.msra.mxu1 %v8799_v7  ;;  %5179 = vmatpush1.bf16.msra.mxu0 %v8802_v56 }
 0x4aa   :  { %5408 = vmatprep.subr.bf16.mxu1 %v8807_v58  ;;  %5449 = vmatprep.subr.bf16.mxu0 %v8810_v41  ;;  %v8859_v58 = vld [vmem:[#allocation2 + $0x9c0] ss:$16 sps:$4 sm:$0xff]   ;;  %v8862_v41 = vld [vmem:[#allocation2 + $0x9c8] ss:$16 sps:$4 sm:$0xff]  }
 0x4ac   :  { %v3456_v51 = vpop.f32.mrf.mxu1  ;;  %v3497_v46 = vpop.f32.mrf.mxu0  ;;  %5156 = vmatmul.mubr.bf16.vlgmr.msra.gmra.mxu1 %v4961_v44  ;;  %5197 = vmatmul.mubr.bf16.vlgmr.msra.gmra.mxu0 %v4961_v44 }
 0x4ad   :  { %v10170_v2 = vadd.f32 %v3456_v51, %v10155_v34  ;;  %v10173_v48 = vadd.f32 %v3497_v46, %v10157_v43  ;;  %5409 = vmatpush1.bf16.msra.mxu1 %v8805_v42  ;;  %5450 = vmatpush1.bf16.msra.mxu0 %v8808_v10  ;;  %v8867_v10 = vld [vmem:[#allocation2 + $0x9a4] ss:$16 sps:$4 sm:$0xff]   ;;  %v8865_v46 = vld [vmem:[#allocation2 + $0x9a0] ss:$16 sps:$4 sm:$0xff]  }
 0x4ae   :  { %v3458_v1 = vpop.f32.mrf.mxu1  ;;  %v3499_v36 = vpop.f32.mrf.mxu0  ;;  %5410 = vmatprep.subr.bf16.mxu1 %v8813_v53  ;;  %5451 = vmatprep.subr.bf16.mxu0 %v8816_v0  ;;  %v8870_v53 = vld [vmem:[#allocation2 + $0x9ac] ss:$16 sps:$4 sm:$0xff]  }
 0x4af   :  { %v10176_v18 = vadd.f32 %v3458_v1, %v10159_v13  ;;  %v10179_v35 = vadd.f32 %v3499_v36, %v10161_v19  ;;  %5440 = vmatprep.mubr.bf16.mxu1 %v9323_v23  ;;  %5481 = vmatprep.mubr.bf16.mxu0 %v9323_v23  ;;  %v8828_v13 = vld [vmem:[#allocation2 + $0x88c] ss:$16 sps:$4 sm:$0xff]   ;;  %v8823_v19 = vld [vmem:[#allocation2 + $0x880] ss:$16 sps:$4 sm:$0xff]   ;;  %v8873_v36 = vld [vmem:[#allocation2 + $0x984] ss:$16 sps:$4 sm:$0xff]  }
 0x4b0   :  { %v3460_v34 = vpop.f32.mrf.mxu1  ;;  %v3501_v43 = vpop.f32.mrf.mxu0 }
 0x4b1   :  { %5411 = vmatpush1.bf16.msra.mxu1 %v8811_v12  ;;  %5452 = vmatpush1.bf16.msra.mxu0 %v8814_v31  ;;  %v8880_v34 = vld [vmem:[#allocation2 + $0x968] ss:$16 sps:$4 sm:$0xff]   ;;  %v8885_v43 = vld [vmem:[#allocation2 + $0x944] ss:$16 sps:$4 sm:$0xff]  }
 0x4b2   :  { %v3461_v22 = vpop.f32.mrf.mxu1  ;;  %v3502_v40 = vpop.f32.mrf.mxu0  ;;  %5412 = vmatprep.subr.bf16.mxu1 %v8819_v14  ;;  %5453 = vmatprep.subr.bf16.mxu0 %v8822_v5  ;;  %v8876_v14 = vld [vmem:[#allocation2 + $0x98c] ss:$16 sps:$4 sm:$0xff]   ;;  %v8871_v5 = vld [vmem:[#allocation2 + $0x980] ss:$16 sps:$4 sm:$0xff]  }
 0x4b3   :  { %v8888_v22 = vld [vmem:[#allocation2 + $0x94c] ss:$16 sps:$4 sm:$0xff]   ;;  %v8883_v40 = vld [vmem:[#allocation2 + $0x940] ss:$16 sps:$4 sm:$0xff]  }
 0x4b5   :  { %5413 = vmatpush1.bf16.msra.mxu1 %v8817_v61  ;;  %5454 = vmatpush1.bf16.msra.mxu0 %v8820_v21  ;;  %v8882_v61 = vld [vmem:[#allocation2 + $0x96c] ss:$16 sps:$4 sm:$0xff]   ;;  %v8877_v21 = vld [vmem:[#allocation2 + $0x960] ss:$16 sps:$4 sm:$0xff]  }
 0x4b6   :  { %5414 = vmatprep.subr.bf16.mxu1 %v8825_v15  ;;  %5455 = vmatprep.subr.bf16.mxu0 %v8828_v13  ;;  %v8886_v15 = vld [vmem:[#allocation2 + $0x948] ss:$16 sps:$4 sm:$0xff]   ;;  %v8891_v13 = vld [vmem:[#allocation2 + $0x924] ss:$16 sps:$4 sm:$0xff]  }
 0x4b9   :  { %5415 = vmatpush1.bf16.msra.mxu1 %v8823_v19  ;;  %5456 = vmatpush1.bf16.msra.mxu0 %v8826_v49  ;;  %v8894_v19 = vld [vmem:[#allocation2 + $0x92c] ss:$16 sps:$4 sm:$0xff]   ;;  %v8889_v49 = vld [vmem:[#allocation2 + $0x920] ss:$16 sps:$4 sm:$0xff]  }
 0x4ba   :  { %5416 = vmatprep.subr.bf16.mxu1 %v8831_v52  ;;  %5457 = vmatprep.subr.bf16.mxu0 %v8834_v16  ;;  %v8892_v52 = vld [vmem:[#allocation2 + $0x928] ss:$16 sps:$4 sm:$0xff]   ;;  %v8897_v16 = vld [vmem:[#allocation2 + $0x904] ss:$16 sps:$4 sm:$0xff]  }
 0x4bd   :  { %5417 = vmatpush1.bf16.msra.mxu1 %v8829_v32  ;;  %5458 = vmatpush1.bf16.msra.mxu0 %v8832_v47  ;;  %v8900_v32 = vld [vmem:[#allocation2 + $0x90c] ss:$16 sps:$4 sm:$0xff]   ;;  %v8895_v47 = vld [vmem:[#allocation2 + $0x900] ss:$16 sps:$4 sm:$0xff]  }
 0x4be   :  { %5418 = vmatprep.subr.bf16.mxu1 %v8837_v54  ;;  %5459 = vmatprep.subr.bf16.mxu0 %v8840_v33  ;;  %v8898_v54 = vld [vmem:[#allocation2 + $0x908] ss:$16 sps:$4 sm:$0xff]   ;;  %v8903_v33 = vld [vmem:[#allocation2 + $0xae4] ss:$16 sps:$4 sm:$0xff]  }
 0x4c1   :  { %5419 = vmatpush1.bf16.msra.mxu1 %v8835_v25  ;;  %5460 = vmatpush1.bf16.msra.mxu0 %v8838_v45  ;;  %v8906_v25 = vld [vmem:[#allocation2 + $0xaec] ss:$16 sps:$4 sm:$0xff]   ;;  %v5527_v45 = vrot.slane %v10187_v28, 6  ;;  %v8910_v28 = vld [vmem:[#allocation2 + $0xac8] ss:$16 sps:$4 sm:$0xff]  }
 0x4c2   :  { %5420 = vmatprep.subr.bf16.mxu1 %v8843_v57  ;;  %5461 = vmatprep.subr.bf16.mxu0 %v8846_v39  ;;  %v8901_v57 = vld [vmem:[#allocation2 + $0xae0] ss:$16 sps:$4 sm:$0xff]   ;;  %v8904_v39 = vld [vmem:[#allocation2 + $0xae8] ss:$16 sps:$4 sm:$0xff]  }
 0x4c5   :  { %5421 = vmatpush1.bf16.msra.mxu1 %v8841_v9  ;;  %5462 = vmatpush1.bf16.msra.mxu0 %v8844_v17  ;;  %v8909_v9 = vld [vmem:[#allocation2 + $0xac4] ss:$16 sps:$4 sm:$0xff]   ;;  %v8912_v17 = vld [vmem:[#allocation2 + $0xacc] ss:$16 sps:$4 sm:$0xff]  }
 0x4c6   :  { %5422 = vmatprep.subr.bf16.mxu1 %v8849_v37  ;;  %5463 = vmatprep.subr.bf16.mxu0 %v8852_v26 }
 0x4c9   :  { %5423 = vmatpush1.bf16.msra.mxu1 %v8847_v63  ;;  %5464 = vmatpush1.bf16.msra.mxu0 %v8850_v6  ;;  %v8907_v6 = vld [vmem:[#allocation2 + $0xac0] ss:$16 sps:$4 sm:$0xff]  }
 0x4ca   :  { %5689 = vmatprep.subr.bf16.mxu1 %v8855_v3  ;;  %5730 = vmatprep.subr.bf16.mxu0 %v8858_v59 }
 0x4cc   :  { %v3738_v7 = vpop.f32.mrf.mxu1  ;;  %v3779_v56 = vpop.f32.mrf.mxu0  ;;  %5441 = vmatmul.mubr.bf16.vlgmr.msra.gmra.mxu1 %v5246_v50  ;;  %5482 = vmatmul.mubr.bf16.vlgmr.msra.gmra.mxu0 %v5246_v50  ;;  %v8915_v50 = vld [vmem:[#allocation2 + $0xaa4] ss:$16 sps:$4 sm:$0xff]  }
 0x4cd   :  { %v10191_v11 = vadd.f32 %v3738_v7, %v10170_v2  ;;  %v10194_v38 = vadd.f32 %v3779_v56, %v10173_v48  ;;  %5690 = vmatpush1.bf16.msra.mxu1 %v8853_v60  ;;  %5731 = vmatpush1.bf16.msra.mxu0 %v8856_v4  ;;  %v8868_v2 = vld [vmem:[#allocation2 + $0x9a8] ss:$16 sps:$4 sm:$0xff]   ;;  %v8918_v60 = vld [vmem:[#allocation2 + $0xaac] ss:$16 sps:$4 sm:$0xff]   ;;  %v8913_v56 = vld [vmem:[#allocation2 + $0xaa0] ss:$16 sps:$4 sm:$0xff]  }
 0x4ce   :  { %v3740_v44 = vpop.f32.mrf.mxu1  ;;  %v3781_v42 = vpop.f32.mrf.mxu0  ;;  %5691 = vmatprep.subr.bf16.mxu1 %v8861_v29  ;;  %5732 = vmatprep.subr.bf16.mxu0 %v8864_v30 }
 0x4cf   :  { %v10197_v0 = vadd.f32 %v3740_v44, %v10176_v18  ;;  %v10200_v12 = vadd.f32 %v3781_v42, %v10179_v35  ;;  %5721 = vmatprep.mubr.bf16.mxu1 %v9323_v23  ;;  %5762 = vmatprep.mubr.bf16.mxu0 %v9323_v23  ;;  %v8874_v18 = vld [vmem:[#allocation2 + $0x988] ss:$16 sps:$4 sm:$0xff]   ;;  %v8879_v35 = vld [vmem:[#allocation2 + $0x964] ss:$16 sps:$4 sm:$0xff]   ;;  %v8924_v44 = vld [vmem:[#allocation2 + $0xa8c] ss:$16 sps:$4 sm:$0xff]  }
 0x4d0   :  { %v3742_v31 = vpop.f32.mrf.mxu1  ;;  %v3783_v51 = vpop.f32.mrf.mxu0  ;;  %v8919_v42 = vld [vmem:[#allocation2 + $0xa80] ss:$16 sps:$4 sm:$0xff]  }
 0x4d1   :  { %5692 = vmatpush1.bf16.msra.mxu1 %v8859_v58  ;;  %5733 = vmatpush1.bf16.msra.mxu0 %v8862_v41  ;;  %v8921_v41 = vld [vmem:[#allocation2 + $0xa84] ss:$16 sps:$4 sm:$0xff]   ;;  %v8928_v31 = vld [vmem:[#allocation2 + $0xa68] ss:$16 sps:$4 sm:$0xff]  }
 0x4d2   :  { %v3743_v48 = vpop.f32.mrf.mxu1  ;;  %v3784_v1 = vpop.f32.mrf.mxu0  ;;  %5693 = vmatprep.subr.bf16.mxu1 %v8867_v10  ;;  %5734 = vmatprep.subr.bf16.mxu0 %v8870_v53  ;;  %v8922_v10 = vld [vmem:[#allocation2 + $0xa88] ss:$16 sps:$4 sm:$0xff]   ;;  %v8927_v53 = vld [vmem:[#allocation2 + $0xa64] ss:$16 sps:$4 sm:$0xff]  }
 0x4d3   :  { %v8933_v51 = vld [vmem:[#allocation2 + $0xa44] ss:$16 sps:$4 sm:$0xff]   ;;  %v8934_v48 = vld [vmem:[#allocation2 + $0xa48] ss:$16 sps:$4 sm:$0xff]  }
 0x4d4   :  { %v8939_v1 = vld [vmem:[#allocation2 + $0xa24] ss:$16 sps:$4 sm:$0xff]  }
 0x4d5   :  { %5694 = vmatpush1.bf16.msra.mxu1 %v8865_v46  ;;  %5735 = vmatpush1.bf16.msra.mxu0 %v8868_v2  ;;  %v8936_v46 = vld [vmem:[#allocation2 + $0xa4c] ss:$16 sps:$4 sm:$0xff]   ;;  %v8931_v2 = vld [vmem:[#allocation2 + $0xa40] ss:$16 sps:$4 sm:$0xff]  }
 0x4d6   :  { %5695 = vmatprep.subr.bf16.mxu1 %v8873_v36  ;;  %5736 = vmatprep.subr.bf16.mxu0 %v8876_v14  ;;  %v8942_v36 = vld [vmem:[#allocation2 + $0xa2c] ss:$16 sps:$4 sm:$0xff]   ;;  %v8937_v14 = vld [vmem:[#allocation2 + $0xa20] ss:$16 sps:$4 sm:$0xff]  }
 0x4d9   :  { %5696 = vmatpush1.bf16.msra.mxu1 %v8871_v5  ;;  %5737 = vmatpush1.bf16.msra.mxu0 %v8874_v18  ;;  %v8940_v5 = vld [vmem:[#allocation2 + $0xa28] ss:$16 sps:$4 sm:$0xff]   ;;  %v5776_v18 = vrot.slane %v10110_v8, 1 }
 0x4da   :  { %5697 = vmatprep.subr.bf16.mxu1 %v8879_v35  ;;  %5738 = vmatprep.subr.bf16.mxu0 %v8882_v61  ;;  %v8945_v35 = vld [vmem:[#allocation2 + $0xa04] ss:$16 sps:$4 sm:$0xff]   ;;  %v8948_v61 = vld [vmem:[#allocation2 + $0xa0c] ss:$16 sps:$4 sm:$0xff]  }
 0x4dd   :  { %5698 = vmatpush1.bf16.msra.mxu1 %v8877_v21  ;;  %5739 = vmatpush1.bf16.msra.mxu0 %v8880_v34  ;;  %v8943_v21 = vld [vmem:[#allocation2 + $0xa00] ss:$16 sps:$4 sm:$0xff]   ;;  %v8946_v34 = vld [vmem:[#allocation2 + $0xa08] ss:$16 sps:$4 sm:$0xff]  }
 0x4de   :  { %5699 = vmatprep.subr.bf16.mxu1 %v8885_v43  ;;  %5740 = vmatprep.subr.bf16.mxu0 %v8888_v22  ;;  %v10223_v43 = vsel %vm9863_vm3, %v10110_v8, %v5776_v18  ;;  %v8951_v22 = vld [vmem:[#allocation2 + $0xbe4] ss:$16 sps:$4 sm:$0xff]  }
 0x4e1   :  { %5700 = vmatpush1.bf16.msra.mxu1 %v8883_v40  ;;  %5741 = vmatpush1.bf16.msra.mxu0 %v8886_v15  ;;  %v8954_v40 = vld [vmem:[#allocation2 + $0xbec] ss:$16 sps:$4 sm:$0xff]   ;;  %v5813_v15 = vrot.slane %v10223_v43, 4 }
 0x4e2   :  { %5701 = vmatprep.subr.bf16.mxu1 %v8891_v13  ;;  %5742 = vmatprep.subr.bf16.mxu0 %v8894_v19  ;;  %v8949_v13 = vld [vmem:[#allocation2 + $0xbe0] ss:$16 sps:$4 sm:$0xff]   ;;  %v8952_v19 = vld [vmem:[#allocation2 + $0xbe8] ss:$16 sps:$4 sm:$0xff]  }
 0x4e5   :  { %5702 = vmatpush1.bf16.msra.mxu1 %v8889_v49  ;;  %5743 = vmatpush1.bf16.msra.mxu0 %v8892_v52  ;;  %v8957_v49 = vld [vmem:[#allocation2 + $0xbc4] ss:$16 sps:$4 sm:$0xff]   ;;  %v8960_v52 = vld [vmem:[#allocation2 + $0xbcc] ss:$16 sps:$4 sm:$0xff]  }
 0x4e6   :  { %5703 = vmatprep.subr.bf16.mxu1 %v8897_v16  ;;  %5744 = vmatprep.subr.bf16.mxu0 %v8900_v32 }
 0x4e9   :  { %5704 = vmatpush1.bf16.msra.mxu1 %v8895_v47  ;;  %5745 = vmatpush1.bf16.msra.mxu0 %v8898_v54  ;;  %v8955_v47 = vld [vmem:[#allocation2 + $0xbc0] ss:$16 sps:$4 sm:$0xff]   ;;  %v8958_v54 = vld [vmem:[#allocation2 + $0xbc8] ss:$16 sps:$4 sm:$0xff]  }
 0x4ea   :  { %5975 = vmatprep.subr.bf16.mxu1 %v8903_v33  ;;  %6016 = vmatprep.subr.bf16.mxu0 %v8906_v25 }
 0x4ec   :  { %v4023_v55 = vpop.f32.mrf.mxu1  ;;  %v4064_v37 = vpop.f32.mrf.mxu0  ;;  %5722 = vmatmul.mubr.bf16.vlgmr.msra.gmra.mxu1 %v5527_v45  ;;  %5763 = vmatmul.mubr.bf16.vlgmr.msra.gmra.mxu0 %v5527_v45  ;;  %v8963_v45 = vld [vmem:[#allocation2 + $0xba4] ss:$16 sps:$4 sm:$0xff]  }
 0x4ed   :  { %v10206_v26 = vadd.f32 %v4023_v55, %v10191_v11  ;;  %v10209_v63 = vadd.f32 %v4064_v37, %v10194_v38  ;;  %5976 = vmatpush1.bf16.msra.mxu1 %v8901_v57  ;;  %6017 = vmatpush1.bf16.msra.mxu0 %v8904_v39  ;;  %v8916_v11 = vld [vmem:[#allocation2 + $0xaa8] ss:$16 sps:$4 sm:$0xff]   ;;  %v8966_v57 = vld [vmem:[#allocation2 + $0xbac] ss:$16 sps:$4 sm:$0xff]   ;;  %v8961_v37 = vld [vmem:[#allocation2 + $0xba0] ss:$16 sps:$4 sm:$0xff]  }
 0x4ee   :  { %v4025_v3 = vpop.f32.mrf.mxu1  ;;  %v4066_v59 = vpop.f32.mrf.mxu0  ;;  %5977 = vmatprep.subr.bf16.mxu1 %v8909_v9  ;;  %6018 = vmatprep.subr.bf16.mxu0 %v8912_v17 }
 0x4ef   :  { %v10212_v4 = vadd.f32 %v4025_v3, %v10197_v0  ;;  %v10215_v29 = vadd.f32 %v4066_v59, %v10200_v12  ;;  %6007 = vmatprep.mubr.bf16.mxu1 %v9323_v23  ;;  %6048 = vmatprep.mubr.bf16.mxu0 %v9323_v23  ;;  %v8930_v0 = vld [vmem:[#allocation2 + $0xa6c] ss:$16 sps:$4 sm:$0xff]   ;;  %v8925_v12 = vld [vmem:[#allocation2 + $0xa60] ss:$16 sps:$4 sm:$0xff]  }
 0x4f0   :  { %v4027_v30 = vpop.f32.mrf.mxu1  ;;  %v4068_v7 = vpop.f32.mrf.mxu0  ;;  %v8972_v3 = vld [vmem:[#allocation2 + $0xb8c] ss:$16 sps:$4 sm:$0xff]   ;;  %v8967_v59 = vld [vmem:[#allocation2 + $0xb80] ss:$16 sps:$4 sm:$0xff]  }
 0x4f1   :  { %5978 = vmatpush1.bf16.msra.mxu1 %v8907_v6  ;;  %6019 = vmatpush1.bf16.msra.mxu0 %v8910_v28  ;;  %v8969_v28 = vld [vmem:[#allocation2 + $0xb84] ss:$16 sps:$4 sm:$0xff]   ;;  %v8976_v30 = vld [vmem:[#allocation2 + $0xb68] ss:$16 sps:$4 sm:$0xff]  }
 0x4f2   :  { %v4028_v38 = vpop.f32.mrf.mxu1  ;;  %v4069_v58 = vpop.f32.mrf.mxu0  ;;  %5979 = vmatprep.subr.bf16.mxu1 %v8915_v50  ;;  %6020 = vmatprep.subr.bf16.mxu0 %v8918_v60  ;;  %v8970_v50 = vld [vmem:[#allocation2 + $0xb88] ss:$16 sps:$4 sm:$0xff]   ;;  %v8975_v60 = vld [vmem:[#allocation2 + $0xb64] ss:$16 sps:$4 sm:$0xff]  }
 0x4f3   :  { %v8981_v7 = vld [vmem:[#allocation2 + $0xb44] ss:$16 sps:$4 sm:$0xff]   ;;  %v8982_v38 = vld [vmem:[#allocation2 + $0xb48] ss:$16 sps:$4 sm:$0xff]  }
 0x4f4   :  { %v8987_v58 = vld [vmem:[#allocation2 + $0xb24] ss:$16 sps:$4 sm:$0xff]  }
 0x4f5   :  { %5980 = vmatpush1.bf16.msra.mxu1 %v8913_v56  ;;  %6021 = vmatpush1.bf16.msra.mxu0 %v8916_v11  ;;  %v8984_v56 = vld [vmem:[#allocation2 + $0xb4c] ss:$16 sps:$4 sm:$0xff]   ;;  %v8979_v11 = vld [vmem:[#allocation2 + $0xb40] ss:$16 sps:$4 sm:$0xff]  }
 0x4f6   :  { %5981 = vmatprep.subr.bf16.mxu1 %v8921_v41  ;;  %6022 = vmatprep.subr.bf16.mxu0 %v8924_v44  ;;  %v8990_v41 = vld [vmem:[#allocation2 + $0xb2c] ss:$16 sps:$4 sm:$0xff]   ;;  %v8985_v44 = vld [vmem:[#allocation2 + $0xb20] ss:$16 sps:$4 sm:$0xff]  }
 0x4f9   :  { %5982 = vmatpush1.bf16.msra.mxu1 %v8919_v42  ;;  %6023 = vmatpush1.bf16.msra.mxu0 %v8922_v10  ;;  %v8988_v42 = vld [vmem:[#allocation2 + $0xb28] ss:$16 sps:$4 sm:$0xff]   ;;  %v8993_v10 = vld [vmem:[#allocation2 + $0xb04] ss:$16 sps:$4 sm:$0xff]  }
 0x4fa   :  { %5983 = vmatprep.subr.bf16.mxu1 %v8927_v53  ;;  %6024 = vmatprep.subr.bf16.mxu0 %v8930_v0  ;;  %v8996_v53 = vld [vmem:[#allocation2 + $0xb0c] ss:$16 sps:$4 sm:$0xff]   ;;  %v8991_v0 = vld [vmem:[#allocation2 + $0xb00] ss:$16 sps:$4 sm:$0xff]  }
 0x4fd   :  { %5984 = vmatpush1.bf16.msra.mxu1 %v8925_v12  ;;  %6025 = vmatpush1.bf16.msra.mxu0 %v8928_v31  ;;  %v8994_v12 = vld [vmem:[#allocation2 + $0xb08] ss:$16 sps:$4 sm:$0xff]   ;;  %v8999_v31 = vld [vmem:[#allocation2 + $0xce4] ss:$16 sps:$4 sm:$0xff]  }
 0x4fe   :  { %5985 = vmatprep.subr.bf16.mxu1 %v8933_v51  ;;  %6026 = vmatprep.subr.bf16.mxu0 %v8936_v46  ;;  %v9002_v51 = vld [vmem:[#allocation2 + $0xcec] ss:$16 sps:$4 sm:$0xff]   ;;  %v6094_v46 = vrot.slane %v10223_v43, 6 }
 0x501   :  { %5986 = vmatpush1.bf16.msra.mxu1 %v8931_v2  ;;  %6027 = vmatpush1.bf16.msra.mxu0 %v8934_v48  ;;  %v8997_v2 = vld [vmem:[#allocation2 + $0xce0] ss:$16 sps:$4 sm:$0xff]   ;;  %v9000_v48 = vld [vmem:[#allocation2 + $0xce8] ss:$16 sps:$4 sm:$0xff]  }
 0x502   :  { %5987 = vmatprep.subr.bf16.mxu1 %v8939_v1  ;;  %6028 = vmatprep.subr.bf16.mxu0 %v8942_v36  ;;  %v9005_v1 = vld [vmem:[#allocation2 + $0xcc4] ss:$16 sps:$4 sm:$0xff]   ;;  %v9008_v36 = vld [vmem:[#allocation2 + $0xccc] ss:$16 sps:$4 sm:$0xff]  }
 0x505   :  { %5988 = vmatpush1.bf16.msra.mxu1 %v8937_v14  ;;  %6029 = vmatpush1.bf16.msra.mxu0 %v8940_v5 }
 0x506   :  { %5989 = vmatprep.subr.bf16.mxu1 %v8945_v35  ;;  %6030 = vmatprep.subr.bf16.mxu0 %v8948_v61  ;;  %v9003_v61 = vld [vmem:[#allocation2 + $0xcc0] ss:$16 sps:$4 sm:$0xff]  }
 0x509   :  { %5990 = vmatpush1.bf16.msra.mxu1 %v8943_v21  ;;  %6031 = vmatpush1.bf16.msra.mxu0 %v8946_v34  ;;  %v9006_v21 = vld [vmem:[#allocation2 + $0xcc8] ss:$16 sps:$4 sm:$0xff]  }
 0x50a   :  { %6256 = vmatprep.subr.bf16.mxu1 %v8951_v22  ;;  %6297 = vmatprep.subr.bf16.mxu0 %v8954_v40  ;;  %v9011_v22 = vld [vmem:[#allocation2 + $0xca4] ss:$16 sps:$4 sm:$0xff]   ;;  %v9014_v40 = vld [vmem:[#allocation2 + $0xcac] ss:$16 sps:$4 sm:$0xff]  }
 0x50c   :  { %v4304_v16 = vpop.f32.mrf.mxu1  ;;  %v4345_v32 = vpop.f32.mrf.mxu0  ;;  %6008 = vmatmul.mubr.bf16.vlgmr.msra.gmra.mxu1 %v5813_v15  ;;  %6049 = vmatmul.mubr.bf16.vlgmr.msra.gmra.mxu0 %v5813_v15 }
 0x50d   :  { %v10227_v62 = vadd.f32 %v4304_v16, %v10206_v26  ;;  %v10230_v8 = vadd.f32 %v4345_v32, %v10209_v63  ;;  %6257 = vmatpush1.bf16.msra.mxu1 %v8949_v13  ;;  %6298 = vmatpush1.bf16.msra.mxu0 %v8952_v19  ;;  %v8964_v26 = vld [vmem:[#allocation2 + $0xba8] ss:$16 sps:$4 sm:$0xff]  }
 0x50e   :  { %v4306_v33 = vpop.f32.mrf.mxu1  ;;  %v4347_v25 = vpop.f32.mrf.mxu0  ;;  %6258 = vmatprep.subr.bf16.mxu1 %v8957_v49  ;;  %6299 = vmatprep.subr.bf16.mxu0 %v8960_v52  ;;  %v9009_v52 = vld [vmem:[#allocation2 + $0xca0] ss:$16 sps:$4 sm:$0xff]   ;;  %v9012_v16 = vld [vmem:[#allocation2 + $0xca8] ss:$16 sps:$4 sm:$0xff]  }
 0x50f   :  { %v10233_v39 = vadd.f32 %v4306_v33, %v10212_v4  ;;  %v10236_v9 = vadd.f32 %v4347_v25, %v10215_v29  ;;  %6288 = vmatprep.mubr.bf16.mxu1 %v9323_v23  ;;  %6329 = vmatprep.mubr.bf16.mxu0 %v9323_v23  ;;  %v8978_v4 = vld [vmem:[#allocation2 + $0xb6c] ss:$16 sps:$4 sm:$0xff]   ;;  %v8973_v29 = vld [vmem:[#allocation2 + $0xb60] ss:$16 sps:$4 sm:$0xff]   ;;  %v9018_v33 = vld [vmem:[#allocation2 + $0xc88] ss:$16 sps:$4 sm:$0xff]  }
 0x510   :  { %v4308_v17 = vpop.f32.mrf.mxu1  ;;  %v4349_v55 = vpop.f32.mrf.mxu0  ;;  %v9023_v25 = vld [vmem:[#allocation2 + $0xc64] ss:$16 sps:$4 sm:$0xff]  }
 0x511   :  { %6259 = vmatpush1.bf16.msra.mxu1 %v8955_v47  ;;  %6300 = vmatpush1.bf16.msra.mxu0 %v8958_v54  ;;  %v9020_v47 = vld [vmem:[#allocation2 + $0xc8c] ss:$16 sps:$4 sm:$0xff]   ;;  %v9015_v54 = vld [vmem:[#allocation2 + $0xc80] ss:$16 sps:$4 sm:$0xff]   ;;  %v9030_v55 = vld [vmem:[#allocation2 + $0xc48] ss:$16 sps:$4 sm:$0xff]  }
 0x512   :  { %v4309_v63 = vpop.f32.mrf.mxu1  ;;  %v4350_v6 = vpop.f32.mrf.mxu0  ;;  %6260 = vmatprep.subr.bf16.mxu1 %v8963_v45  ;;  %6301 = vmatprep.subr.bf16.mxu0 %v8966_v57  ;;  %v9021_v45 = vld [vmem:[#allocation2 + $0xc60] ss:$16 sps:$4 sm:$0xff]   ;;  %v9024_v57 = vld [vmem:[#allocation2 + $0xc68] ss:$16 sps:$4 sm:$0xff]  }
 0x513   :  { %v9027_v17 = vld [vmem:[#allocation2 + $0xc40] ss:$16 sps:$4 sm:$0xff]   ;;  %v9036_v6 = vld [vmem:[#allocation2 + $0xc28] ss:$16 sps:$4 sm:$0xff]  }
 0x514   :  { %v9033_v63 = vld [vmem:[#allocation2 + $0xc20] ss:$16 sps:$4 sm:$0xff]  }
 0x515   :  { %6261 = vmatpush1.bf16.msra.mxu1 %v8961_v37  ;;  %6302 = vmatpush1.bf16.msra.mxu0 %v8964_v26  ;;  %v9035_v37 = vld [vmem:[#allocation2 + $0xc24] ss:$16 sps:$4 sm:$0xff]   ;;  %v9038_v26 = vld [vmem:[#allocation2 + $0xc2c] ss:$16 sps:$4 sm:$0xff]  }
 0x516   :  { %6262 = vmatprep.subr.bf16.mxu1 %v8969_v28  ;;  %6303 = vmatprep.subr.bf16.mxu0 %v8972_v3  ;;  %v9041_v28 = vld [vmem:[#allocation2 + $0xc04] ss:$16 sps:$4 sm:$0xff]   ;;  %v9044_v3 = vld [vmem:[#allocation2 + $0xc0c] ss:$16 sps:$4 sm:$0xff]  }
 0x519   :  { %6263 = vmatpush1.bf16.msra.mxu1 %v8967_v59  ;;  %6304 = vmatpush1.bf16.msra.mxu0 %v8970_v50  ;;  %v9039_v59 = vld [vmem:[#allocation2 + $0xc00] ss:$16 sps:$4 sm:$0xff]   ;;  %v9042_v50 = vld [vmem:[#allocation2 + $0xc08] ss:$16 sps:$4 sm:$0xff]  }
 0x51a   :  { %6264 = vmatprep.subr.bf16.mxu1 %v8975_v60  ;;  %6305 = vmatprep.subr.bf16.mxu0 %v8978_v4 }
 0x51d   :  { %6265 = vmatpush1.bf16.msra.mxu1 %v8973_v29  ;;  %6306 = vmatpush1.bf16.msra.mxu0 %v8976_v30 }
 0x51e   :  { %6266 = vmatprep.subr.bf16.mxu1 %v8981_v7  ;;  %6307 = vmatprep.subr.bf16.mxu0 %v8984_v56 }
 0x521   :  { %6267 = vmatpush1.bf16.msra.mxu1 %v8979_v11  ;;  %6308 = vmatpush1.bf16.msra.mxu0 %v8982_v38 }
 0x522   :  { %6268 = vmatprep.subr.bf16.mxu1 %v8987_v58  ;;  %6309 = vmatprep.subr.bf16.mxu0 %v8990_v41 }
 0x525   :  { %6269 = vmatpush1.bf16.msra.mxu1 %v8985_v44  ;;  %6310 = vmatpush1.bf16.msra.mxu0 %v8988_v42 }
 0x526   :  { %6270 = vmatprep.subr.bf16.mxu1 %v8993_v10  ;;  %6311 = vmatprep.subr.bf16.mxu0 %v8996_v53 }
 0x529   :  { %6271 = vmatpush1.bf16.msra.mxu1 %v8991_v0  ;;  %6312 = vmatpush1.bf16.msra.mxu0 %v8994_v12 }
 0x52a   :  { %6535 = vmatprep.subr.bf16.mxu1 %v8999_v31  ;;  %6576 = vmatprep.subr.bf16.mxu0 %v9002_v51 }
 0x52c   :  { %v4590_v14 = vpop.f32.mrf.mxu1  ;;  %v4631_v5 = vpop.f32.mrf.mxu0  ;;  %6289 = vmatmul.mubr.bf16.vlgmr.msra.gmra.mxu1 %v6094_v46  ;;  %6330 = vmatmul.mubr.bf16.vlgmr.msra.gmra.mxu0 %v6094_v46 }
 0x52d   :  { %v10242_v18 = vadd.f32 %v4590_v14, %v10227_v62  ;;  %v10245_v35 = vadd.f32 %v4631_v5, %v10230_v8  ;;  %6536 = vmatpush1.bf16.msra.mxu1 %v8997_v2  ;;  %6577 = vmatpush1.bf16.msra.mxu0 %v9000_v48  ;;  %v9017_v8 = vld [vmem:[#allocation2 + $0xc84] ss:$16 sps:$4 sm:$0xff]  }
 0x52e   :  { %v4592_v34 = vpop.f32.mrf.mxu1  ;;  %v4633_v43 = vpop.f32.mrf.mxu0  ;;  %6537 = vmatprep.subr.bf16.mxu1 %v9005_v1  ;;  %6578 = vmatprep.subr.bf16.mxu0 %v9008_v36 }
 0x52f   :  { %v10248_v15 = vadd.f32 %v4592_v34, %v10233_v39  ;;  %v10251_v13 = vadd.f32 %v4633_v43, %v10236_v9  ;;  %6567 = vmatprep.mubr.bf16.mxu1 %v9323_v23  ;;  %6608 = vmatprep.mubr.bf16.mxu0 %v9323_v23  ;;  %v9026_v23 = vld [vmem:[#allocation2 + $0xc6c] ss:$16 sps:$4 sm:$0xff]   ;;  %v9029_v39 = vld [vmem:[#allocation2 + $0xc44] ss:$16 sps:$4 sm:$0xff]  }
 0x530   :  { %v4594_v19 = vpop.f32.mrf.mxu1  ;;  %v4635_v49 = vpop.f32.mrf.mxu0  ;;  %v9032_v9 = vld [vmem:[#allocation2 + $0xc4c] ss:$16 sps:$4 sm:$0xff]  }
 0x531   :  { %6538 = vmatpush1.bf16.msra.mxu1 %v9003_v61  ;;  %6579 = vmatpush1.bf16.msra.mxu0 %v9006_v21 }
 0x532   :  { %v4595_v32 = vpop.f32.mrf.mxu1  ;;  %v4636_v62 = vpop.f32.mrf.mxu0  ;;  %6539 = vmatprep.subr.bf16.mxu1 %v9011_v22  ;;  %6580 = vmatprep.subr.bf16.mxu0 %v9014_v40 }
 0x535   :  { %6540 = vmatpush1.bf16.msra.mxu1 %v9009_v52  ;;  %6581 = vmatpush1.bf16.msra.mxu0 %v9012_v16 }
 0x536   :  { %6541 = vmatprep.subr.bf16.mxu1 %v9017_v8  ;;  %6582 = vmatprep.subr.bf16.mxu0 %v9020_v47 }
 0x539   :  { %6542 = vmatpush1.bf16.msra.mxu1 %v9015_v54  ;;  %6583 = vmatpush1.bf16.msra.mxu0 %v9018_v33 }
 0x53a   :  { %6543 = vmatprep.subr.bf16.mxu1 %v9023_v25  ;;  %6584 = vmatprep.subr.bf16.mxu0 %v9026_v23 }
 0x53d   :  { %6544 = vmatpush1.bf16.msra.mxu1 %v9021_v45  ;;  %6585 = vmatpush1.bf16.msra.mxu0 %v9024_v57 }
 0x53e   :  { %6545 = vmatprep.subr.bf16.mxu1 %v9029_v39  ;;  %6586 = vmatprep.subr.bf16.mxu0 %v9032_v9 }
 0x541   :  { %6546 = vmatpush1.bf16.msra.mxu1 %v9027_v17  ;;  %6587 = vmatpush1.bf16.msra.mxu0 %v9030_v55 }
 0x542   :  { %6547 = vmatprep.subr.bf16.mxu1 %v9035_v37  ;;  %6588 = vmatprep.subr.bf16.mxu0 %v9038_v26 }
 0x545   :  { %6548 = vmatpush1.bf16.msra.mxu1 %v9033_v63  ;;  %6589 = vmatpush1.bf16.msra.mxu0 %v9036_v6 }
 0x546   :  { %6549 = vmatprep.subr.bf16.mxu1 %v9041_v28  ;;  %6590 = vmatprep.subr.bf16.mxu0 %v9044_v3 }
 0x549   :  { %6550 = vmatpush1.bf16.msra.mxu1 %v9039_v59  ;;  %6591 = vmatpush1.bf16.msra.mxu0 %v9042_v50 }
 0x54c   :  { %v4871_v60 = vpop.f32.mrf.mxu1  ;;  %v4912_v4 = vpop.f32.mrf.mxu0  ;;  %6568 = vmatmul.mubr.bf16.vlgmr.msra.gmra.mxu1 %v10106_v20  ;;  %6609 = vmatmul.mubr.bf16.vlgmr.msra.gmra.mxu0 %v10106_v20 }
 0x54d   :  { %v4919_v29 = vadd.f32 %v4871_v60, %v10242_v18  ;;  %v4921_v30 = vadd.f32 %v4912_v4, %v10245_v35 }
 0x54e   :  { %v4873_v7 = vpop.f32.mrf.mxu1  ;;  %v4914_v56 = vpop.f32.mrf.mxu0 }
 0x54f   :  { %v4920_v11 = vadd.f32 %v4873_v7, %v10248_v15  ;;  %v4922_v38 = vadd.f32 %v4914_v56, %v10251_v13  ;;  %v6629_v7 = vsub.s32 1, %v9860_v24  ;;  %v6637_v56 = vsub.s32 3, %v9860_v24 }
 0x550   :  { %v4875_v58 = vpop.f32.mrf.mxu1  ;;  %v4916_v41 = vpop.f32.mrf.mxu0 }
 0x552   :  { %v4876_v44 = vpop.f32.mrf.mxu1  ;;  %v4917_v42 = vpop.f32.mrf.mxu0 }
 0x56c   :  { %v5157_v10 = vpop.f32.mrf.mxu1  ;;  %v5198_v53 = vpop.f32.mrf.mxu0 }
 0x56d   :  { %v5205_v0 = vadd.f32 %v5157_v10, %v4919_v29  ;;  %v5207_v12 = vadd.f32 %v5198_v53, %v4921_v30  ;;  %v6633_v29 = vsub.s32 2, %v9860_v24  ;;  %v6621_v30 = vld [vmem:[#allocation16] sm:$0xf] }
 0x56e   :  { %v5159_v31 = vpop.f32.mrf.mxu1  ;;  %v5200_v20 = vpop.f32.mrf.mxu0  ;;  %v6626_v58 = vrot.slane %v6621_v30, %v2008_v27 }
 0x56f   :  { %v5206_v51 = vadd.f32 %v5159_v31, %v4920_v11  ;;  %v5208_v46 = vadd.f32 %v5200_v20, %v4922_v38  ;;  %v6634_v41 = vrot.slane %v6621_v30, %v6633_v29  ;;  %v6630_v31 = vrot.slane %v6621_v30, %v6629_v7 }
 0x570   :  { %v5161_v2 = vpop.f32.mrf.mxu1  ;;  %v5202_v48 = vpop.f32.mrf.mxu0  ;;  %v6638_v20 = vrot.slane %v6621_v30, %v6637_v56 }
 0x572   :  { %v5162_v1 = vpop.f32.mrf.mxu1  ;;  %v5203_v36 = vpop.f32.mrf.mxu0 }
 0x58c   :  { %v5442_v14 = vpop.f32.mrf.mxu1  ;;  %v5483_v5 = vpop.f32.mrf.mxu0 }
 0x58d   :  { %v5490_v18 = vadd.f32 %v5442_v14, %v5205_v0  ;;  %v5492_v35 = vadd.f32 %v5483_v5, %v5207_v12 }
 0x58e   :  { %v5444_v61 = vpop.f32.mrf.mxu1  ;;  %v5485_v21 = vpop.f32.mrf.mxu0 }
 0x58f   :  { %v5491_v34 = vadd.f32 %v5444_v61, %v5206_v51  ;;  %v5493_v43 = vadd.f32 %v5485_v21, %v5208_v46 }
 0x590   :  { %v5446_v22 = vpop.f32.mrf.mxu1  ;;  %v5487_v40 = vpop.f32.mrf.mxu0 }
 0x592   :  { %v5447_v15 = vpop.f32.mrf.mxu1  ;;  %v5488_v13 = vpop.f32.mrf.mxu0 }
 0x5ac   :  { %v5723_v19 = vpop.f32.mrf.mxu1  ;;  %v5764_v49 = vpop.f32.mrf.mxu0 }
 0x5ad   :  { %v5771_v52 = vadd.f32 %v5723_v19, %v5490_v18  ;;  %v5773_v16 = vadd.f32 %v5764_v49, %v5492_v35 }
 0x5ae   :  { %v5725_v32 = vpop.f32.mrf.mxu1  ;;  %v5766_v62 = vpop.f32.mrf.mxu0 }
 0x5af   :  { %v5772_v8 = vadd.f32 %v5725_v32, %v5491_v34  ;;  %v5774_v47 = vadd.f32 %v5766_v62, %v5493_v43 }
 0x5b0   :  { %v5727_v54 = vpop.f32.mrf.mxu1  ;;  %v5768_v33 = vpop.f32.mrf.mxu0 }
 0x5b2   :  { %v5728_v25 = vpop.f32.mrf.mxu1  ;;  %v5769_v23 = vpop.f32.mrf.mxu0 }
 0x5cc   :  { %v6009_v45 = vpop.f32.mrf.mxu1  ;;  %v6050_v57 = vpop.f32.mrf.mxu0 }
 0x5cd   :  { %v6057_v11 = vadd.f32 %v6009_v45, %v5771_v52  ;;  %v6059_v38 = vadd.f32 %v6050_v57, %v5773_v16 }
 0x5ce   :  { %v6011_v39 = vpop.f32.mrf.mxu1  ;;  %v6052_v9 = vpop.f32.mrf.mxu0 }
 0x5cf   :  { %v6058_v44 = vadd.f32 %v6011_v39, %v5772_v8  ;;  %v6060_v42 = vadd.f32 %v6052_v9, %v5774_v47 }
 0x5d0   :  { %v6013_v17 = vpop.f32.mrf.mxu1  ;;  %v6054_v55 = vpop.f32.mrf.mxu0 }
 0x5d2   :  { %v6014_v37 = vpop.f32.mrf.mxu1  ;;  %v6055_v26 = vpop.f32.mrf.mxu0 }
 0x5ec   :  { %v6290_v63 = vpop.f32.mrf.mxu1  ;;  %v6331_v6 = vpop.f32.mrf.mxu0 }
 0x5ed   :  { %v6338_v10 = vadd.f32 %v6290_v63, %v6057_v11  ;;  %v6340_v53 = vadd.f32 %v6331_v6, %v6059_v38 }
 0x5ee   :  { %v6292_v28 = vpop.f32.mrf.mxu1  ;;  %v6333_v3 = vpop.f32.mrf.mxu0 }
 0x5ef   :  { %v6339_v51 = vadd.f32 %v6292_v28, %v6058_v44  ;;  %v6341_v46 = vadd.f32 %v6333_v3, %v6060_v42 }
 0x5f0   :  { %v6294_v59 = vpop.f32.mrf.mxu1  ;;  %v6335_v50 = vpop.f32.mrf.mxu0 }
 0x5f2   :  { %v6295_v60 = vpop.f32.mrf.mxu1  ;;  %v6336_v4 = vpop.f32.mrf.mxu0 }
 0x60c   :  { %v6569_v0 = vpop.f32.mrf.mxu1  ;;  %v6610_v12 = vpop.f32.mrf.mxu0 }
 0x60d   :  { %v6617_v2 = vadd.f32 %v6569_v0, %v6338_v10  ;;  %v6619_v48 = vadd.f32 %v6610_v12, %v6340_v53 }
 0x60e   :  { %v6571_v1 = vpop.f32.mrf.mxu1  ;;  %v6612_v36 = vpop.f32.mrf.mxu0 }
 0x60f   :  { %v6643_v14 = vadd.f32 %v6626_v58, %v6617_v2  ;;  %v6645_v5 = vadd.f32 %v6634_v41, %v6619_v48  ;;  %v6618_v18 = vadd.f32 %v6571_v1, %v6339_v51  ;;  %v6620_v24 = vadd.f32 %v6612_v36, %v6341_v46 }
 0x610   :  { %v6573_v27 = vpop.f32.mrf.mxu1  ;;  %v6614_v35 = vpop.f32.mrf.mxu0 }
 0x611   :  { %v6647_v61 = vmax.f32 %v6643_v14, 0.0  ;;  %v6649_v21 = vmax.f32 %v6645_v5, 0.0  ;;  %v6644_v34 = vadd.f32 %v6630_v31, %v6618_v18  ;;  %v6646_v43 = vadd.f32 %v6638_v20, %v6620_v24 }
 0x612   :  { %v6574_v22 = vpop.f32.mrf.mxu1  ;;  %v6615_v40 = vpop.f32.mrf.mxu0 }
 0x613   :  { %v10266_v15 = vpack.c.bf16 %v6647_v61, %v6647_v61  ;;  %v10268_v13 = vpack.c.bf16 %v6649_v21, %v6649_v21  ;;  %v6648_v19 = vmax.f32 %v6644_v34, 0.0  ;;  %v6650_v49 = vmax.f32 %v6646_v43, 0.0 }
 0x615   :  { %v6652_v52 = vpack.c.bf16 %v6648_v19, %v6648_v19  ;;  %v6654_v16 = vpack.c.bf16 %v6650_v49, %v6650_v49 }
 0x616   :  { %9309 = dma.done.wait [#allocation4 + $0x1], 4096 }
 0x617   :  { %9310 = vsyncadd [#allocation4 + $0x1], 4294963200  ;;  %6954 = vmatprep.mubr.bf16.mxu1 %v6652_v52  ;;  %6994 = vmatprep.mubr.bf16.mxu0 %v6654_v16  ;;  %v9045_v32 = vld [vmem:[#allocation3 + $0x78] sm:$0xff]   ;;  %v9049_v54 = vld [vmem:[#allocation3 + $0x70] sm:$0xff]   ;;  %s9326_s7 = smov [#allocation19]  }
 0x618   :  { %v9046_v62 = vld [vmem:[#allocation3 + $0xf8] sm:$0xff]   ;;  %7823 = vmatprep.subr.bf16.mxu1 %v9045_v32  ;;  %v9050_v33 = vld [vmem:[#allocation3 + $0xf0] sm:$0xff]   ;;  %v9053_v45 = vld [vmem:[#allocation3 + $0x68] sm:$0xff]   ;;  %s7009_s9 = sshll.u32 %s9326_s7, 4  ;;  %s7010_s9 = int_to_ptr.vmem [resolvable:$true] %s7009_s9 }
 0x619   :  { %v9047_v8 = vld [vmem:[#allocation3 + $0x38] sm:$0xff]   ;;  %7845 = vmatprep.subr.bf16.mxu0 %v9046_v62  ;;  %v9051_v25 = vld [vmem:[#allocation3 + $0x30] sm:$0xff]   ;;  %v9054_v57 = vld [vmem:[#allocation3 + $0xe8] sm:$0xff]   ;;  %s9277_s24 = scalar_lea.vmem %s7010_s9, 32  ;;  %p9282_p9 = scmp.lt.s32.totalorder %s7010_s9, %s7010_s9 }
 0x61a   :  { %v9048_v47 = vld [vmem:[#allocation3 + $0xb8] sm:$0xff]   ;;  %7824 = vmatpush3.bf16.msra.mxu1 %v9047_v8  ;;  %v9052_v23 = vld [vmem:[#allocation3 + $0xb0] sm:$0xff]   ;;  %v9055_v39 = vld [vmem:[#allocation3 + $0x28] sm:$0xff]   ;;  %p9278_p8 = scmp.ne.s32.totalorder %s7010_s9, %s9277_s24  ;;  %p9283_p10 = scmp.lt.s32.totalorder %s9277_s24, %s9277_s24 }
 0x61b   :  { %7846 = vmatpush3.bf16.msra.mxu0 %v9048_v47  ;;  %7825 = vmatprep.subr.bf16.mxu1 %v9049_v54  ;;  %v9056_v9 = vld [vmem:[#allocation3 + $0xa8] sm:$0xff]   ;;  %v9057_v17 = vld [vmem:[#allocation3 + $0x60] sm:$0xff]   ;;  %v9061_v63 = vld [vmem:[#allocation3 + $0x58] sm:$0xff]  }
 0x61c   :  { %7847 = vmatprep.subr.bf16.mxu0 %v9050_v33  ;;  %v9058_v55 = vld [vmem:[#allocation3 + $0xe0] sm:$0xff]   ;;  %v9062_v6 = vld [vmem:[#allocation3 + $0xd8] sm:$0xff]   ;;  %v9065_v59 = vld [vmem:[#allocation3 + $0x50] sm:$0xff]   ;;  %p9284_p11 = por %p9283_p10, %p9282_p9 }
 0x61d   :  { %v9059_v37 = vld [vmem:[#allocation3 + $0x20] sm:$0xff]   ;;  %v9063_v28 = vld [vmem:[#allocation3 + $0x18] sm:$0xff]   ;;  %v9066_v50 = vld [vmem:[#allocation3 + $0xd0] sm:$0xff]  }
 0x61e   :  { %7826 = vmatpush3.bf16.msra.mxu1 %v9051_v25  ;;  %v9060_v26 = vld [vmem:[#allocation3 + $0xa0] sm:$0xff]   ;;  %v9064_v3 = vld [vmem:[#allocation3 + $0x98] sm:$0xff]   ;;  %v9067_v60 = vld [vmem:[#allocation3 + $0x10] sm:$0xff]   ;;  %p9285_p12 = pnand %p9284_p11, %p9278_p8 }
 0x61f   :  { %7848 = vmatpush3.bf16.msra.mxu0 %v9052_v23  ;;  %7827 = vmatprep.subr.bf16.mxu1 %v9053_v45  ;;  %v9068_v4 = vld [vmem:[#allocation3 + $0x90] sm:$0xff]   ;;  %v9069_v29 = vld [vmem:[#allocation3 + $0x48] sm:$0xff]   ;;  %v9073_v11 = vld [vmem:[#allocation3 + $0x40] sm:$0xff]  }
 0x620   :  { %7849 = vmatprep.subr.bf16.mxu0 %v9054_v57  ;;  %v9070_v30 = vld [vmem:[#allocation3 + $0xc8] sm:$0xff]   ;;  %v9074_v38 = vld [vmem:[#allocation3 + $0xc0] sm:$0xff]  }
 0x621   :  { %v9071_v7 = vld [vmem:[#allocation3 + $0x8] sm:$0xff]   ;;  %v9075_v58 = vld [vmem:[#allocation3] sm:$0xff]  }
 0x622   :  { %7828 = vmatpush3.bf16.msra.mxu1 %v9055_v39  ;;  %v9072_v56 = vld [vmem:[#allocation3 + $0x88] sm:$0xff]   ;;  %v9076_v41 = vld [vmem:[#allocation3 + $0x80] sm:$0xff]  }
 0x623   :  { %7850 = vmatpush3.bf16.msra.mxu0 %v9056_v9  ;;  %7829 = vmatprep.subr.bf16.mxu1 %v9057_v17  ;;  %v7582_v10 = vld [vmem:[#allocation17] ss:$0 sm:$0xff] }
 0x624   :  { %7851 = vmatprep.subr.bf16.mxu0 %v9058_v55 }
 0x626   :  { %7830 = vmatpush3.bf16.msra.mxu1 %v9059_v37 }
 0x627   :  { %7852 = vmatpush3.bf16.msra.mxu0 %v9060_v26  ;;  %7831 = vmatprep.subr.bf16.mxu1 %v9061_v63 }
 0x628   :  { %7853 = vmatprep.subr.bf16.mxu0 %v9062_v6 }
 0x62a   :  { %7832 = vmatpush3.bf16.msra.mxu1 %v9063_v28 }
 0x62b   :  { %7854 = vmatpush3.bf16.msra.mxu0 %v9064_v3  ;;  %7833 = vmatprep.subr.bf16.mxu1 %v9065_v59 }
 0x62c   :  { %7855 = vmatprep.subr.bf16.mxu0 %v9066_v50 }
 0x62e   :  { %7834 = vmatpush3.bf16.msra.mxu1 %v9067_v60 }
 0x62f   :  { %7856 = vmatpush3.bf16.msra.mxu0 %v9068_v4  ;;  %7835 = vmatprep.subr.bf16.mxu1 %v9069_v29 }
 0x630   :  { %7857 = vmatprep.subr.bf16.mxu0 %v9070_v30 }
 0x632   :  { %7836 = vmatpush3.bf16.msra.mxu1 %v9071_v7 }
 0x633   :  { %7858 = vmatpush3.bf16.msra.mxu0 %v9072_v56  ;;  %7837 = vmatprep.subr.bf16.mxu1 %v9073_v11 }
 0x634   :  { %7859 = vmatprep.subr.bf16.mxu0 %v9074_v38 }
 0x636   :  { %7838 = vmatpush3.bf16.msra.mxu1 %v9075_v58 }
 0x637   :  { %7860 = vmatpush3.bf16.msra.mxu0 %v9076_v41 }
 0x639   :  { %6955 = vmatmul.mubr.bf16.vlgmr.msra.gmra.mxu1 %v10266_v15 }
 0x63a   :  { %6995 = vmatmul.mubr.bf16.vlgmr.msra.gmra.mxu0 %v10268_v13 }
 0x6f9   :  { %v7839_v44 = vpop.f32.mrf.mxu1 }
 0x6fa   :  { %v7861_v42 = vpop.f32.mrf.mxu0 }
 0x6fb   :  { %v7840_v53 = vpop.f32.mrf.mxu1 }
 0x6fc   :  { %v7841_v0 = vadd.f32 %v7840_v53, %v7839_v44  ;;  %v7862_v12 = vpop.f32.mrf.mxu0 }
 0x6fd   :  { %v7842_v31 = vpop.f32.mrf.mxu1  ;;  %v7863_v51 = vadd.f32 %v7862_v12, %v7861_v42 }
 0x6fe   :  { %v6957_v20 = vadd.f32 %v7841_v0, %v7582_v10  ;;  %v7864_v46 = vpop.f32.mrf.mxu0 }
 0x6ff   :  { %v7843_v2 = vpop.f32.mrf.mxu1 }
 0x700   :  { %v6997_v48 = vadd.f32 %v7863_v51, %v6957_v20  ;;  %v7865_v1 = vpop.f32.mrf.mxu0 }
 0x702   :  { %7002 = vst [vmem:[#allocation19] sm:$0x3] %v6997_v48 }
 0x703   :  { %9288 = shalt.err (!%p9285_p12)
}
 0x704   :  { %7012 = dma.vmem_to_hbm [thread:$0]  %s7010_s9, 32, %s10286_s11, [#allocation7]  }
 0x705   :  { %9311 = dma.done.wait [#allocation7], 32  }
 0x706   :  { %9312 = vsyncadd [#allocation7], 4294967264 }
 0x707   :  { %7016 = vsyncpa [#allocation6], 1 }
 0x708   :  { %7017 = vsyncpa [#allocation9], 1 }
 0x709   :  { %7018 = vsyncpa [#allocation12], 1 }
 0x70a   :  { %7019 = vsyncpa [#allocation15], 1 }
 0x70b   :  { %7020 = vsyncpa [#allocation18], 1 }
 0x70c   :  { %7021 = vsyncpa [#allocation7], 1 }
 0x70d   :  { %7022 = vsyncmov [#allocation4] }
 0x710   :  { %s7023_s26 = vpop.sfrf %7022 }
 0x711   :  { %p7615_p13 = scmp.ne.s32.totalorder %s7023_s26, 0 }
 0x713   :  { %7027 = shalt.err (%p7615_p13)  }
 0x714   :  { %7029 = vsyncmov [#allocation4 + $0x1] }
 0x717   :  { %s7030_s27 = vpop.sfrf %7029 }
 0x718   :  { %p7616_p0 = scmp.ne.s32.totalorder %s7030_s27, 0 }
 0x71a   :  { %7034 = shalt.err (%p7616_p0)  }

</bundles_post_ra>
